<compile_context>
chip_gen: v5e
topology: v5e:2x2
jax: 0.10.0
libtpu: 0.0.40
codegen_flags: <defaults>
</compile_context>

<pallas_src>
import functools

import jax
import jax.numpy as jnp
import numpy as np
from jax.experimental import pallas as pl
from jax.experimental.pallas import tpu as pltpu


def _latent_kernel(x_ref, w1_ref, s1_ref, t1_ref, w2_ref, s2_ref, t2_ref,
                   o_ref, xpad_ref, ypad_ref, *, h, w, cin, cmid, cout):
    """Fused conv3x3 + BN(inference) + ReLU, twice, for one image (NHWC)."""
    taps = [(kh, kw) for kh in range(3) for kw in range(3)]

    # ---- conv1: zero-pad in VMEM, im2col, single MXU matmul ----
    xpad_ref[...] = jnp.zeros_like(xpad_ref)
    xpad_ref[1:h + 1, 1:w + 1, :] = x_ref[...].astype(xpad_ref.dtype)
    patches1 = jnp.concatenate(
        [xpad_ref[kh:kh + h, kw:kw + w, :].astype(jnp.bfloat16)
         for kh, kw in taps],
        axis=-1,
    ).reshape(h * w, 9 * cin)
    y = jnp.dot(patches1, w1_ref[...], preferred_element_type=jnp.float32)
    # fused conv-bias + BatchNorm (inference, folded) + ReLU in f32
    y = jnp.maximum(y * s1_ref[...] + t1_ref[...], 0.0)

    # ---- conv2: pad intermediate in VMEM, im2col, single MXU matmul ----
    ypad_ref[...] = jnp.zeros_like(ypad_ref)
    ypad_ref[1:h + 1, 1:w + 1, :] = y.reshape(h, w, cmid)
    patches2 = jnp.concatenate(
        [ypad_ref[kh:kh + h, kw:kw + w, :].astype(jnp.bfloat16)
         for kh, kw in taps],
        axis=-1,
    ).reshape(h * w, 9 * cmid)
    z = jnp.dot(patches2, w2_ref[...], preferred_element_type=jnp.float32)
    z = jnp.maximum(z * s2_ref[...] + t2_ref[...], 0.0)

    # single lane-dense full-block store
    o_ref[...] = z.reshape(h, w, cout).astype(o_ref.dtype)


def latent_forward(x_nchw, w1, b1, g1, be1, m1, v1, w2, b2, g2, be2, m2, v2,
                   eps=1e-5):
    """Forward pass of Latent. x_nchw: (N, Cin, H, W) -> (N, Cout, H, W)."""
    n, cin, h, w = x_nchw.shape
    cmid = w1.shape[0]
    cout = w2.shape[0]
    assert w1.shape[2:] == (3, 3) and w2.shape[2:] == (3, 3)

    # glue: layout change + im2col weight reshape + BN folding (tiny XLA ops)
    x = jnp.transpose(x_nchw, (0, 2, 3, 1)).astype(jnp.bfloat16)          # NHWC
    w1f = jnp.transpose(w1, (2, 3, 1, 0)).reshape(9 * cin, cmid)
    w1f = w1f.astype(jnp.bfloat16)
    w2f = jnp.transpose(w2, (2, 3, 1, 0)).reshape(9 * cmid, cout)
    w2f = w2f.astype(jnp.bfloat16)
    s1 = (g1 / jnp.sqrt(v1 + eps)).astype(jnp.float32)
    t1 = ((b1 - m1) * s1 + be1).astype(jnp.float32)
    s2 = (g2 / jnp.sqrt(v2 + eps)).astype(jnp.float32)
    t2 = ((b2 - m2) * s2 + be2).astype(jnp.float32)
    s1, t1 = s1.reshape(1, cmid), t1.reshape(1, cmid)
    s2, t2 = s2.reshape(1, cout), t2.reshape(1, cout)

    # per-step VMEM working-set estimate -> explicit scoped-VMEM limit
    est = 2 * 2 * (h * w * cin + 9 * cin * cmid + 9 * cmid * cout)  # dbl-buffered bf16 inputs
    est += 2 * 4 * h * w * cout                                     # dbl-buffered f32 output
    est += 4 * (h + 2) * (w + 2) * (cin + cmid)                     # padded f32 scratches
    est += 2 * h * w * 9 * (cin + cmid)                             # bf16 im2col slabs
    est += 4 * h * w * (cmid + cout)                                # f32 activations
    vmem_limit = int(min(60 * 1024 * 1024, max(32 * 1024 * 1024, 2 * est)))

    kernel = functools.partial(_latent_kernel, h=h, w=w, cin=cin, cmid=cmid,
                               cout=cout)

    out_nhwc = pl.pallas_call(
        kernel,
        out_shape=jax.ShapeDtypeStruct((n, h, w, cout), jnp.float32),
        grid=(n,),
        in_specs=[
            pl.BlockSpec((None, h, w, cin), lambda b: (b, 0, 0, 0)),
            pl.BlockSpec((9 * cin, cmid), lambda b: (0, 0)),
            pl.BlockSpec((1, cmid), lambda b: (0, 0)),
            pl.BlockSpec((1, cmid), lambda b: (0, 0)),
            pl.BlockSpec((9 * cmid, cout), lambda b: (0, 0)),
            pl.BlockSpec((1, cout), lambda b: (0, 0)),
            pl.BlockSpec((1, cout), lambda b: (0, 0)),
        ],
        out_specs=pl.BlockSpec((None, h, w, cout), lambda b: (b, 0, 0, 0)),
        scratch_shapes=[
            pltpu.VMEM((h + 2, w + 2, cin), jnp.float32),
            pltpu.VMEM((h + 2, w + 2, cmid), jnp.float32),
        ],
        compiler_params=pltpu.CompilerParams(
            dimension_semantics=("parallel",),
            vmem_limit_bytes=vmem_limit,
        ),
    )(x, w1f, s1, t1, w2f, s2, t2)

    return jnp.transpose(out_nhwc, (0, 3, 1, 2))                    # back to NCHW


def _reference(x, w1, b1, g1, be1, m1, v1, w2, b2, g2, be2, m2, v2, eps=1e-5):
    """Pure-JAX reference with identical (inference-BN, bf16-matmul) semantics."""
    def block(inp, wt, bi, ga, be, mu, va):
        y = jax.lax.conv_general_dilated(
            inp.astype(jnp.bfloat16), wt.astype(jnp.bfloat16),
            window_strides=(1, 1), padding=((1, 1), (1, 1)),
            dimension_numbers=("NCHW", "OIHW", "NCHW"),
            preferred_element_type=jnp.float32)
        y = y + bi[None, :, None, None]
        y = (y - mu[None, :, None, None]) * (
            ga[None, :, None, None] / jnp.sqrt(va[None, :, None, None] + eps)
        ) + be[None, :, None, None]
        return jnp.maximum(y, 0.0)

    return block(block(x, w1, b1, g1, be1, m1, v1), w2, b2, g2, be2, m2, v2)


if __name__ == "__main__":
    key = jax.random.PRNGKey(0)
    ks = jax.random.split(key, 13)

    N, CIN, COUT, H, W = 2, 128, 128, 16, 16
    CMID = (CIN + COUT) // 2

    x = jax.random.normal(ks[0], (N, CIN, H, W), jnp.float32)
    w1 = 0.05 * jax.random.normal(ks[1], (CMID, CIN, 3, 3), jnp.float32)
    b1 = 0.1 * jax.random.normal(ks[2], (CMID,), jnp.float32)
    g1 = 1.0 + 0.1 * jax.random.normal(ks[3], (CMID,), jnp.float32)
    be1 = 0.1 * jax.random.normal(ks[4], (CMID,), jnp.float32)
    m1 = 0.1 * jax.random.normal(ks[5], (CMID,), jnp.float32)
    v1 = jnp.abs(1.0 + 0.1 * jax.random.normal(ks[6], (CMID,), jnp.float32))
    w2 = 0.05 * jax.random.normal(ks[7], (COUT, CMID, 3, 3), jnp.float32)
    b2 = 0.1 * jax.random.normal(ks[8], (COUT,), jnp.float32)
    g2 = 1.0 + 0.1 * jax.random.normal(ks[9], (COUT,), jnp.float32)
    be2 = 0.1 * jax.random.normal(ks[10], (COUT,), jnp.float32)
    m2 = 0.1 * jax.random.normal(ks[11], (COUT,), jnp.float32)
    v2 = jnp.abs(1.0 + 0.1 * jax.random.normal(ks[12], (COUT,), jnp.float32))

    fwd = jax.jit(latent_forward)
    out = jax.block_until_ready(
        fwd(x, w1, b1, g1, be1, m1, v1, w2, b2, g2, be2, m2, v2))

    ref = _reference(x, w1, b1, g1, be1, m1, v1, w2, b2, g2, be2, m2, v2)
    assert out.shape == ref.shape, (out.shape, ref.shape)
    np.testing.assert_allclose(np.asarray(out), np.asarray(ref),
                               rtol=1e-2, atol=1e-2)

    print("KERNEL_OK")
</pallas_src>

<mosaic_0001>
module attributes {stable_mosaic.version = 11 : i64} {
  func.func @_latent_kernel(%arg0: i32, %arg1: memref<1x16x16x128xbf16, #tpu.memory_space<vmem>>, %arg2: memref<1152x128xbf16, #tpu.memory_space<vmem>>, %arg3: memref<1x128xf32, #tpu.memory_space<vmem>>, %arg4: memref<1x128xf32, #tpu.memory_space<vmem>>, %arg5: memref<1152x128xbf16, #tpu.memory_space<vmem>>, %arg6: memref<1x128xf32, #tpu.memory_space<vmem>>, %arg7: memref<1x128xf32, #tpu.memory_space<vmem>>, %arg8: memref<1x16x16x128xf32, #tpu.memory_space<vmem>>, %arg9: memref<18x18x128xf32, #tpu.memory_space<vmem>>, %arg10: memref<18x18x128xf32, #tpu.memory_space<vmem>>) attributes {dimension_semantics = [#tpu.dimension_semantics<parallel>], iteration_bounds = array<i64: 2>, scalar_prefetch = 0 : i64, scratch_operands = 2 : i64, tpu.core_type = #tpu.core_type<tc>, window_params = [{transform_indices = @transform_0, window_bounds = array<i64: 1, 16, 16, 128>}, {pipeline_mode = #tpu.pipeline_mode<synchronous>, transform_indices = @transform_1, window_bounds = array<i64: 1152, 128>}, {pipeline_mode = #tpu.pipeline_mode<synchronous>, transform_indices = @transform_2, window_bounds = array<i64: 1, 128>}, {pipeline_mode = #tpu.pipeline_mode<synchronous>, transform_indices = @transform_3, window_bounds = array<i64: 1, 128>}, {pipeline_mode = #tpu.pipeline_mode<synchronous>, transform_indices = @transform_4, window_bounds = array<i64: 1152, 128>}, {pipeline_mode = #tpu.pipeline_mode<synchronous>, transform_indices = @transform_5, window_bounds = array<i64: 1, 128>}, {pipeline_mode = #tpu.pipeline_mode<synchronous>, transform_indices = @transform_6, window_bounds = array<i64: 1, 128>}, {transform_indices = @transform_7, window_bounds = array<i64: 1, 16, 16, 128>}]} {
    %cst = arith.constant 0.000000e+00 : f32
    %0 = vector.broadcast %cst : f32 to vector<18x18x128xf32>
    %c0 = arith.constant 0 : index
    %c0_0 = arith.constant 0 : index
    %c0_1 = arith.constant 0 : index
    %1 = vector.load %arg9[%c0, %c0_0, %c0_1] : memref<18x18x128xf32, #tpu.memory_space<vmem>>, vector<18x18x128xf32>
    tpu.vector_store %arg9[%c0, %c0_0, %c0_1], %0 {strides = array<i32>} : memref<18x18x128xf32, #tpu.memory_space<vmem>>, vector<18x18x128xf32>,
    %c0_2 = arith.constant 0 : index
    %c0_3 = arith.constant 0 : index
    %c0_4 = arith.constant 0 : index
    %c0_5 = arith.constant 0 : index
    %2 = vector.load %arg1[%c0_2, %c0_3, %c0_4, %c0_5] : memref<1x16x16x128xbf16, #tpu.memory_space<vmem>>, vector<1x16x16x128xbf16>
    %3 = vector.shape_cast %2 : vector<1x16x16x128xbf16> to vector<16x16x128xbf16>
    %4 = arith.extf %3 : vector<16x16x128xbf16> to vector<16x16x128xf32>
    %c1 = arith.constant 1 : index
    %c1_6 = arith.constant 1 : index
    %c0_7 = arith.constant 0 : index
    %5 = vector.load %arg9[%c1, %c1_6, %c0_7] : memref<18x18x128xf32, #tpu.memory_space<vmem>>, vector<16x16x128xf32>
    tpu.vector_store %arg9[%c1, %c1_6, %c0_7], %4 {strides = array<i32>} : memref<18x18x128xf32, #tpu.memory_space<vmem>>, vector<16x16x128xf32>,
    %c0_8 = arith.constant 0 : index
    %c0_9 = arith.constant 0 : index
    %c0_10 = arith.constant 0 : index
    %6 = vector.load %arg9[%c0_8, %c0_9, %c0_10] : memref<18x18x128xf32, #tpu.memory_space<vmem>>, vector<16x16x128xf32>
    %7 = arith.truncf %6 : vector<16x16x128xf32> to vector<16x16x128xbf16>
    %c0_11 = arith.constant 0 : index
    %c1_12 = arith.constant 1 : index
    %c0_13 = arith.constant 0 : index
    %8 = vector.load %arg9[%c0_11, %c1_12, %c0_13] : memref<18x18x128xf32, #tpu.memory_space<vmem>>, vector<16x16x128xf32>
    %9 = arith.truncf %8 : vector<16x16x128xf32> to vector<16x16x128xbf16>
    %c0_14 = arith.constant 0 : index
    %c2 = arith.constant 2 : index
    %c0_15 = arith.constant 0 : index
    %10 = vector.load %arg9[%c0_14, %c2, %c0_15] : memref<18x18x128xf32, #tpu.memory_space<vmem>>, vector<16x16x128xf32>
    %11 = arith.truncf %10 : vector<16x16x128xf32> to vector<16x16x128xbf16>
    %c1_16 = arith.constant 1 : index
    %c0_17 = arith.constant 0 : index
    %c0_18 = arith.constant 0 : index
    %12 = vector.load %arg9[%c1_16, %c0_17, %c0_18] : memref<18x18x128xf32, #tpu.memory_space<vmem>>, vector<16x16x128xf32>
    %13 = arith.truncf %12 : vector<16x16x128xf32> to vector<16x16x128xbf16>
    %c1_19 = arith.constant 1 : index
    %c1_20 = arith.constant 1 : index
    %c0_21 = arith.constant 0 : index
    %14 = vector.load %arg9[%c1_19, %c1_20, %c0_21] : memref<18x18x128xf32, #tpu.memory_space<vmem>>, vector<16x16x128xf32>
    %15 = arith.truncf %14 : vector<16x16x128xf32> to vector<16x16x128xbf16>
    %c1_22 = arith.constant 1 : index
    %c2_23 = arith.constant 2 : index
    %c0_24 = arith.constant 0 : index
    %16 = vector.load %arg9[%c1_22, %c2_23, %c0_24] : memref<18x18x128xf32, #tpu.memory_space<vmem>>, vector<16x16x128xf32>
    %17 = arith.truncf %16 : vector<16x16x128xf32> to vector<16x16x128xbf16>
    %c2_25 = arith.constant 2 : index
    %c0_26 = arith.constant 0 : index
    %c0_27 = arith.constant 0 : index
    %18 = vector.load %arg9[%c2_25, %c0_26, %c0_27] : memref<18x18x128xf32, #tpu.memory_space<vmem>>, vector<16x16x128xf32>
    %19 = arith.truncf %18 : vector<16x16x128xf32> to vector<16x16x128xbf16>
    %c2_28 = arith.constant 2 : index
    %c1_29 = arith.constant 1 : index
    %c0_30 = arith.constant 0 : index
    %20 = vector.load %arg9[%c2_28, %c1_29, %c0_30] : memref<18x18x128xf32, #tpu.memory_space<vmem>>, vector<16x16x128xf32>
    %21 = arith.truncf %20 : vector<16x16x128xf32> to vector<16x16x128xbf16>
    %c2_31 = arith.constant 2 : index
    %c2_32 = arith.constant 2 : index
    %c0_33 = arith.constant 0 : index
    %22 = vector.load %arg9[%c2_31, %c2_32, %c0_33] : memref<18x18x128xf32, #tpu.memory_space<vmem>>, vector<16x16x128xf32>
    %23 = arith.truncf %22 : vector<16x16x128xf32> to vector<16x16x128xbf16>
    %24 = tpu.concatenate %7, %9, %11, %13, %15, %17, %19, %21, %23 in 2 : vector<16x16x128xbf16>, vector<16x16x128xbf16>, vector<16x16x128xbf16>, vector<16x16x128xbf16>, vector<16x16x128xbf16>, vector<16x16x128xbf16>, vector<16x16x128xbf16>, vector<16x16x128xbf16>, vector<16x16x128xbf16> -> vector<16x16x1152xbf16>
    %25 = vector.shape_cast %24 : vector<16x16x1152xbf16> to vector<256x1152xbf16>
    %c0_34 = arith.constant 0 : index
    %c0_35 = arith.constant 0 : index
    %26 = vector.load %arg2[%c0_34, %c0_35] : memref<1152x128xbf16, #tpu.memory_space<vmem>>, vector<1152x128xbf16>
    %cst_36 = arith.constant dense<0.000000e+00> : vector<256x128xf32>
    %27 = tpu.matmul %25, %26, %cst_36 {dimension_numbers = #tpu.dot_dimension_numbers<[1], [0], [0], [1], [0, 0, 1, 1], [], []>} : vector<256x1152xbf16>, vector<1152x128xbf16>, vector<256x128xf32> -> vector<256x128xf32>
    %c0_37 = arith.constant 0 : index
    %c0_38 = arith.constant 0 : index
    %28 = vector.load %arg3[%c0_37, %c0_38] : memref<1x128xf32, #tpu.memory_space<vmem>>, vector<1x128xf32>
    %29 = vector.broadcast %28 : vector<1x128xf32> to vector<256x128xf32>
    %30 = arith.mulf %27, %29 : vector<256x128xf32>
    %c0_39 = arith.constant 0 : index
    %c0_40 = arith.constant 0 : index
    %31 = vector.load %arg4[%c0_39, %c0_40] : memref<1x128xf32, #tpu.memory_space<vmem>>, vector<1x128xf32>
    %32 = vector.broadcast %31 : vector<1x128xf32> to vector<256x128xf32>
    %33 = arith.addf %30, %32 : vector<256x128xf32>
    %cst_41 = arith.constant 0.000000e+00 : f32
    %34 = vector.broadcast %cst_41 : f32 to vector<256x128xf32>
    %35 = arith.maximumf %33, %34 : vector<256x128xf32>
    %cst_42 = arith.constant 0.000000e+00 : f32
    %36 = vector.broadcast %cst_42 : f32 to vector<18x18x128xf32>
    %c0_43 = arith.constant 0 : index
    %c0_44 = arith.constant 0 : index
    %c0_45 = arith.constant 0 : index
    %37 = vector.load %arg10[%c0_43, %c0_44, %c0_45] : memref<18x18x128xf32, #tpu.memory_space<vmem>>, vector<18x18x128xf32>
    tpu.vector_store %arg10[%c0_43, %c0_44, %c0_45], %36 {strides = array<i32>} : memref<18x18x128xf32, #tpu.memory_space<vmem>>, vector<18x18x128xf32>,
    %38 = vector.shape_cast %35 : vector<256x128xf32> to vector<16x16x128xf32>
    %c1_46 = arith.constant 1 : index
    %c1_47 = arith.constant 1 : index
    %c0_48 = arith.constant 0 : index
    %39 = vector.load %arg10[%c1_46, %c1_47, %c0_48] : memref<18x18x128xf32, #tpu.memory_space<vmem>>, vector<16x16x128xf32>
    tpu.vector_store %arg10[%c1_46, %c1_47, %c0_48], %38 {strides = array<i32>} : memref<18x18x128xf32, #tpu.memory_space<vmem>>, vector<16x16x128xf32>,
    %c0_49 = arith.constant 0 : index
    %c0_50 = arith.constant 0 : index
    %c0_51 = arith.constant 0 : index
    %40 = vector.load %arg10[%c0_49, %c0_50, %c0_51] : memref<18x18x128xf32, #tpu.memory_space<vmem>>, vector<16x16x128xf32>
    %41 = arith.truncf %40 : vector<16x16x128xf32> to vector<16x16x128xbf16>
    %c0_52 = arith.constant 0 : index
    %c1_53 = arith.constant 1 : index
    %c0_54 = arith.constant 0 : index
    %42 = vector.load %arg10[%c0_52, %c1_53, %c0_54] : memref<18x18x128xf32, #tpu.memory_space<vmem>>, vector<16x16x128xf32>
    %43 = arith.truncf %42 : vector<16x16x128xf32> to vector<16x16x128xbf16>
    %c0_55 = arith.constant 0 : index
    %c2_56 = arith.constant 2 : index
    %c0_57 = arith.constant 0 : index
    %44 = vector.load %arg10[%c0_55, %c2_56, %c0_57] : memref<18x18x128xf32, #tpu.memory_space<vmem>>, vector<16x16x128xf32>
    %45 = arith.truncf %44 : vector<16x16x128xf32> to vector<16x16x128xbf16>
    %c1_58 = arith.constant 1 : index
    %c0_59 = arith.constant 0 : index
    %c0_60 = arith.constant 0 : index
    %46 = vector.load %arg10[%c1_58, %c0_59, %c0_60] : memref<18x18x128xf32, #tpu.memory_space<vmem>>, vector<16x16x128xf32>
    %47 = arith.truncf %46 : vector<16x16x128xf32> to vector<16x16x128xbf16>
    %c1_61 = arith.constant 1 : index
    %c1_62 = arith.constant 1 : index
    %c0_63 = arith.constant 0 : index
    %48 = vector.load %arg10[%c1_61, %c1_62, %c0_63] : memref<18x18x128xf32, #tpu.memory_space<vmem>>, vector<16x16x128xf32>
    %49 = arith.truncf %48 : vector<16x16x128xf32> to vector<16x16x128xbf16>
    %c1_64 = arith.constant 1 : index
    %c2_65 = arith.constant 2 : index
    %c0_66 = arith.constant 0 : index
    %50 = vector.load %arg10[%c1_64, %c2_65, %c0_66] : memref<18x18x128xf32, #tpu.memory_space<vmem>>, vector<16x16x128xf32>
    %51 = arith.truncf %50 : vector<16x16x128xf32> to vector<16x16x128xbf16>
    %c2_67 = arith.constant 2 : index
    %c0_68 = arith.constant 0 : index
    %c0_69 = arith.constant 0 : index
    %52 = vector.load %arg10[%c2_67, %c0_68, %c0_69] : memref<18x18x128xf32, #tpu.memory_space<vmem>>, vector<16x16x128xf32>
    %53 = arith.truncf %52 : vector<16x16x128xf32> to vector<16x16x128xbf16>
    %c2_70 = arith.constant 2 : index
    %c1_71 = arith.constant 1 : index
    %c0_72 = arith.constant 0 : index
    %54 = vector.load %arg10[%c2_70, %c1_71, %c0_72] : memref<18x18x128xf32, #tpu.memory_space<vmem>>, vector<16x16x128xf32>
    %55 = arith.truncf %54 : vector<16x16x128xf32> to vector<16x16x128xbf16>
    %c2_73 = arith.constant 2 : index
    %c2_74 = arith.constant 2 : index
    %c0_75 = arith.constant 0 : index
    %56 = vector.load %arg10[%c2_73, %c2_74, %c0_75] : memref<18x18x128xf32, #tpu.memory_space<vmem>>, vector<16x16x128xf32>
    %57 = arith.truncf %56 : vector<16x16x128xf32> to vector<16x16x128xbf16>
    %58 = tpu.concatenate %41, %43, %45, %47, %49, %51, %53, %55, %57 in 2 : vector<16x16x128xbf16>, vector<16x16x128xbf16>, vector<16x16x128xbf16>, vector<16x16x128xbf16>, vector<16x16x128xbf16>, vector<16x16x128xbf16>, vector<16x16x128xbf16>, vector<16x16x128xbf16>, vector<16x16x128xbf16> -> vector<16x16x1152xbf16>
    %59 = vector.shape_cast %58 : vector<16x16x1152xbf16> to vector<256x1152xbf16>
    %c0_76 = arith.constant 0 : index
    %c0_77 = arith.constant 0 : index
    %60 = vector.load %arg5[%c0_76, %c0_77] : memref<1152x128xbf16, #tpu.memory_space<vmem>>, vector<1152x128xbf16>
    %cst_78 = arith.constant dense<0.000000e+00> : vector<256x128xf32>
    %61 = tpu.matmul %59, %60, %cst_78 {dimension_numbers = #tpu.dot_dimension_numbers<[1], [0], [0], [1], [0, 0, 1, 1], [], []>} : vector<256x1152xbf16>, vector<1152x128xbf16>, vector<256x128xf32> -> vector<256x128xf32>
    %c0_79 = arith.constant 0 : index
    %c0_80 = arith.constant 0 : index
    %62 = vector.load %arg6[%c0_79, %c0_80] : memref<1x128xf32, #tpu.memory_space<vmem>>, vector<1x128xf32>
    %63 = vector.broadcast %62 : vector<1x128xf32> to vector<256x128xf32>
    %64 = arith.mulf %61, %63 : vector<256x128xf32>
    %c0_81 = arith.constant 0 : index
    %c0_82 = arith.constant 0 : index
    %65 = vector.load %arg7[%c0_81, %c0_82] : memref<1x128xf32, #tpu.memory_space<vmem>>, vector<1x128xf32>
    %66 = vector.broadcast %65 : vector<1x128xf32> to vector<256x128xf32>
    %67 = arith.addf %64, %66 : vector<256x128xf32>
    %cst_83 = arith.constant 0.000000e+00 : f32
    %68 = vector.broadcast %cst_83 : f32 to vector<256x128xf32>
    %69 = arith.maximumf %67, %68 : vector<256x128xf32>
    %70 = vector.shape_cast %69 : vector<256x128xf32> to vector<16x16x128xf32>
    %c0_84 = arith.constant 0 : index
    %c0_85 = arith.constant 0 : index
    %c0_86 = arith.constant 0 : index
    %c0_87 = arith.constant 0 : index
    %71 = vector.load %arg8[%c0_84, %c0_85, %c0_86, %c0_87] : memref<1x16x16x128xf32, #tpu.memory_space<vmem>>, vector<1x16x16x128xf32>
    %72 = vector.shape_cast %71 : vector<1x16x16x128xf32> to vector<16x16x128xf32>
    %73 = vector.shape_cast %70 : vector<16x16x128xf32> to vector<1x16x16x128xf32>
    tpu.vector_store %arg8[%c0_84, %c0_85, %c0_86, %c0_87], %73 {strides = array<i32>} : memref<1x16x16x128xf32, #tpu.memory_space<vmem>>, vector<1x16x16x128xf32>,
    return
  }
  func.func @transform_0(%arg0: i32) -> (i32, i32, i32, i32) {
    %c0_i32 = arith.constant 0 : i32
    %c0_i32_0 = arith.constant 0 : i32
    %c0_i32_1 = arith.constant 0 : i32
    %c0_i32_2 = arith.constant 0 : i32
    return %arg0, %c0_i32, %c0_i32_0, %c0_i32_1 : i32, i32, i32, i32
  }
  func.func @transform_1(%arg0: i32) -> (i32, i32) {
    %c0_i32 = arith.constant 0 : i32
    %c0_i32_0 = arith.constant 0 : i32
    %c0_i32_1 = arith.constant 0 : i32
    return %c0_i32, %c0_i32_0 : i32, i32
  }
  func.func @transform_2(%arg0: i32) -> (i32, i32) {
    %c0_i32 = arith.constant 0 : i32
    %c0_i32_0 = arith.constant 0 : i32
    %c0_i32_1 = arith.constant 0 : i32
    return %c0_i32, %c0_i32_0 : i32, i32
  }
  func.func @transform_3(%arg0: i32) -> (i32, i32) {
    %c0_i32 = arith.constant 0 : i32
    %c0_i32_0 = arith.constant 0 : i32
    %c0_i32_1 = arith.constant 0 : i32
    return %c0_i32, %c0_i32_0 : i32, i32
  }
  func.func @transform_4(%arg0: i32) -> (i32, i32) {
    %c0_i32 = arith.constant 0 : i32
    %c0_i32_0 = arith.constant 0 : i32
    %c0_i32_1 = arith.constant 0 : i32
    return %c0_i32, %c0_i32_0 : i32, i32
  }
  func.func @transform_5(%arg0: i32) -> (i32, i32) {
    %c0_i32 = arith.constant 0 : i32
    %c0_i32_0 = arith.constant 0 : i32
    %c0_i32_1 = arith.constant 0 : i32
    return %c0_i32, %c0_i32_0 : i32, i32
  }
  func.func @transform_6(%arg0: i32) -> (i32, i32) {
    %c0_i32 = arith.constant 0 : i32
    %c0_i32_0 = arith.constant 0 : i32
    %c0_i32_1 = arith.constant 0 : i32
    return %c0_i32, %c0_i32_0 : i32, i32
  }
  func.func @transform_7(%arg0: i32) -> (i32, i32, i32, i32) {
    %c0_i32 = arith.constant 0 : i32
    %c0_i32_0 = arith.constant 0 : i32
    %c0_i32_1 = arith.constant 0 : i32
    %c0_i32_2 = arith.constant 0 : i32
    return %arg0, %c0_i32, %c0_i32_0, %c0_i32_1 : i32, i32, i32, i32
  }
}

</mosaic_0001>

<bundles_post_ra>
// kernel: latent_forward.1
= control target key start
LH: loop header
LB: loop body
LE: loop exit
PB: predicated region body
PF: predicated region fallthrough
CT: control target
= control target key end

     0   :  { %12 = vsyncpa [#allocation5], 0  ;;  %s9771_s0 = inlined_call_operand.vmem [shape: bf16[2,16,16,128], index: 0, kind: input, shape index: {}]   ;;  %s9772_s1 = inlined_call_operand.vmem [shape: bf16[1152,128], index: 1, kind: input, shape index: {}]   ;;  %s9773_s2 = inlined_call_operand.vmem [shape: f32[1,128], index: 2, kind: input, shape index: {}]   ;;  %s9774_s3 = inlined_call_operand.vmem [shape: f32[1,128], index: 3, kind: input, shape index: {}]   ;;  %s9775_s4 = inlined_call_operand.vmem [shape: bf16[1152,128], index: 4, kind: input, shape index: {}]   ;;  %s9776_s5 = inlined_call_operand.vmem [shape: f32[1,128], index: 5, kind: input, shape index: {}]   ;;  %s9777_s6 = inlined_call_operand.vmem [shape: f32[1,128], index: 6, kind: input, shape index: {}]   ;;  %s9778_s7 = inlined_call_operand.hbm [shape: f32[2,16,16,128], index: 7, kind: output, shape index: {}]  }
   0x1   :  { %14 = vsyncpa [#allocation5 + $0x1], 0  ;;  %s7456_s24 = smov 0   ;;  %s7458_s25 = smov 0  }
   0x2   :  { %s7460_s26 = smov 0   ;;  %s7462_s27 = smov 0  }
   0x3 LB: > { %s7477_s28 = sadd.s32 4294967295, %s7410_s27   ;;  %s6469_s29 = sadd.s32 4294967294, %s7410_s27   ;;  %s7410_s27 = sphi %s7462_s27, %s9842_s27   ;;  %s7406_s26 = sphi %s7460_s26, %s9841_s26   ;;  %s7402_s25 = sphi %s7458_s25, %s9840_s25   ;;  %s7398_s24 = sphi %s7456_s24, %s9839_s24  }
   0x4   : > { %s7481_s30 = sadd.s32 1, %s7410_s27   ;;  %s179_s8 = sadd.s32 1, %s7406_s26 }
   0x5   : > { %s176_s9 = ssub.s32 %s7410_s27, %s7481_s30  ;;  %p189_p0 = scmp.ne.s32.totalorder %s7406_s26, %s7402_s25 }
   0x6   : > { %p177_p1 = scmp.eq.s32.totalorder %s176_s9, 0  ;;  %p190_p2 = scmp.eq.s32.totalorder %s7477_s28, 1 }
   0x7   : > { %p195_p3 = scmp.ne.s32.totalorder %s7402_s25, %s7398_s24  ;;  %p196_p4 = scmp.eq.s32.totalorder %s6469_s29, 1 }
   0x8   : > { %s7492_s10 = scalar_select %p177_p1, %s7406_s26, %s179_s8  }
   0x9   : > { %p7494_p5 = por %p190_p2, %p189_p0  ;;  %p7498_p6 = por %p196_p4, %p195_p3 }
   0xa   : > { %p6472_p7 = scmp.ge.s32.totalorder %s7410_s27, 1  ;;  %p240_p8 = scmp.lt.s32.totalorder %s7410_s27, 3 }
   0xc   : > { %p241_p9 = pnand %p6472_p7, %p240_p8 }
   0xe   : > { %244 = sbr.rel (%p241_p9) target bundleno = 1575 (0x627), region = 48 }
  0x13   : > { %v7065_v0 = vld [vmem:[%s9772_s1 + $0x38] sm:$0xff]  ;;  %v7412_v2 = vmov 0.0   ;;  %v7064_v3 = vld [vmem:[%s9772_s1 + $0x30] sm:$0xff]  ;;  %v7063_v5 = vld [vmem:[%s9772_s1 + $0x28] sm:$0xff]  ;;  %v7413_v15 = vmov 0.0|0.0   ;;  %p272_p10 = scmp.lt.s32.totalorder %s7477_s28, 1 }
  0x14   : > { %v7073_v1 = vld [vmem:[%s9772_s1 + $0x78] sm:$0xff]  ;;  %277 = vst [vmem:[#allocation2] sm:$0xff] %v7412_v2  ;;  %2445 = vmatpush.bf16.msra.mxu0 %v7065_v0  ;;  %7282 = vmatpush.bf16.msra.mxu2 %v7065_v0  ;;  %v7072_v4 = vld [vmem:[%s9772_s1 + $0x70] sm:$0xff]  ;;  %v7071_v6 = vld [vmem:[%s9772_s1 + $0x68] sm:$0xff]  ;;  %v1037_v16 = vunpack.c.l.b16 %v7413_v15  ;;  %s269_s16 = sand.u32 1, %s7402_s25   ;;  %s7202_s20 = sshll.u32 %s7477_s28, 8 }
  0x15   : > { %278 = vst [vmem:[#allocation2 + $0x8] sm:$0xff] %v7412_v2  ;;  %7290 = vmatpush.bf16.msra.mxu3 %v7073_v1  ;;  %2534 = vmatpush.bf16.msra.mxu1 %v7073_v1  ;;  %v7062_v7 = vld [vmem:[%s9772_s1 + $0x20] sm:$0xff]  ;;  %v7061_v9 = vld [vmem:[%s9772_s1 + $0x18] sm:$0xff]  ;;  %v7060_v11 = vld [vmem:[%s9772_s1 + $0x10] sm:$0xff]  ;;  %s273_s17 = scalar_select %p272_p10, %s7477_s28, 1 }
  0x16   : > { %279 = vst [vmem:[#allocation2 + $0x10] sm:$0x3] %v7412_v2  ;;  %v7070_v8 = vld [vmem:[%s9772_s1 + $0x60] sm:$0xff]  ;;  %v7069_v10 = vld [vmem:[%s9772_s1 + $0x58] sm:$0xff]  ;;  %v7068_v12 = vld [vmem:[%s9772_s1 + $0x50] sm:$0xff]  ;;  %v1069_v19 = vpack.c.b16 %v1037_v16, %v1037_v16  ;;  %s6403_s29 = scalar_lea.hbm %s9778_s7, %s7202_s20  ;;  %s6392_s28 = scalar_lea.sflag [#allocation5], %s269_s16 }
  0x17   : > { %280 = vst [vmem:[#allocation2 + $0x18] sm:$0xff] %v7412_v2  ;;  %v7059_v13 = vld [vmem:[%s9772_s1 + $0x8] sm:$0xff]  ;;  %v7058_v17 = vld [vmem:[%s9772_s1] sm:$0xff]  ;;  %s7057_s18 = sshll.u32 %s273_s17, 7  ;;  %v7081_v34 = vld [vmem:[%s9772_s1 + $0xb8] sm:$0xff]  ;;  %s6406_s9 = sshll.u32 %s6403_s29, 4  ;;  %s6407_s9 = int_to_ptr.hbm [resolvable:$true] %s6406_s9 }
  0x18   : > { %281 = vst [vmem:[#allocation2 + $0x20] sm:$0xff] %v7412_v2  ;;  %2446 = vmatpush.bf16.msra.mxu0 %v7064_v3  ;;  %7283 = vmatpush.bf16.msra.mxu2 %v7064_v3  ;;  %v7067_v14 = vld [vmem:[%s9772_s1 + $0x48] sm:$0xff]  ;;  %v7066_v18 = vld [vmem:[%s9772_s1 + $0x40] sm:$0xff]  ;;  %s7635_s21 = scalar_lea.vmem %s9771_s0, %s7057_s18  ;;  %v7089_v36 = vld [vmem:[%s9772_s1 + $0xf8] sm:$0xff]  ;;  %s6473_s18 = sshll.u32 %s269_s16, 8 }
  0x19   : > { %282 = vst [vmem:[#allocation2 + $0x28] sm:$0x3] %v7412_v2  ;;  %7291 = vmatpush.bf16.msra.mxu3 %v7072_v4  ;;  %2535 = vmatpush.bf16.msra.mxu1 %v7072_v4  ;;  %v7273_v20 = vld [vmem:[%s7635_s21 + $0x38] sm:$0xff]   ;;  %v7274_v38 = vld [vmem:[%s7635_s21 + $0x40] sm:$0xff]   ;;  %v7267_v53 = vld [vmem:[%s7635_s21 + $0x8] sm:$0xff]   ;;  %s9604_s19 = scalar_lea.vmem [#allocation4], %s6473_s18 }
  0x1a   : > { %283 = vst [vmem:[#allocation2 + $0x30] sm:$0xff] %v7412_v2  ;;  %v7644_v21 = vunpack.c.l.bf16 %v7273_v20  ;;  %v7646_v22 = vunpack.c.h.bf16 %v7273_v20  ;;  %v7097_v37 = vld [vmem:[%s9772_s1 + $0x138] sm:$0xff]  ;;  %v7204_v39 = vld [vmem:[%s7635_s21] sm:$0xff]   ;;  %v7237_v40 = vunpack.c.l.bf16 %v7274_v38  ;;  %v7238_v41 = vunpack.c.h.bf16 %v7274_v38  ;;  %v7080_v54 = vld [vmem:[%s9772_s1 + $0xb0] sm:$0xff]  ;;  %s6404_s8 = sshll.u32 %s9604_s19, 4  ;;  %s7362_s13 = sshra.s32 %s6407_s9, 4  ;;  %s6405_s8 = int_to_ptr.vmem [resolvable:$true] %s6404_s8  ;;  %s7363_s13 = int_to_ptr.hbm [resolvable:$true] %s7362_s13 }
  0x1b   : > { %284 = vst [vmem:[#allocation2 + $0x38] sm:$0xff] %v7412_v2  ;;  %v7205_v42 = vunpack.c.l.bf16 %v7204_v39  ;;  %v7206_v43 = vunpack.c.h.bf16 %v7204_v39  ;;  %v7088_v56 = vld [vmem:[%s9772_s1 + $0xf0] sm:$0xff]  ;;  %v7275_v58 = vld [vmem:[%s7635_s21 + $0x48] sm:$0xff]   ;;  %v7209_v59 = vunpack.c.l.bf16 %v7267_v53  ;;  %v7210_v60 = vunpack.c.h.bf16 %v7267_v53  ;;  %s7364_s14 = scalar_lea.hbm %s7363_s13, 256  ;;  %p7369_p0 = scmp.lt.s32.totalorder %s7363_s13, %s9778_s7 }
  0x1c   : > { %285 = vst [vmem:[#allocation2 + $0x40] sm:$0x3] %v7412_v2  ;;  %2447 = vmatpush.bf16.msra.mxu0 %v7063_v5  ;;  %7284 = vmatpush.bf16.msra.mxu2 %v7063_v5  ;;  %v540_v23 = vpack.c.bf16 %v7644_v21, %v7644_v21  ;;  %v541_v24 = vpack.c.bf16 %v7646_v22, %v7646_v22  ;;  %v492_v25 = vld [vmem:[#allocation2 + $0x1] sm:$0xff]  ;;  %v7096_v57 = vld [vmem:[%s9772_s1 + $0x130] sm:$0xff]  ;;  %v7241_v61 = vunpack.c.l.bf16 %v7275_v58  ;;  %v7242_v62 = vunpack.c.h.bf16 %v7275_v58  ;;  %p7365_p11 = scmp.ne.s32.totalorder %s7363_s13, %s7364_s14 }
  0x1d   : > { %286 = vst [vmem:[#allocation2 + $0x48] sm:$0xff] %v7412_v2  ;;  %7292 = vmatpush.bf16.msra.mxu3 %v7071_v6  ;;  %2536 = vmatpush.bf16.msra.mxu1 %v7071_v6  ;;  %v493_v26 = vld [vmem:[#allocation2 + $0x9] sm:$0xff]  ;;  %v524_v29 = vpack.c.bf16 %v492_v25, %v492_v25  ;;  %v542_v44 = vpack.c.bf16 %v7237_v40, %v7237_v40  ;;  %v7078_v58 = vld [vmem:[%s9772_s1 + $0xa0] sm:$0xff] }
  0x1e   : > { %287 = vst [vmem:[#allocation2 + $0x50] sm:$0xff] %v7412_v2  ;;  %v1149_v27 = vunpack.c.l.b16 %v540_v23  ;;  %v1150_v28 = vunpack.c.l.b16 %v541_v24  ;;  %v525_v30 = vpack.c.bf16 %v493_v26, %v493_v26  ;;  %v543_v45 = vpack.c.bf16 %v7238_v41, %v7238_v41  ;;  %v7079_v24 = vld [vmem:[%s9772_s1 + $0xa8] sm:$0xff]  ;;  %p7366_p12 = pnand %p7365_p11, %p7494_p5 }
  0x1f   : > { %288 = vst [vmem:[#allocation2 + $0x58] sm:$0x3] %v7412_v2  ;;  %v1133_v32 = vunpack.c.l.b16 %v524_v29  ;;  %v1151_v46 = vunpack.c.l.b16 %v542_v44  ;;  %v526_v48 = vpack.c.bf16 %v7205_v42, %v7205_v42  ;;  %v527_v49 = vpack.c.bf16 %v7206_v43, %v7206_v43  ;;  %v7087_v25 = vld [vmem:[%s9772_s1 + $0xe8] sm:$0xff] }
  0x20   : > { %289 = vst [vmem:[#allocation2 + $0x60] sm:$0xff] %v7412_v2  ;;  %2448 = vmatpush.bf16.msra.mxu0 %v7062_v7  ;;  %7285 = vmatpush.bf16.msra.mxu2 %v7062_v7  ;;  %v1173_v31 = vpack.c.b16 %v1150_v28, %v1149_v27  ;;  %v1134_v33 = vunpack.c.l.b16 %v525_v30  ;;  %v1152_v47 = vunpack.c.l.b16 %v543_v45  ;;  %v544_v4 = vpack.c.bf16 %v7241_v61, %v7241_v61  ;;  %v7095_v30 = vld [vmem:[%s9772_s1 + $0x128] sm:$0xff]  ;;  %p7367_p13 = pneg %p7366_p12 }
  0x21   : > { %290 = vst [vmem:[#allocation2 + $0x68] sm:$0xff] %v7412_v2  ;;  %7293 = vmatpush.bf16.msra.mxu3 %v7070_v8  ;;  %2537 = vmatpush.bf16.msra.mxu1 %v7070_v8  ;;  %v1135_v51 = vunpack.c.l.b16 %v526_v48  ;;  %v1136_v52 = vunpack.c.l.b16 %v527_v49  ;;  %v545_v5 = vpack.c.bf16 %v7242_v62, %v7242_v62  ;;  %v529_v15 = vpack.c.bf16 %v7210_v60, %v7210_v60 }
  0x22   : > { %291 = vst [vmem:[#allocation2 + $0x70] sm:$0x3] %v7412_v2  ;;  %v1165_v35 = vpack.c.b16 %v1134_v33, %v1133_v32  ;;  %v1174_v50 = vpack.c.b16 %v1152_v47, %v1151_v46 }
  0x23   : > { %292 = vst [vmem:[#allocation2 + $0x78] sm:$0xff] %v7412_v2  ;;  %v7691_v55 = vpack.c.b16 %v1136_v52, %v1135_v51  ;;  %v1138_v20 = vunpack.c.l.b16 %v529_v15 }
  0x24   : > { %293 = vst [vmem:[#allocation2 + $0x80] sm:$0xff] %v7412_v2  ;;  %2449 = vmatpush.bf16.msra.mxu0 %v7061_v9  ;;  %7286 = vmatpush.bf16.msra.mxu2 %v7061_v9 }
  0x25   : > { %294 = vst [vmem:[#allocation2 + $0x88] sm:$0x3] %v7412_v2  ;;  %7294 = vmatpush.bf16.msra.mxu3 %v7069_v10  ;;  %2538 = vmatpush.bf16.msra.mxu1 %v7069_v10 }
  0x26   : > { %295 = vst [vmem:[#allocation2 + $0x90] sm:$0xff] %v7412_v2 }
  0x27   : > { %296 = vst [vmem:[#allocation2 + $0x98] sm:$0xff] %v7412_v2 }
  0x28   : > { %297 = vst [vmem:[#allocation2 + $0xa0] sm:$0x3] %v7412_v2  ;;  %2450 = vmatpush.bf16.msra.mxu0 %v7060_v11  ;;  %7287 = vmatpush.bf16.msra.mxu2 %v7060_v11  ;;  %v1153_v11 = vunpack.c.l.b16 %v544_v4 }
  0x29   : > { %298 = vst [vmem:[#allocation2 + $0xa8] sm:$0xff] %v7412_v2  ;;  %7295 = vmatpush.bf16.msra.mxu3 %v7068_v12  ;;  %2539 = vmatpush.bf16.msra.mxu1 %v7068_v12  ;;  %v1154_v12 = vunpack.c.l.b16 %v545_v5 }
  0x2a   : > { %299 = vst [vmem:[#allocation2 + $0xb0] sm:$0xff] %v7412_v2 }
  0x2b   : > { %300 = vst [vmem:[#allocation2 + $0xb8] sm:$0x3] %v7412_v2 }
  0x2c   : > { %301 = vst [vmem:[#allocation2 + $0xc0] sm:$0xff] %v7412_v2  ;;  %2451 = vmatpush.bf16.msra.mxu0 %v7059_v13  ;;  %7288 = vmatpush.bf16.msra.mxu2 %v7059_v13 }
  0x2d   : > { %302 = vst [vmem:[#allocation2 + $0xc8] sm:$0xff] %v7412_v2  ;;  %7296 = vmatpush.bf16.msra.mxu3 %v7067_v14  ;;  %2540 = vmatpush.bf16.msra.mxu1 %v7067_v14  ;;  %v528_v14 = vpack.c.bf16 %v7209_v59, %v7209_v59 }
  0x2e   : > { %303 = vst [vmem:[#allocation2 + $0xd0] sm:$0x3] %v7412_v2 }
  0x2f   : > { %304 = vst [vmem:[#allocation2 + $0xd8] sm:$0xff] %v7412_v2 }
  0x30   : > { %305 = vst [vmem:[#allocation2 + $0xe0] sm:$0xff] %v7412_v2  ;;  %2452 = vmatpush.bf16.msra.mxu0 %v7058_v17  ;;  %7289 = vmatpush.bf16.msra.mxu2 %v7058_v17 }
  0x31   : > { %306 = vst [vmem:[#allocation2 + $0xe8] sm:$0x3] %v7412_v2  ;;  %7297 = vmatpush.bf16.msra.mxu3 %v7066_v18  ;;  %2541 = vmatpush.bf16.msra.mxu1 %v7066_v18  ;;  %v1175_v18 = vpack.c.b16 %v1154_v12, %v1153_v11 }
  0x32   : > { %307 = vst [vmem:[#allocation2 + $0xf0] sm:$0xff] %v7412_v2 }
  0x33   : > { %308 = vst [vmem:[#allocation2 + $0xf8] sm:$0xff] %v7412_v2  ;;  %2453 = vmatmul.bf16.vlgmr.msra.gmra.mxu0 %v1069_v19  ;;  %v1137_v19 = vunpack.c.l.b16 %v528_v14 }
  0x34   : > { %309 = vst [vmem:[#allocation2 + $0x100] sm:$0x3] %v7412_v2  ;;  %2582 = vmatmul.bf16.vlgmr.msra.gmra.mxu3 %v1173_v31  ;;  %2623 = vmatpush.bf16.msrb.mxu2 %v7081_v34 }
  0x35   : > { %310 = vst [vmem:[#allocation2 + $0x108] sm:$0xff] %v7412_v2  ;;  %2542 = vmatmul.bf16.vlgmr.msra.gmra.mxu1 %v1165_v35  ;;  %2712 = vmatpush.bf16.msrb.mxu3 %v7089_v36  ;;  %v7713_v29 = vpack.c.b16 %v1138_v20, %v1137_v19 }
  0x36   : > { %311 = vst [vmem:[#allocation2 + $0x110] sm:$0xff] %v7412_v2  ;;  %2801 = vmatpush.bf16.msrb.mxu0 %v7097_v37 }
  0x37   : > { %312 = vst [vmem:[#allocation2 + $0x118] sm:$0x3] %v7412_v2 }
  0x38   : > { %313 = vst [vmem:[#allocation2 + $0x120] sm:$0xff] %v7412_v2  ;;  %2624 = vmatpush.bf16.msrb.mxu2 %v7080_v54 }
  0x39   : > { %314 = vst [vmem:[#allocation2 + $0x128] sm:$0xff] %v7412_v2  ;;  %2713 = vmatpush.bf16.msrb.mxu3 %v7088_v56  ;;  %v7269_v56 = vld [vmem:[%s7635_s21 + $0x18] sm:$0xff]  }
  0x3a   : > { %315 = vst [vmem:[#allocation2 + $0x130] sm:$0x3] %v7412_v2  ;;  %2802 = vmatpush.bf16.msrb.mxu0 %v7096_v57  ;;  %v7277_v57 = vld [vmem:[%s7635_s21 + $0x58] sm:$0xff]  }
  0x3b   : > { %316 = vst [vmem:[#allocation2 + $0x138] sm:$0xff] %v7412_v2 }
  0x3c   : > { %317 = vst [vmem:[#allocation2 + $0x140] sm:$0xff] %v7412_v2  ;;  %2625 = vmatpush.bf16.msrb.mxu2 %v7079_v24 }
  0x3d   : > { %318 = vst [vmem:[#allocation2 + $0x148] sm:$0x3] %v7412_v2  ;;  %2714 = vmatpush.bf16.msrb.mxu3 %v7087_v25 }
  0x3e   : > { %319 = vst [vmem:[#allocation2 + $0x150] sm:$0xff] %v7412_v2  ;;  %2803 = vmatpush.bf16.msrb.mxu0 %v7095_v30  ;;  %v7085_v30 = vld [vmem:[%s9772_s1 + $0xd8] sm:$0xff] }
  0x3f   : > { %320 = vst [vmem:[#allocation2 + $0x158] sm:$0xff] %v7412_v2 }
  0x40   : > { %321 = vst [vmem:[#allocation2 + $0x160] sm:$0x3] %v7412_v2  ;;  %2626 = vmatpush.bf16.msrb.mxu2 %v7078_v58 }
  0x41   : > { %322 = vst [vmem:[#allocation2 + $0x168] sm:$0xff] %v7412_v2 }
  0x42   : > { %323 = vst [vmem:[#allocation2 + $0x170] sm:$0xff] %v7412_v2 }
  0x43   : > { %324 = vst [vmem:[#allocation2 + $0x178] sm:$0x3] %v7412_v2 }
  0x44   : > { %325 = vst [vmem:[#allocation2 + $0x180] sm:$0xff] %v7412_v2  ;;  %2587 = vmatmul.bf16.gmra.mxu3 %v1174_v50 }
  0x45   : > { %326 = vst [vmem:[#allocation2 + $0x188] sm:$0xff] %v7412_v2  ;;  %2547 = vmatmul.bf16.gmra.mxu1 %v7691_v55 }
  0x46   : > { %327 = vst [vmem:[#allocation2 + $0x190] sm:$0x3] %v7412_v2 }
  0x47   : > { %328 = vst [vmem:[#allocation2 + $0x198] sm:$0xff] %v7412_v2 }
  0x48   : > { %329 = vst [vmem:[#allocation2 + $0x1a0] sm:$0xff] %v7412_v2 }
  0x49   : > { %330 = vst [vmem:[#allocation2 + $0x1a8] sm:$0x3] %v7412_v2 }
  0x4a   : > { %3350 = vst [vmem:[#allocation3] sm:$0xff] %v7412_v2 }
  0x4b   : > { %3351 = vst [vmem:[#allocation3 + $0x8] sm:$0xff] %v7412_v2 }
  0x4c   : > { %3352 = vst [vmem:[#allocation3 + $0x10] sm:$0x3] %v7412_v2 }
  0x4d   : > { %3353 = vst [vmem:[#allocation3 + $0x18] sm:$0xff] %v7412_v2 }
  0x4e   : > { %3354 = vst [vmem:[#allocation3 + $0x20] sm:$0xff] %v7412_v2 }
  0x4f   : > { %3355 = vst [vmem:[#allocation3 + $0x28] sm:$0x3] %v7412_v2 }
  0x50   : > { %3356 = vst [vmem:[#allocation3 + $0x30] sm:$0xff] %v7412_v2 }
  0x51   : > { %3357 = vst [vmem:[#allocation3 + $0x38] sm:$0xff] %v7412_v2 }
  0x52   : > { %3358 = vst [vmem:[#allocation3 + $0x40] sm:$0x3] %v7412_v2 }
  0x53   : > { %3359 = vst [vmem:[#allocation3 + $0x48] sm:$0xff] %v7412_v2 }
  0x54   : > { %3360 = vst [vmem:[#allocation3 + $0x50] sm:$0xff] %v7412_v2  ;;  %2592 = vmatmul.bf16.gmra.mxu3 %v1175_v18 }
  0x55   : > { %3361 = vst [vmem:[#allocation3 + $0x58] sm:$0x3] %v7412_v2  ;;  %2552 = vmatmul.bf16.gmra.mxu1 %v7713_v29 }
  0x56   : > { %3362 = vst [vmem:[#allocation3 + $0x60] sm:$0xff] %v7412_v2 }
  0x57   : > { %3363 = vst [vmem:[#allocation3 + $0x68] sm:$0xff] %v7412_v2 }
  0x58   : > { %3364 = vst [vmem:[#allocation3 + $0x70] sm:$0x3] %v7412_v2 }
  0x59   : > { %3365 = vst [vmem:[#allocation3 + $0x78] sm:$0xff] %v7412_v2 }
  0x5a   : > { %3366 = vst [vmem:[#allocation3 + $0x80] sm:$0xff] %v7412_v2 }
  0x5b   : > { %3367 = vst [vmem:[#allocation3 + $0x88] sm:$0x3] %v7412_v2 }
  0x5c   : > { %3368 = vst [vmem:[#allocation3 + $0x90] sm:$0xff] %v7412_v2 }
  0x5d   : > { %3369 = vst [vmem:[#allocation3 + $0x98] sm:$0xff] %v7412_v2 }
  0x5e   : > { %3370 = vst [vmem:[#allocation3 + $0xa0] sm:$0x3] %v7412_v2 }
  0x5f   : > { %3371 = vst [vmem:[#allocation3 + $0xa8] sm:$0xff] %v7412_v2 }
  0x60   : > { %3372 = vst [vmem:[#allocation3 + $0xb0] sm:$0xff] %v7412_v2 }
  0x61   : > { %3373 = vst [vmem:[#allocation3 + $0xb8] sm:$0x3] %v7412_v2 }
  0x62   : > { %3374 = vst [vmem:[#allocation3 + $0xc0] sm:$0xff] %v7412_v2 }
  0x63   : > { %3375 = vst [vmem:[#allocation3 + $0xc8] sm:$0xff] %v7412_v2 }
  0x64   : > { %3376 = vst [vmem:[#allocation3 + $0xd0] sm:$0x3] %v7412_v2 }
  0x65   : > { %3377 = vst [vmem:[#allocation3 + $0xd8] sm:$0xff] %v7412_v2 }
  0x66   : > { %3378 = vst [vmem:[#allocation3 + $0xe0] sm:$0xff] %v7412_v2 }
  0x67   : > { %3379 = vst [vmem:[#allocation3 + $0xe8] sm:$0x3] %v7412_v2 }
  0x68   : > { %3380 = vst [vmem:[#allocation3 + $0xf0] sm:$0xff] %v7412_v2 }
  0x69   : > { %3381 = vst [vmem:[#allocation3 + $0xf8] sm:$0xff] %v7412_v2 }
  0x6a   : > { %3382 = vst [vmem:[#allocation3 + $0x100] sm:$0x3] %v7412_v2 }
  0x6b   : > { %3383 = vst [vmem:[#allocation3 + $0x108] sm:$0xff] %v7412_v2 }
  0x6c   : > { %3384 = vst [vmem:[#allocation3 + $0x110] sm:$0xff] %v7412_v2 }
  0x6d   : > { %3385 = vst [vmem:[#allocation3 + $0x118] sm:$0x3] %v7412_v2 }
  0x6e   : > { %3386 = vst [vmem:[#allocation3 + $0x120] sm:$0xff] %v7412_v2 }
  0x6f   : > { %3387 = vst [vmem:[#allocation3 + $0x128] sm:$0xff] %v7412_v2 }
  0x70   : > { %3388 = vst [vmem:[#allocation3 + $0x130] sm:$0x3] %v7412_v2 }
  0x71   : > { %3389 = vst [vmem:[#allocation3 + $0x138] sm:$0xff] %v7412_v2 }
  0x72   : > { %3390 = vst [vmem:[#allocation3 + $0x140] sm:$0xff] %v7412_v2 }
  0x73   : > { %3391 = vst [vmem:[#allocation3 + $0x148] sm:$0x3] %v7412_v2 }
  0x74   : > { %3392 = vst [vmem:[#allocation3 + $0x150] sm:$0xff] %v7412_v2 }
  0x75   : > { %3393 = vst [vmem:[#allocation3 + $0x158] sm:$0xff] %v7412_v2 }
  0x76   : > { %3394 = vst [vmem:[#allocation3 + $0x160] sm:$0x3] %v7412_v2 }
  0x77   : > { %3395 = vst [vmem:[#allocation3 + $0x168] sm:$0xff] %v7412_v2 }
  0x78   : > { %3396 = vst [vmem:[#allocation3 + $0x170] sm:$0xff] %v7412_v2 }
  0x79   : > { %3397 = vst [vmem:[#allocation3 + $0x178] sm:$0x3] %v7412_v2 }
  0x7a   : > { %3398 = vst [vmem:[#allocation3 + $0x180] sm:$0xff] %v7412_v2 }
  0x7b   : > { %3399 = vst [vmem:[#allocation3 + $0x188] sm:$0xff] %v7412_v2 }
  0x7c   : > { %3400 = vst [vmem:[#allocation3 + $0x190] sm:$0x3] %v7412_v2 }
  0x7d   : > { %3401 = vst [vmem:[#allocation3 + $0x198] sm:$0xff] %v7412_v2 }
  0x7e   : > { %3402 = vst [vmem:[#allocation3 + $0x1a0] sm:$0xff] %v7412_v2 }
  0x7f   : > { %3403 = vst [vmem:[#allocation3 + $0x1a8] sm:$0x3] %v7412_v2 }
  0x80   : > { %410 = vst [vmem:[#allocation2 + $0xc1] sm:$0xff] %v7644_v21  ;;  %v7268_v21 = vld [vmem:[%s7635_s21 + $0x10] sm:$0xff]  }
  0x81   : > { %411 = vst [vmem:[#allocation2 + $0xc9] sm:$0xff] %v7646_v22  ;;  %v7276_v22 = vld [vmem:[%s7635_s21 + $0x50] sm:$0xff]   ;;  %v7213_v26 = vunpack.c.l.bf16 %v7268_v21  ;;  %v7214_v31 = vunpack.c.h.bf16 %v7268_v21 }
  0x82   : > { %396 = vst [vmem:[#allocation2 + $0x19] sm:$0xff] %v7205_v42  ;;  %v7245_v32 = vunpack.c.l.bf16 %v7276_v22  ;;  %v7246_v35 = vunpack.c.h.bf16 %v7276_v22 }
  0x83   : > { %397 = vst [vmem:[#allocation2 + $0x21] sm:$0xff] %v7206_v43  ;;  %v530_v49 = vpack.c.bf16 %v7213_v26, %v7213_v26  ;;  %v531_v50 = vpack.c.bf16 %v7214_v31, %v7214_v31 }
  0x84   : > { %412 = vst [vmem:[#allocation2 + $0xd9] sm:$0xff] %v7237_v40  ;;  %v546_v44 = vpack.c.bf16 %v7245_v32, %v7245_v32  ;;  %v547_v45 = vpack.c.bf16 %v7246_v35, %v7246_v35 }
  0x85   : > { %413 = vst [vmem:[#allocation2 + $0xe1] sm:$0xff] %v7238_v41  ;;  %v1139_v53 = vunpack.c.l.b16 %v530_v49  ;;  %v1140_v54 = vunpack.c.l.b16 %v531_v50 }
  0x86   : > { %398 = vst [vmem:[#allocation2 + $0x31] sm:$0xff] %v7209_v59  ;;  %v1155_v47 = vunpack.c.l.b16 %v546_v44  ;;  %v1156_v48 = vunpack.c.l.b16 %v547_v45  ;;  %v7086_v59 = vld [vmem:[%s9772_s1 + $0xe0] sm:$0xff] }
  0x87   : > { %v444_v63 = vld [vmem:[#allocation2 + $0xc0] sm:$0xff]  ;;  %399 = vst [vmem:[#allocation2 + $0x39] sm:$0xff] %v7210_v60  ;;  %2715 = vmatpush.bf16.msrb.mxu3 %v7086_v59 }
  0x88   : > { %v445_v0 = vld [vmem:[#allocation2 + $0xc8] sm:$0xff]  ;;  %v476_v1 = vpack.c.bf16 %v444_v63, %v444_v63  ;;  %414 = vst [vmem:[#allocation2 + $0xf1] sm:$0xff] %v7241_v61  ;;  %v1176_v52 = vpack.c.b16 %v1156_v48, %v1155_v47  ;;  %v7094_v60 = vld [vmem:[%s9772_s1 + $0x120] sm:$0xff]  ;;  %v7217_v61 = vunpack.c.l.bf16 %v7269_v56  ;;  %v7249_v63 = vunpack.c.l.bf16 %v7277_v57 }
  0x89   : > { %v477_v2 = vpack.c.bf16 %v445_v0, %v445_v0  ;;  %v430_v3 = vld [vmem:[#allocation2 + $0x18] sm:$0xff]  ;;  %415 = vst [vmem:[#allocation2 + $0xf9] sm:$0xff] %v7242_v62  ;;  %v7218_v62 = vunpack.c.h.bf16 %v7269_v56  ;;  %2804 = vmatpush.bf16.msrb.mxu0 %v7094_v60 }
  0x8a   : > { %v1053_v6 = vunpack.c.l.b16 %v476_v1  ;;  %v431_v7 = vld [vmem:[#allocation2 + $0x20] sm:$0xff]  ;;  %v462_v8 = vpack.c.bf16 %v430_v3, %v430_v3  ;;  %400 = vst [vmem:[#allocation2 + $0x49] sm:$0xff] %v7213_v26  ;;  %2597 = vmatmul.bf16.gmra.mxu3 %v1176_v52  ;;  %v7250_v3 = vunpack.c.h.bf16 %v7277_v57  ;;  %v548_v14 = vpack.c.bf16 %v7249_v63, %v7249_v63 }
  0x8b   : > { %v1054_v9 = vunpack.c.l.b16 %v477_v2  ;;  %v463_v10 = vpack.c.bf16 %v431_v7, %v431_v7  ;;  %v446_v27 = vld [vmem:[#allocation2 + $0xd8] sm:$0xff]  ;;  %401 = vst [vmem:[#allocation2 + $0x51] sm:$0xff] %v7214_v31  ;;  %v7733_v2 = vpack.c.b16 %v1140_v54, %v1139_v53  ;;  %v532_v19 = vpack.c.bf16 %v7217_v61, %v7217_v61  ;;  %v7270_v26 = vld [vmem:[%s7635_s21 + $0x20] sm:$0xff]   ;;  %2716 = vmatpush.bf16.msrb.mxu3 %v7085_v30 }
  0x8c   : > { %v1039_v13 = vunpack.c.l.b16 %v462_v8  ;;  %v447_v28 = vld [vmem:[#allocation2 + $0xe0] sm:$0xff]  ;;  %v478_v36 = vpack.c.bf16 %v446_v27, %v446_v27  ;;  %416 = vst [vmem:[#allocation2 + $0x109] sm:$0xff] %v7245_v32  ;;  %v549_v15 = vpack.c.bf16 %v7250_v3, %v7250_v3  ;;  %v533_v20 = vpack.c.bf16 %v7218_v62, %v7218_v62  ;;  %v7093_v31 = vld [vmem:[%s9772_s1 + $0x118] sm:$0xff] }
  0x8d   : > { %v1077_v16 = vpack.c.b16 %v1054_v9, %v1053_v6  ;;  %v1040_v17 = vunpack.c.l.b16 %v463_v10  ;;  %v432_v33 = vld [vmem:[#allocation2 + $0x30] sm:$0xff]  ;;  %v479_v37 = vpack.c.bf16 %v447_v28, %v447_v28  ;;  %417 = vst [vmem:[#allocation2 + $0x111] sm:$0xff] %v7246_v35  ;;  %2557 = vmatmul.bf16.gmra.mxu1 %v7733_v2  ;;  %v1141_v24 = vunpack.c.l.b16 %v532_v19  ;;  %v7278_v27 = vld [vmem:[%s7635_s21 + $0x60] sm:$0xff]   ;;  %v7077_v28 = vld [vmem:[%s9772_s1 + $0x98] sm:$0xff]  ;;  %2805 = vmatpush.bf16.msrb.mxu0 %v7093_v31 }
  0x8e   : > { %v433_v34 = vld [vmem:[#allocation2 + $0x38] sm:$0xff]  ;;  %v464_v38 = vpack.c.bf16 %v432_v33, %v432_v33  ;;  %v1055_v40 = vunpack.c.l.b16 %v478_v36  ;;  %402 = vst [vmem:[#allocation2 + $0x61] sm:$0xff] %v7217_v61  ;;  %v1158_v18 = vunpack.c.l.b16 %v549_v15  ;;  %v1142_v25 = vunpack.c.l.b16 %v533_v20  ;;  %2627 = vmatpush.bf16.msrb.mxu2 %v7077_v28 }
  0x8f   : > { %2493 = vmatmul.bf16.vlgmr.msra.gmra.mxu2 %v1077_v16  ;;  %v7705_v23 = vpack.c.b16 %v1040_v17, %v1039_v13  ;;  %v465_v39 = vpack.c.bf16 %v433_v34, %v433_v34  ;;  %v1056_v41 = vunpack.c.l.b16 %v479_v37  ;;  %v448_v0 = vld [vmem:[#allocation2 + $0xf0] sm:$0xff]  ;;  %403 = vst [vmem:[#allocation2 + $0x69] sm:$0xff] %v7218_v62  ;;  %v1157_v17 = vunpack.c.l.b16 %v548_v14  ;;  %v7271_v62 = vld [vmem:[%s7635_s21 + $0x28] sm:$0xff]  }
  0x90   : > { %v1041_v42 = vunpack.c.l.b16 %v464_v38  ;;  %v449_v1 = vld [vmem:[#allocation2 + $0xf8] sm:$0xff]  ;;  %v480_v6 = vpack.c.bf16 %v448_v0, %v448_v0  ;;  %418 = vst [vmem:[#allocation2 + $0x121] sm:$0xff] %v7249_v63  ;;  %v7221_v32 = vunpack.c.l.bf16 %v7270_v26  ;;  %v7222_v33 = vunpack.c.h.bf16 %v7270_v26  ;;  %v7279_v63 = vld [vmem:[%s7635_s21 + $0x68] sm:$0xff]   ;;  %v7076_v0 = vld [vmem:[%s9772_s1 + $0x90] sm:$0xff] }
  0x91   : > { %2458 = vmatmul.bf16.gmra.mxu0 %v7705_v23  ;;  %v1042_v43 = vunpack.c.l.b16 %v465_v39  ;;  %v1078_v46 = vpack.c.b16 %v1056_v41, %v1055_v40  ;;  %v434_v4 = vld [vmem:[#allocation2 + $0x48] sm:$0xff]  ;;  %v481_v7 = vpack.c.bf16 %v449_v1, %v449_v1  ;;  %419 = vst [vmem:[#allocation2 + $0x129] sm:$0xff] %v7250_v3  ;;  %v1177_v22 = vpack.c.b16 %v1158_v18, %v1157_v17  ;;  %v7084_v1 = vld [vmem:[%s9772_s1 + $0xd0] sm:$0xff] }
  0x92   : > { %v435_v5 = vld [vmem:[#allocation2 + $0x50] sm:$0xff]  ;;  %v466_v8 = vpack.c.bf16 %v434_v4, %v434_v4  ;;  %v1057_v10 = vunpack.c.l.b16 %v480_v6  ;;  %v7253_v34 = vunpack.c.l.bf16 %v7278_v27  ;;  %v7750_v37 = vpack.c.b16 %v1142_v25, %v1141_v24  ;;  %404 = vst [vmem:[#allocation2 + $0x79] sm:$0xff] %v7221_v32  ;;  %2628 = vmatpush.bf16.msrb.mxu2 %v7076_v0  ;;  %2717 = vmatpush.bf16.msrb.mxu3 %v7084_v1 }
  0x93   : > { %v7720_v51 = vpack.c.b16 %v1042_v43, %v1041_v42  ;;  %v467_v9 = vpack.c.bf16 %v435_v5, %v435_v5  ;;  %v1058_v11 = vunpack.c.l.b16 %v481_v7  ;;  %v450_v35 = vld [vmem:[#allocation2 + $0x108] sm:$0xff]  ;;  %v7254_v38 = vunpack.c.h.bf16 %v7278_v27  ;;  %405 = vst [vmem:[#allocation2 + $0x81] sm:$0xff] %v7222_v33  ;;  %v7092_v3 = vld [vmem:[%s9772_s1 + $0x110] sm:$0xff] }
  0x94   : > { %v1043_v12 = vunpack.c.l.b16 %v466_v8  ;;  %v451_v36 = vld [vmem:[#allocation2 + $0x110] sm:$0xff]  ;;  %v482_v41 = vpack.c.bf16 %v450_v35, %v450_v35  ;;  %420 = vst [vmem:[#allocation2 + $0x139] sm:$0xff] %v7253_v34  ;;  %v550_v49 = vpack.c.bf16 %v7253_v34, %v7253_v34  ;;  %v534_v56 = vpack.c.bf16 %v7221_v32, %v7221_v32  ;;  %2806 = vmatpush.bf16.msrb.mxu0 %v7092_v3 }
  0x95   : > { %v1044_v13 = vunpack.c.l.b16 %v467_v9  ;;  %v1079_v16 = vpack.c.b16 %v1058_v11, %v1057_v10  ;;  %v436_v39 = vld [vmem:[#allocation2 + $0x60] sm:$0xff]  ;;  %v483_v42 = vpack.c.bf16 %v451_v36, %v451_v36  ;;  %421 = vst [vmem:[#allocation2 + $0x141] sm:$0xff] %v7254_v38  ;;  %v551_v50 = vpack.c.bf16 %v7254_v38, %v7254_v38  ;;  %v7272_v35 = vld [vmem:[%s7635_s21 + $0x30] sm:$0xff]   ;;  %v7075_v38 = vld [vmem:[%s9772_s1 + $0x88] sm:$0xff] }
  0x96   : > { %v437_v40 = vld [vmem:[#allocation2 + $0x68] sm:$0xff]  ;;  %v468_v43 = vpack.c.bf16 %v436_v39, %v436_v39  ;;  %v1059_v45 = vunpack.c.l.b16 %v482_v41  ;;  %v1159_v53 = vunpack.c.l.b16 %v550_v49  ;;  %v535_v57 = vpack.c.bf16 %v7222_v33, %v7222_v33  ;;  %v7280_v36 = vld [vmem:[%s7635_s21 + $0x70] sm:$0xff]   ;;  %2629 = vmatpush.bf16.msrb.mxu2 %v7075_v38 }
  0x97   : > { %v7737_v21 = vpack.c.b16 %v1044_v13, %v1043_v12  ;;  %v469_v44 = vpack.c.bf16 %v437_v40, %v437_v40  ;;  %v1160_v54 = vunpack.c.l.b16 %v551_v50  ;;  %v1143_v60 = vunpack.c.l.b16 %v534_v56  ;;  %v452_v7 = vld [vmem:[#allocation2 + $0x120] sm:$0xff]  ;;  %v7083_v39 = vld [vmem:[%s9772_s1 + $0xc8] sm:$0xff] }
  0x98   : > { %v1045_v47 = vunpack.c.l.b16 %v468_v43  ;;  %v1144_v61 = vunpack.c.l.b16 %v535_v57  ;;  %v7225_v4 = vunpack.c.l.bf16 %v7271_v62  ;;  %v7226_v5 = vunpack.c.h.bf16 %v7271_v62  ;;  %v453_v8 = vld [vmem:[#allocation2 + $0x128] sm:$0xff]  ;;  %2718 = vmatpush.bf16.msrb.mxu3 %v7083_v39 }
  0x99   : > { %v1046_v48 = vunpack.c.l.b16 %v469_v44  ;;  %v1178_v59 = vpack.c.b16 %v1160_v54, %v1159_v53  ;;  %v7257_v6 = vunpack.c.l.bf16 %v7279_v63  ;;  %v7258_v10 = vunpack.c.h.bf16 %v7279_v63  ;;  %v438_v11 = vld [vmem:[#allocation2 + $0x78] sm:$0xff]  ;;  %v7091_v40 = vld [vmem:[%s9772_s1 + $0x108] sm:$0xff] }
  0x9a   : > { %2602 = vmatmul.bf16.gmra.mxu3 %v1177_v22  ;;  %v7767_v9 = vpack.c.b16 %v1144_v61, %v1143_v60  ;;  %406 = vst [vmem:[#allocation2 + $0x91] sm:$0xff] %v7225_v4  ;;  %v439_v12 = vld [vmem:[#allocation2 + $0x80] sm:$0xff]  ;;  %v484_v13 = vpack.c.bf16 %v452_v7, %v452_v7  ;;  %v485_v14 = vpack.c.bf16 %v453_v8, %v453_v8  ;;  %v7229_v41 = vunpack.c.l.bf16 %v7272_v35  ;;  %v7104_v8 = vld [vmem:[%s9772_s1 + $0x170] sm:$0xff] }
  0x9b   : > { %v7754_v58 = vpack.c.b16 %v1046_v48, %v1045_v47  ;;  %407 = vst [vmem:[#allocation2 + $0x99] sm:$0xff] %v7226_v5  ;;  %v470_v15 = vpack.c.bf16 %v438_v11, %v438_v11  ;;  %v552_v22 = vpack.c.bf16 %v7257_v6, %v7257_v6  ;;  %v553_v24 = vpack.c.bf16 %v7258_v10, %v7258_v10  ;;  %v454_v44 = vld [vmem:[#allocation2 + $0x138] sm:$0xff] }
  0x9c   : > { %422 = vst [vmem:[#allocation2 + $0x151] sm:$0xff] %v7257_v6  ;;  %v1061_v17 = vunpack.c.l.b16 %v484_v13  ;;  %v1062_v18 = vunpack.c.l.b16 %v485_v14  ;;  %v536_v28 = vpack.c.bf16 %v7225_v4, %v7225_v4  ;;  %v537_v30 = vpack.c.bf16 %v7226_v5, %v7226_v5  ;;  %v7105_v47 = vld [vmem:[%s9772_s1 + $0x178] sm:$0xff]  ;;  %2807 = vmatpush.bf16.msrb.mxu0 %v7091_v40  ;;  %v7074_v13 = vld [vmem:[%s9772_s1 + $0x80] sm:$0xff]  ;;  %v7100_v40 = vld [vmem:[%s9772_s1 + $0x150] sm:$0xff] }
  0x9d   : > { %2562 = vmatmul.bf16.gmra.mxu1 %v7750_v37  ;;  %423 = vst [vmem:[#allocation2 + $0x159] sm:$0xff] %v7258_v10  ;;  %v1047_v19 = vunpack.c.l.b16 %v470_v15  ;;  %v1161_v26 = vunpack.c.l.b16 %v552_v22  ;;  %v1162_v27 = vunpack.c.l.b16 %v553_v24  ;;  %v7261_v43 = vunpack.c.l.bf16 %v7280_v36  ;;  %v7082_v14 = vld [vmem:[%s9772_s1 + $0xc0] sm:$0xff]  ;;  %2630 = vmatpush.bf16.msrb.mxu2 %v7074_v13  ;;  %v750_v13 = vld [vmem:[#allocation2 + $0x32] sm:$0xff] }
  0x9e   : > { %v1081_v25 = vpack.c.b16 %v1062_v18, %v1061_v17  ;;  %v1145_v33 = vunpack.c.l.b16 %v536_v28  ;;  %v1146_v34 = vunpack.c.l.b16 %v537_v30  ;;  %v7262_v48 = vunpack.c.h.bf16 %v7280_v36  ;;  %408 = vst [vmem:[#allocation2 + $0xa9] sm:$0xff] %v7229_v41  ;;  %2890 = vmatpush.bf16.msrb.mxu1 %v7105_v47  ;;  %v7103_v17 = vld [vmem:[%s9772_s1 + $0x168] sm:$0xff]  ;;  %v7090_v18 = vld [vmem:[%s9772_s1 + $0x100] sm:$0xff]  ;;  %2719 = vmatpush.bf16.msrb.mxu3 %v7082_v14 }
  0x9f   : > { %2498 = vmatmul.bf16.gmra.mxu2 %v1078_v46  ;;  %v1060_v46 = vunpack.c.l.b16 %v483_v42  ;;  %v1179_v32 = vpack.c.b16 %v1162_v27, %v1161_v26  ;;  %v7230_v42 = vunpack.c.h.bf16 %v7272_v35  ;;  %424 = vst [vmem:[#allocation2 + $0x169] sm:$0xff] %v7261_v43  ;;  %v554_v62 = vpack.c.bf16 %v7261_v43, %v7261_v43  ;;  %v7121_v43 = vld [vmem:[%s9772_s1 + $0x1f8] sm:$0xff] }
  0xa0   : > { %425 = vst [vmem:[#allocation2 + $0x171] sm:$0xff] %v7262_v48  ;;  %v555_v63 = vpack.c.bf16 %v7262_v48, %v7262_v48  ;;  %v538_v4 = vpack.c.bf16 %v7229_v41, %v7229_v41  ;;  %2808 = vmatpush.bf16.msrb.mxu0 %v7090_v18  ;;  %v751_v14 = vld [vmem:[#allocation2 + $0x3a] sm:$0xff] }
  0xa1   : > { %2463 = vmatmul.bf16.gmra.mxu0 %v7720_v51  ;;  %v1080_v52 = vpack.c.b16 %v1060_v46, %v1059_v45  ;;  %v455_v45 = vld [vmem:[#allocation2 + $0x140] sm:$0xff]  ;;  %v7784_v46 = vpack.c.b16 %v1146_v34, %v1145_v33  ;;  %v440_v49 = vld [vmem:[#allocation2 + $0x90] sm:$0xff]  ;;  %409 = vst [vmem:[#allocation2 + $0xb1] sm:$0xff] %v7230_v42  ;;  %v1163_v1 = vunpack.c.l.b16 %v554_v62  ;;  %v539_v5 = vpack.c.bf16 %v7230_v42, %v7230_v42  ;;  %v7113_v42 = vld [vmem:[%s9772_s1 + $0x1b8] sm:$0xff] }
  0xa2   : > { %v441_v50 = vld [vmem:[#allocation2 + $0x98] sm:$0xff]  ;;  %v487_v53 = vpack.c.bf16 %v455_v45, %v455_v45  ;;  %v472_v54 = vpack.c.bf16 %v440_v49, %v440_v49  ;;  %v1164_v3 = vunpack.c.l.b16 %v555_v63  ;;  %v1147_v10 = vunpack.c.l.b16 %v538_v4  ;;  %2891 = vmatpush.bf16.msrb.mxu1 %v7104_v8  ;;  %2979 = vmatpush.bf16.msra.mxu2 %v7113_v42 }
  0xa3   : > { %v473_v56 = vpack.c.bf16 %v441_v50, %v441_v50  ;;  %v1148_v11 = vunpack.c.l.b16 %v539_v5  ;;  %3068 = vmatpush.bf16.msra.mxu3 %v7121_v43  ;;  %v7129_v50 = vld [vmem:[%s9772_s1 + $0x238] sm:$0xff]  ;;  %v556_v5 = vld [vmem:[#allocation2 + $0x2] sm:$0xff] }
  0xa4   : > { %v1049_v60 = vunpack.c.l.b16 %v472_v54  ;;  %v1180_v7 = vpack.c.b16 %v1164_v3, %v1163_v1  ;;  %v457_v15 = vld [vmem:[#allocation2 + $0x158] sm:$0xff]  ;;  %v749_v54 = vld [vmem:[#allocation2 + $0x22] sm:$0xff]  ;;  %3157 = vmatpush.bf16.msra.mxu0 %v7129_v50 }
  0xa5   : > { %v1050_v61 = vunpack.c.l.b16 %v473_v56  ;;  %v489_v24 = vpack.c.bf16 %v457_v15, %v457_v15  ;;  %v782_v15 = vpack.c.bf16 %v750_v13, %v750_v13 }
  0xa6   : > { %2892 = vmatpush.bf16.msrb.mxu1 %v7103_v17  ;;  %v783_v17 = vpack.c.bf16 %v751_v14, %v751_v14 }
  0xa7   : > { %v7791_v6 = vpack.c.b16 %v1050_v61, %v1049_v60  ;;  %v1066_v30 = vunpack.c.l.b16 %v489_v24  ;;  %v459_v45 = vld [vmem:[#allocation2 + $0x170] sm:$0xff] }
  0xa8   : > { %v491_v49 = vpack.c.bf16 %v459_v45, %v459_v45  ;;  %v1520_v24 = vunpack.c.l.b16 %v783_v17  ;;  %v7119_v17 = vld [vmem:[%s9772_s1 + $0x1e8] sm:$0xff] }
  0xaa   : > { %2607 = vmatmul.bf16.gmra.mxu3 %v1178_v59  ;;  %v1064_v59 = vunpack.c.l.b16 %v487_v53  ;;  %v748_v53 = vld [vmem:[#allocation2 + $0x1a] sm:$0xff]  ;;  %v1068_v61 = vunpack.c.l.b16 %v491_v49 }
  0xab   : > { %v780_v56 = vpack.c.bf16 %v748_v53, %v748_v53 }
  0xad   : > { %2567 = vmatmul.bf16.gmra.mxu1 %v7767_v9  ;;  %v1517_v62 = vunpack.c.l.b16 %v780_v56 }
  0xaf   : > { %2503 = vmatmul.bf16.gmra.mxu2 %v1079_v16  ;;  %v471_v16 = vpack.c.bf16 %v439_v12, %v439_v12  ;;  %v456_v12 = vld [vmem:[#allocation2 + $0x150] sm:$0xff] }
  0xb0   : > { %v488_v22 = vpack.c.bf16 %v456_v12, %v456_v12  ;;  %v2454_v38 = vpop.f32.mrf.mxu0 }
  0xb1   : > { %2468 = vmatmul.bf16.gmra.mxu0 %v7737_v21  ;;  %v1048_v20 = vunpack.c.l.b16 %v471_v16  ;;  %v7802_v16 = vpack.c.b16 %v1148_v11, %v1147_v10  ;;  %v588_v10 = vpack.c.bf16 %v556_v5, %v556_v5 }
  0xb2   : > { %v1065_v28 = vunpack.c.l.b16 %v488_v22  ;;  %v2543_v39 = vpop.f32.mrf.mxu1  ;;  %v1519_v22 = vunpack.c.l.b16 %v782_v15  ;;  %v7111_v15 = vld [vmem:[%s9772_s1 + $0x1a8] sm:$0xff] }
  0xb3   : > { %v7771_v31 = vpack.c.b16 %v1048_v20, %v1047_v19  ;;  %v442_v19 = vld [vmem:[#allocation2 + $0xa8] sm:$0xff]  ;;  %v443_v20 = vld [vmem:[#allocation2 + $0xb0] sm:$0xff]  ;;  %v7823_v41 = vadd.f32 %v2543_v39, %v2454_v38 }
  0xb4   : > { %v474_v26 = vpack.c.bf16 %v442_v19, %v442_v19  ;;  %v475_v27 = vpack.c.bf16 %v443_v20, %v443_v20  ;;  %v1083_v35 = vpack.c.b16 %v1066_v30, %v1065_v28  ;;  %v1229_v19 = vunpack.c.l.b16 %v588_v10  ;;  %v7112_v30 = vld [vmem:[%s9772_s1 + $0x1b0] sm:$0xff] }
  0xb5   : > { %2980 = vmatpush.bf16.msra.mxu2 %v7112_v30  ;;  %v752_v38 = vld [vmem:[#allocation2 + $0x4a] sm:$0xff]  ;;  %v753_v39 = vld [vmem:[#allocation2 + $0x52] sm:$0xff] }
  0xb6   : > { %v1051_v33 = vunpack.c.l.b16 %v474_v26  ;;  %v1052_v34 = vunpack.c.l.b16 %v475_v27  ;;  %v785_v42 = vpack.c.bf16 %v753_v39, %v753_v39 }
  0xb7   : > { %v2583_v47 = vpop.f32.mrf.mxu3 }
  0xb8   : > { %v7818_v36 = vpack.c.b16 %v1052_v34, %v1051_v33  ;;  %v7846_v12 = vpop.f32.mrf.mxu0 }
  0xb9   : > { %2981 = vmatpush.bf16.msra.mxu2 %v7111_v15 }
  0xba   : > { %2612 = vmatmul.bf16.gmra.mxu3 %v1179_v32  ;;  %v7101_v32 = vld [vmem:[%s9772_s1 + $0x158] sm:$0xff] }
  0xbd   : > { %2572 = vmatmul.bf16.gmra.mxu1 %v7784_v46 }
  0xbf   : > { %2508 = vmatmul.bf16.gmra.mxu2 %v1080_v52  ;;  %v486_v52 = vpack.c.bf16 %v454_v44, %v454_v44  ;;  %v458_v44 = vld [vmem:[#allocation2 + $0x168] sm:$0xff]  ;;  %v2585_v1 = vpop.f32.mrf.mxu3 }
  0xc0   : > { %v490_v48 = vpack.c.bf16 %v458_v44, %v458_v44 }
  0xc1   : > { %2473 = vmatmul.bf16.gmra.mxu0 %v7754_v58  ;;  %v1063_v57 = vunpack.c.l.b16 %v486_v52  ;;  %v7098_v52 = vld [vmem:[%s9772_s1 + $0x140] sm:$0xff] }
  0xc2   : > { %v1067_v60 = vunpack.c.l.b16 %v490_v48 }
  0xc3   : > { %v1082_v0 = vpack.c.b16 %v1064_v59, %v1063_v57  ;;  %v781_v57 = vpack.c.bf16 %v749_v54, %v749_v54  ;;  %v7842_v59 = vpop.f32.mrf.mxu1 }
  0xc4   : > { %v1084_v3 = vpack.c.b16 %v1068_v61, %v1067_v60  ;;  %v754_v61 = vld [vmem:[#allocation2 + $0x62] sm:$0xff] }
  0xc5   : > { %v1518_v63 = vunpack.c.l.b16 %v781_v57 }
  0xc7   : > { %v2588_v8 = vpop.f32.mrf.mxu3 }
  0xca   : > { %2617 = vmatmul.bf16.gmra.mxu3 %v1180_v7  ;;  %v557_v7 = vld [vmem:[#allocation2 + $0xa] sm:$0xff] }
  0xcb   : > { %v2548_v4 = vpop.f32.mrf.mxu1  ;;  %v589_v11 = vpack.c.bf16 %v557_v7, %v557_v7 }
  0xcd   : > { %2577 = vmatmul.bf16.gmra.mxu1 %v7802_v16  ;;  %v1230_v20 = vunpack.c.l.b16 %v589_v11 }
  0xcf   : > { %2513 = vmatmul.bf16.gmra.mxu2 %v1081_v25  ;;  %v7102_v25 = vld [vmem:[%s9772_s1 + $0x160] sm:$0xff]  ;;  %v1261_v26 = vpack.c.b16 %v1230_v20, %v1229_v19 }
  0xd0   : > { %2893 = vmatpush.bf16.msrb.mxu1 %v7102_v25  ;;  %v1550_v25 = vpack.c.b16 %v1520_v24, %v1519_v22  ;;  %v756_v22 = vld [vmem:[#allocation2 + $0x7a] sm:$0xff]  ;;  %v757_v24 = vld [vmem:[#allocation2 + $0x82] sm:$0xff] }
  0xd1   : > { %2478 = vmatmul.bf16.gmra.mxu0 %v7771_v31 }
  0xd3   : > { %v2550_v18 = vpop.f32.mrf.mxu1 }
  0xd4   : > { %2894 = vmatpush.bf16.msrb.mxu1 %v7101_v32  ;;  %v7120_v32 = vld [vmem:[%s9772_s1 + $0x1f0] sm:$0xff] }
  0xd5   : > { %3069 = vmatpush.bf16.msra.mxu3 %v7120_v32 }
  0xd8   : > { %2895 = vmatpush.bf16.msrb.mxu1 %v7100_v40  ;;  %v784_v40 = vpack.c.bf16 %v752_v38, %v752_v38 }
  0xd9   : > { %3070 = vmatpush.bf16.msra.mxu3 %v7119_v17 }
  0xda   : > { %2720 = vmatmul.bf16.vlgmr.msrb.gmra.mxu3 %v7705_v23  ;;  %v7099_v23 = vld [vmem:[%s9772_s1 + $0x148] sm:$0xff] }
  0xdb   : > { %v2553_v28 = vpop.f32.mrf.mxu1 }
  0xdc   : > { %2896 = vmatpush.bf16.msrb.mxu1 %v7099_v23  ;;  %v1522_v23 = vunpack.c.l.b16 %v785_v42 }
  0xdf   : > { %2518 = vmatmul.bf16.gmra.mxu2 %v1082_v0  ;;  %v1549_v0 = vpack.c.b16 %v1518_v63, %v1517_v62  ;;  %v755_v62 = vld [vmem:[#allocation2 + $0x6a] sm:$0xff]  ;;  %v786_v63 = vpack.c.bf16 %v754_v61, %v754_v61 }
  0xe0   : > { %2897 = vmatpush.bf16.msrb.mxu1 %v7098_v52 }
  0xe1   : > { %2483 = vmatmul.bf16.gmra.mxu0 %v7791_v6 }
  0xe3   : > { %2898 = vmatmul.bf16.vlgmr.msrb.gmra.mxu1 %v1549_v0  ;;  %v2555_v45 = vpop.f32.mrf.mxu1 }
  0xea   : > { %2725 = vmatmul.bf16.gmra.mxu3 %v7720_v51  ;;  %v2590_v51 = vpop.f32.mrf.mxu3 }
  0xef   : > { %2523 = vmatmul.bf16.gmra.mxu2 %v1083_v35 }
  0xf1   : > { %2488 = vmatmul.bf16.gmra.mxu0 %v7818_v36 }
  0xf2   : > { %v2593_v34 = vpop.f32.mrf.mxu3 }
  0xf3   : > { %2903 = vmatmul.bf16.gmra.mxu1 %v1550_v25 }
  0xfa   : > { %2730 = vmatmul.bf16.gmra.mxu3 %v7737_v21  ;;  %v7128_v21 = vld [vmem:[%s9772_s1 + $0x230] sm:$0xff]  ;;  %v2595_v50 = vpop.f32.mrf.mxu3 }
  0xfb   : > { %3158 = vmatpush.bf16.msra.mxu0 %v7128_v21 }
  0xff   : > { %2528 = vmatmul.bf16.gmra.mxu2 %v1084_v3  ;;  %v787_v3 = vpack.c.bf16 %v755_v62, %v755_v62 }
 0x101   : > { %2809 = vmatmul.bf16.vlgmr.msrb.gmra.mxu0 %v7691_v55  ;;  %v1524_v7 = vunpack.c.l.b16 %v787_v3 }
 0x10a   : > { %v2558_v54 = vpop.f32.mrf.mxu1  ;;  %2735 = vmatmul.bf16.gmra.mxu3 %v7754_v58 }
 0x10d   : > { %v2598_v57 = vpop.f32.mrf.mxu3 }
 0x10e   : > { %v2459_v27 = vpop.f32.mrf.mxu0 }
 0x10f   : > { %2631 = vmatmul.bf16.vlgmr.msrb.gmra.mxu2 %v1261_v26  ;;  %v7848_v55 = vadd.f32 %v2548_v4, %v2459_v27 }
 0x111   : > { %2814 = vmatmul.bf16.gmra.mxu0 %v7713_v29  ;;  %v1521_v29 = vunpack.c.l.b16 %v784_v40 }
 0x112   : > { %v2494_v33 = vpop.f32.mrf.mxu2  ;;  %v2560_v5 = vpop.f32.mrf.mxu1 }
 0x113   : > { %v7858_v35 = vadd.f32 %v2583_v47, %v2494_v33  ;;  %v1551_v48 = vpack.c.b16 %v1522_v23, %v1521_v29  ;;  %v758_v29 = vld [vmem:[#allocation2 + $0x92] sm:$0xff]  ;;  %v759_v23 = vld [vmem:[#allocation2 + $0x9a] sm:$0xff] }
 0x115   : > { %2908 = vmatmul.bf16.gmra.mxu1 %v1551_v48  ;;  %v2600_v13 = vpop.f32.mrf.mxu3 }
 0x116   : > { %v2461_v43 = vpop.f32.mrf.mxu0 }
 0x117   : > { %v7863_v44 = vadd.f32 %v2550_v18, %v2461_v43 }
 0x11a   : > { %v2496_v49 = vpop.f32.mrf.mxu2  ;;  %v2563_v14 = vpop.f32.mrf.mxu1  ;;  %2740 = vmatmul.bf16.gmra.mxu3 %v7771_v31  ;;  %v7127_v31 = vld [vmem:[%s9772_s1 + $0x228] sm:$0xff] }
 0x11b   : > { %v7865_v47 = vadd.f32 %v2585_v1, %v2496_v49  ;;  %3159 = vmatpush.bf16.msra.mxu0 %v7127_v31  ;;  %v790_v49 = vpack.c.bf16 %v758_v29, %v758_v29 }
 0x11d   : > { %v2603_v19 = vpop.f32.mrf.mxu3 }
 0x11e   : > { %v2464_v52 = vpop.f32.mrf.mxu0 }
 0x11f   : > { %2636 = vmatmul.bf16.gmra.mxu2 %v1549_v0  ;;  %v7867_v53 = vadd.f32 %v2553_v28, %v2464_v52  ;;  %v1523_v0 = vunpack.c.l.b16 %v786_v63 }
 0x121   : > { %2819 = vmatmul.bf16.gmra.mxu0 %v7733_v2  ;;  %v1552_v10 = vpack.c.b16 %v1524_v7, %v1523_v0 }
 0x122   : > { %v2499_v56 = vpop.f32.mrf.mxu2  ;;  %v2565_v28 = vpop.f32.mrf.mxu1 }
 0x123   : > { %v7871_v60 = vadd.f32 %v2588_v8, %v2499_v56 }
 0x125   : > { %2913 = vmatmul.bf16.gmra.mxu1 %v1552_v10 }
 0x126   : > { %v2466_v1 = vpop.f32.mrf.mxu0 }
 0x127   : > { %v7873_v4 = vadd.f32 %v2555_v45, %v2466_v1  ;;  %v7110_v1 = vld [vmem:[%s9772_s1 + $0x1a0] sm:$0xff] }
 0x128   : > { %2982 = vmatpush.bf16.msra.mxu2 %v7110_v1 }
 0x12a   : > { %v2501_v11 = vpop.f32.mrf.mxu2  ;;  %v2568_v40 = vpop.f32.mrf.mxu1  ;;  %2745 = vmatmul.bf16.gmra.mxu3 %v7791_v6 }
 0x12b   : > { %v7875_v58 = vadd.f32 %v2590_v51, %v2501_v11  ;;  %v789_v51 = vpack.c.bf16 %v757_v24, %v757_v24  ;;  %v635_v24 = vld [vmem:[#allocation2 + $0xc8] sm:$0xff] }
 0x12d   : > { %v1526_v30 = vunpack.c.l.b16 %v789_v51  ;;  %v667_v51 = vpack.c.bf16 %v635_v24, %v635_v24 }
 0x12e   : > { %v2469_v2 = vpop.f32.mrf.mxu0 }
 0x12f   : > { %2641 = vmatmul.bf16.gmra.mxu2 %v1550_v25  ;;  %v7877_v8 = vadd.f32 %v2558_v54, %v2469_v2  ;;  %v788_v25 = vpack.c.bf16 %v756_v22, %v756_v22  ;;  %v761_v2 = vld [vmem:[#allocation2 + $0xb2] sm:$0xff]  ;;  %v634_v22 = vld [vmem:[#allocation2 + $0xc0] sm:$0xff] }
 0x130   : > { %v793_v15 = vpack.c.bf16 %v761_v2, %v761_v2  ;;  %v637_v2 = vld [vmem:[#allocation2 + $0xe0] sm:$0xff] }
 0x131   : > { %2824 = vmatmul.bf16.gmra.mxu0 %v7750_v37  ;;  %v1525_v37 = vunpack.c.l.b16 %v788_v25 }
 0x132   : > { %v2504_v18 = vpop.f32.mrf.mxu2  ;;  %v2570_v56 = vpop.f32.mrf.mxu1  ;;  %v1530_v31 = vunpack.c.l.b16 %v793_v15 }
 0x133   : > { %v7887_v20 = vadd.f32 %v2593_v34, %v2504_v18  ;;  %v7894_v32 = vpack.c.b16 %v1526_v30, %v1525_v37  ;;  %v2605_v34 = vpop.f32.mrf.mxu3 }
 0x135   : > { %2918 = vmatmul.bf16.gmra.mxu1 %v7894_v32 }
 0x136   : > { %v2471_v26 = vpop.f32.mrf.mxu0 }
 0x137   : > { %v7892_v27 = vadd.f32 %v2560_v5, %v2471_v26  ;;  %v7118_v5 = vld [vmem:[%s9772_s1 + $0x1e0] sm:$0xff] }
 0x138   : > { %3071 = vmatpush.bf16.msra.mxu3 %v7118_v5 }
 0x13a   : > { %v2506_v33 = vpop.f32.mrf.mxu2  ;;  %2750 = vmatmul.bf16.gmra.mxu3 %v7818_v36  ;;  %v2573_v0 = vpop.f32.mrf.mxu1  ;;  %v7126_v36 = vld [vmem:[%s9772_s1 + $0x220] sm:$0xff] }
 0x13b   : > { %v7896_v21 = vadd.f32 %v2595_v50, %v2506_v33  ;;  %v2608_v43 = vpop.f32.mrf.mxu3  ;;  %v791_v50 = vpack.c.bf16 %v759_v23, %v759_v23  ;;  %3160 = vmatpush.bf16.msra.mxu0 %v7126_v36  ;;  %v1340_v33 = vunpack.c.l.b16 %v667_v51  ;;  %v698_v23 = vld [vmem:[#allocation2 + $0xc1] sm:$0xff] }
 0x13d   : > { %v1528_v61 = vunpack.c.l.b16 %v791_v50  ;;  %v699_v50 = vld [vmem:[#allocation2 + $0xc9] sm:$0xff] }
 0x13e   : > { %v2474_v38 = vpop.f32.mrf.mxu0 }
 0x13f   : > { %2646 = vmatmul.bf16.gmra.mxu2 %v1551_v48  ;;  %v7899_v39 = vadd.f32 %v2563_v14, %v2474_v38  ;;  %v1527_v48 = vunpack.c.l.b16 %v790_v49 }
 0x141   : > { %2829 = vmatmul.bf16.gmra.mxu0 %v7767_v9  ;;  %v7907_v62 = vpack.c.b16 %v1528_v61, %v1527_v48  ;;  %v762_v48 = vld [vmem:[#allocation2 + $0xc2] sm:$0xff]  ;;  %v763_v61 = vld [vmem:[#allocation2 + $0xca] sm:$0xff] }
 0x142   : > { %v2509_v42 = vpop.f32.mrf.mxu2  ;;  %v2575_v38 = vpop.f32.mrf.mxu1  ;;  %v795_v1 = vpack.c.bf16 %v763_v61, %v763_v61  ;;  %v765_v61 = vld [vmem:[#allocation2 + $0xe2] sm:$0xff] }
 0x143   : > { %v7903_v45 = vadd.f32 %v2598_v57, %v2509_v42  ;;  %v7909_v6 = vpop.f32.mrf.mxu3 }
 0x144   : > { %v1532_v36 = vunpack.c.l.b16 %v795_v1  ;;  %v797_v1 = vpack.c.bf16 %v765_v61, %v765_v61 }
 0x145   : > { %2923 = vmatmul.bf16.gmra.mxu1 %v7907_v62 }
 0x146   : > { %v2476_v52 = vpop.f32.mrf.mxu0 }
 0x147   : > { %v7905_v54 = vadd.f32 %v2565_v28, %v2476_v52 }
 0x14a   : > { %v2511_v63 = vpop.f32.mrf.mxu2 }
 0x14b   : > { %v7911_v9 = vadd.f32 %v2600_v13, %v2511_v63  ;;  %v7924_v11 = vpop.f32.mrf.mxu3  ;;  %v760_v13 = vld [vmem:[#allocation2 + $0xaa] sm:$0xff]  ;;  %v731_v63 = vpack.c.bf16 %v699_v50, %v699_v50 }
 0x14c   : > { %v792_v14 = vpack.c.bf16 %v760_v13, %v760_v13  ;;  %v636_v13 = vld [vmem:[#allocation2 + $0xd8] sm:$0xff] }
 0x14e   : > { %v2479_v57 = vpop.f32.mrf.mxu0 }
 0x14f   : > { %2651 = vmatmul.bf16.gmra.mxu2 %v1552_v10  ;;  %v7914_v3 = vadd.f32 %v2568_v40, %v2479_v57  ;;  %v794_v57 = vpack.c.bf16 %v762_v48, %v762_v48  ;;  %v764_v48 = vld [vmem:[#allocation2 + $0xda] sm:$0xff] }
 0x151   : > { %2834 = vmatmul.bf16.gmra.mxu0 %v7784_v46  ;;  %v1529_v46 = vunpack.c.l.b16 %v792_v14  ;;  %v1436_v14 = vunpack.c.l.b16 %v731_v63 }
 0x152   : > { %v2514_v7 = vpop.f32.mrf.mxu2 }
 0x153   : > { %v7926_v10 = vadd.f32 %v2603_v19, %v2514_v7  ;;  %v7933_v25 = vpack.c.b16 %v1530_v31, %v1529_v46  ;;  %v666_v19 = vpack.c.bf16 %v634_v22, %v634_v22  ;;  %v7935_v28 = vpop.f32.mrf.mxu3  ;;  %v1531_v7 = vunpack.c.l.b16 %v794_v57 }
 0x154   : > { %v796_v57 = vpack.c.bf16 %v764_v48, %v764_v48  ;;  %v703_v48 = vld [vmem:[#allocation2 + $0xf9] sm:$0xff] }
 0x155   : > { %2928 = vmatmul.bf16.gmra.mxu1 %v7933_v25  ;;  %v1339_v30 = vunpack.c.l.b16 %v666_v19  ;;  %v7950_v15 = vpack.c.b16 %v1532_v36, %v1531_v7  ;;  %v1534_v36 = vunpack.c.l.b16 %v797_v1  ;;  %v767_v1 = vld [vmem:[#allocation2 + $0xfa] sm:$0xff] }
 0x156   : > { %v2481_v17 = vpop.f32.mrf.mxu0  ;;  %v1533_v7 = vunpack.c.l.b16 %v796_v57  ;;  %v766_v57 = vld [vmem:[#allocation2 + $0xf2] sm:$0xff] }
 0x157   : > { %v7931_v18 = vadd.f32 %v2570_v56, %v2481_v17  ;;  %v1364_v40 = vpack.c.b16 %v1340_v33, %v1339_v30  ;;  %v730_v56 = vpack.c.bf16 %v698_v23, %v698_v23  ;;  %v669_v17 = vpack.c.bf16 %v637_v2, %v637_v2  ;;  %v638_v2 = vld [vmem:[#allocation2 + $0xf0] sm:$0xff] }
 0x159   : > { %2755 = vmatmul.bf16.gmra.mxu3 %v1364_v40  ;;  %v1342_v19 = vunpack.c.l.b16 %v669_v17  ;;  %v7979_v17 = vpack.c.b16 %v1534_v36, %v1533_v7  ;;  %v798_v7 = vpack.c.bf16 %v766_v57, %v766_v57  ;;  %v799_v36 = vpack.c.bf16 %v767_v1, %v767_v1 }
 0x15a   : > { %v2516_v26 = vpop.f32.mrf.mxu2 }
 0x15b   : > { %v7937_v37 = vadd.f32 %v2605_v34, %v2516_v26  ;;  %v7944_v52 = vpop.f32.mrf.mxu3 }
 0x15e   : > { %v2484_v42 = vpop.f32.mrf.mxu0 }
 0x15f   : > { %2656 = vmatmul.bf16.gmra.mxu2 %v7894_v32  ;;  %v7941_v29 = vadd.f32 %v2573_v0, %v2484_v42  ;;  %v2578_v32 = vpop.f32.mrf.mxu1  ;;  %v700_v42 = vld [vmem:[#allocation2 + $0xd9] sm:$0xff] }
 0x161   : > { %2839 = vmatmul.bf16.gmra.mxu0 %v7802_v16  ;;  %v1435_v16 = vunpack.c.l.b16 %v730_v56  ;;  %v732_v56 = vpack.c.bf16 %v700_v42, %v700_v42 }
 0x162   : > { %v2519_v49 = vpop.f32.mrf.mxu2 }
 0x163   : > { %v7946_v34 = vadd.f32 %v2608_v43, %v2519_v49  ;;  %v668_v43 = vpack.c.bf16 %v636_v13, %v636_v13  ;;  %v7952_v31 = vpop.f32.mrf.mxu3  ;;  %v1460_v51 = vpack.c.b16 %v1436_v14, %v1435_v16  ;;  %v701_v49 = vld [vmem:[#allocation2 + $0xe1] sm:$0xff]  ;;  %v1437_v16 = vunpack.c.l.b16 %v732_v56  ;;  %v639_v14 = vld [vmem:[#allocation2 + $0xf8] sm:$0xff] }
 0x164   : > { %v733_v63 = vpack.c.bf16 %v701_v49, %v701_v49  ;;  %v702_v49 = vld [vmem:[#allocation2 + $0xf1] sm:$0xff] }
 0x165   : > { %2933 = vmatmul.bf16.gmra.mxu1 %v7950_v15  ;;  %v1341_v24 = vunpack.c.l.b16 %v668_v43 }
 0x166   : > { %v2486_v5 = vpop.f32.mrf.mxu0  ;;  %v1438_v43 = vunpack.c.l.b16 %v733_v63  ;;  %v734_v63 = vpack.c.bf16 %v702_v49, %v702_v49 }
 0x167   : > { %v7948_v0 = vadd.f32 %v2575_v38, %v2486_v5  ;;  %v1365_v26 = vpack.c.b16 %v1342_v19, %v1341_v24  ;;  %v7109_v38 = vld [vmem:[%s9772_s1 + $0x198] sm:$0xff]  ;;  %v2580_v40 = vpop.f32.mrf.mxu1  ;;  %v671_v24 = vpack.c.bf16 %v639_v14, %v639_v14  ;;  %v1536_v14 = vunpack.c.l.b16 %v799_v36  ;;  %v7116_v36 = vld [vmem:[%s9772_s1 + $0x1d0] sm:$0xff] }
 0x168   : > { %2983 = vmatpush.bf16.msra.mxu2 %v7109_v38 }
 0x169   : > { %2760 = vmatmul.bf16.gmra.mxu3 %v1365_v26  ;;  %v1344_v38 = vunpack.c.l.b16 %v671_v24 }
 0x16a   : > { %v2521_v46 = vpop.f32.mrf.mxu2 }
 0x16b   : > { %v7955_v22 = vadd.f32 %v7909_v6, %v2521_v46  ;;  %v7117_v6 = vld [vmem:[%s9772_s1 + $0x1d8] sm:$0xff]  ;;  %v7967_v50 = vpop.f32.mrf.mxu3  ;;  %v670_v46 = vpack.c.bf16 %v638_v2, %v638_v2  ;;  %v1535_v2 = vunpack.c.l.b16 %v798_v7 }
 0x16c   : > { %3072 = vmatpush.bf16.msra.mxu3 %v7117_v6  ;;  %v1461_v6 = vpack.c.b16 %v1438_v43, %v1437_v16  ;;  %v1439_v43 = vunpack.c.l.b16 %v734_v63  ;;  %v705_v7 = vld [vmem:[#allocation2 + $0x111] sm:$0xff] }
 0x16e   : > { %v2489_v30 = vpop.f32.mrf.mxu0 }
 0x16f   : > { %2661 = vmatmul.bf16.gmra.mxu2 %v7907_v62  ;;  %v7959_v33 = vadd.f32 %v2578_v32, %v2489_v30  ;;  %v7974_v13 = vpop.f32.mrf.mxu1  ;;  %v1343_v30 = vunpack.c.l.b16 %v670_v46  ;;  %v641_v46 = vld [vmem:[#allocation2 + $0x110] sm:$0xff] }
 0x170   : > { %3073 = vmatpush.bf16.msra.mxu3 %v7116_v36 }
 0x171   : > { %2844 = vmatmul.bf16.gmra.mxu0 %v1460_v51 }
 0x172   : > { %v2524_v23 = vpop.f32.mrf.mxu2 }
 0x173   : > { %v7970_v62 = vadd.f32 %v7924_v11, %v2524_v23  ;;  %v7125_v11 = vld [vmem:[%s9772_s1 + $0x218] sm:$0xff]  ;;  %v7981_v51 = vpop.f32.mrf.mxu3 }
 0x174   : > { %3161 = vmatpush.bf16.msra.mxu0 %v7125_v11 }
 0x175   : > { %2938 = vmatmul.bf16.gmra.mxu1 %v7979_v17 }
 0x176   : > { %v2491_v5 = vpop.f32.mrf.mxu0 }
 0x177   : > { %v7972_v32 = vadd.f32 %v2580_v40, %v2491_v5  ;;  %v1366_v40 = vpack.c.b16 %v1344_v38, %v1343_v30  ;;  %v7988_v23 = vpop.f32.mrf.mxu1  ;;  %v735_v5 = vpack.c.bf16 %v703_v48, %v703_v48  ;;  %v673_v38 = vpack.c.bf16 %v641_v46, %v641_v46  ;;  %v768_v46 = vld [vmem:[#allocation2 + $0x10a] sm:$0xff] }
 0x179   : > { %2765 = vmatmul.bf16.gmra.mxu3 %v1366_v40  ;;  %v1440_v24 = vunpack.c.l.b16 %v735_v5  ;;  %v1346_v48 = vunpack.c.l.b16 %v673_v38  ;;  %v7108_v5 = vld [vmem:[%s9772_s1 + $0x190] sm:$0xff]  ;;  %v800_v38 = vpack.c.bf16 %v768_v46, %v768_v46 }
 0x17a   : > { %v2526_v19 = vpop.f32.mrf.mxu2  ;;  %2984 = vmatpush.bf16.msra.mxu2 %v7108_v5  ;;  %v2546_v5 = vadd.f32 %v7842_v59, %v7846_v12 }
 0x17b   : > { %v7984_v26 = vadd.f32 %v7935_v28, %v2526_v19  ;;  %v7990_v61 = vpop.f32.mrf.mxu3  ;;  %v8002_v19 = vpack.c.b16 %v1536_v14, %v1535_v2  ;;  %v1462_v63 = vpack.c.b16 %v1440_v24, %v1439_v43  ;;  %v769_v24 = vld [vmem:[#allocation2 + $0x112] sm:$0xff] }
 0x17e   : > { %v2810_v42 = vpop.f32.mrf.mxu0 }
 0x17f   : > { %2666 = vmatmul.bf16.gmra.mxu2 %v7933_v25  ;;  %v7137_v25 = vld [vmem:[%s9775_s4 + $0x38] sm:$0xff]  ;;  %v8000_v11 = vpop.f32.mrf.mxu1 }
 0x180   : > { %5454 = vmatpush.bf16.msra.mxu1 %v7137_v25 }
 0x181   : > { %2849 = vmatmul.bf16.gmra.mxu0 %v1461_v6 }
 0x182   : > { %v2529_v56 = vpop.f32.mrf.mxu2 }
 0x183   : > { %v7993_v28 = vadd.f32 %v7944_v52, %v2529_v56  ;;  %v640_v52 = vld [vmem:[#allocation2 + $0x108] sm:$0xff]  ;;  %v8004_v40 = vpop.f32.mrf.mxu3 }
 0x184   : > { %v672_v30 = vpack.c.bf16 %v640_v52, %v640_v52  ;;  %v737_v52 = vpack.c.bf16 %v705_v7, %v705_v7  ;;  %v643_v7 = vld [vmem:[#allocation2 + $0x128] sm:$0xff] }
 0x185   : > { %9784 = vst [vmem:[#allocation7_spill] sm:$0xff] %v7993_v28  ;;  %2943 = vmatmul.bf16.gmra.mxu1 %v8002_v19 }
 0x186   : > { %v7998_v16 = vpop.f32.mrf.mxu0  ;;  %v1345_v56 = vunpack.c.l.b16 %v672_v30  ;;  %v1442_v28 = vunpack.c.l.b16 %v737_v52 }
 0x187   : > { %v8016_v25 = vpop.f32.mrf.mxu1 }
 0x188   : > { %v1367_v57 = vpack.c.b16 %v1346_v48, %v1345_v56 }
 0x18a   : > { %v2531_v6 = vpop.f32.mrf.mxu2  ;;  %2770 = vmatmul.bf16.gmra.mxu3 %v1367_v57 }
 0x18b   : > { %v8007_v49 = vadd.f32 %v7952_v31, %v2531_v6  ;;  %v704_v31 = vld [vmem:[#allocation2 + $0x109] sm:$0xff]  ;;  %v8021_v14 = vpop.f32.mrf.mxu3  ;;  %v801_v6 = vpack.c.bf16 %v769_v24, %v769_v24 }
 0x18c   : > { %v736_v43 = vpack.c.bf16 %v704_v31, %v704_v31  ;;  %v642_v31 = vld [vmem:[#allocation2 + $0x120] sm:$0xff] }
 0x18d   : > { %9785 = vst [vmem:[#allocation8_spill] sm:$0xff] %v8007_v49  ;;  %v1538_v57 = vunpack.c.l.b16 %v801_v6 }
 0x18e   : > { %v8010_v1 = vpop.f32.mrf.mxu0  ;;  %v1441_v49 = vunpack.c.l.b16 %v736_v43 }
 0x18f   : > { %2671 = vmatmul.bf16.gmra.mxu2 %v7950_v15 }
 0x190   : > { %v1463_v52 = vpack.c.b16 %v1442_v28, %v1441_v49 }
 0x191   : > { %2854 = vmatmul.bf16.gmra.mxu0 %v1462_v63  ;;  %v1537_v63 = vunpack.c.l.b16 %v800_v38 }
 0x192   : > { %v2632_v2 = vpop.f32.mrf.mxu2 }
 0x193   : > { %v2633_v15 = vadd.f32 %v2632_v2, %v7823_v41  ;;  %v8029_v41 = vpop.f32.mrf.mxu1  ;;  %v8037_v2 = vpack.c.b16 %v1538_v57, %v1537_v63  ;;  %v8039_v24 = vpop.f32.mrf.mxu3  ;;  %v706_v57 = vld [vmem:[#allocation2 + $0x121] sm:$0xff] }
 0x194   : > { %v738_v28 = vpack.c.bf16 %v706_v57, %v706_v57 }
 0x195   : > { %v2722_v30 = vadd.f32 %v7967_v50, %v2633_v15  ;;  %v7124_v50 = vld [vmem:[%s9772_s1 + $0x210] sm:$0xff]  ;;  %v675_v15 = vpack.c.bf16 %v643_v7, %v643_v7  ;;  %2948 = vmatmul.bf16.gmra.mxu1 %v8037_v2 }
 0x196   : > { %v8025_v56 = vpop.f32.mrf.mxu0  ;;  %3162 = vmatpush.bf16.msra.mxu0 %v7124_v50  ;;  %v770_v50 = vld [vmem:[#allocation2 + $0x122] sm:$0xff] }
 0x197   : > { %v2811_v48 = vadd.f32 %v2810_v42, %v2722_v30  ;;  %v674_v42 = vpack.c.bf16 %v642_v31, %v642_v31  ;;  %v1348_v43 = vunpack.c.l.b16 %v675_v15 }
 0x199   : > { %v8032_v36 = vadd.f32 %v7974_v13, %v2811_v48  ;;  %v1347_v12 = vunpack.c.l.b16 %v674_v42  ;;  %v7136_v42 = vld [vmem:[%s9775_s4 + $0x30] sm:$0xff] }
 0x19a   : > { %v2634_v46 = vpop.f32.mrf.mxu2  ;;  %5455 = vmatpush.bf16.msra.mxu1 %v7136_v42 }
 0x19b   : > { %v2635_v59 = vadd.f32 %v2634_v46, %v2546_v5  ;;  %v1368_v30 = vpack.c.b16 %v1348_v43, %v1347_v12  ;;  %v8047_v48 = vpop.f32.mrf.mxu1  ;;  %v707_v5 = vld [vmem:[#allocation2 + $0x129] sm:$0xff]  ;;  %v8052_v7 = vpop.f32.mrf.mxu3 }
 0x19c   : > { %v739_v49 = vpack.c.bf16 %v707_v5, %v707_v5 }
 0x19d   : > { %v2724_v13 = vadd.f32 %v7981_v51, %v2635_v59  ;;  %2775 = vmatmul.bf16.gmra.mxu3 %v1368_v30  ;;  %v644_v30 = vld [vmem:[#allocation2 + $0x138] sm:$0xff] }
 0x19e   : > { %v8043_v38 = vpop.f32.mrf.mxu0  ;;  %v676_v5 = vpack.c.bf16 %v644_v30, %v644_v30 }
 0x19f   : > { %2676 = vmatmul.bf16.gmra.mxu2 %v7979_v17  ;;  %v2813_v6 = vadd.f32 %v7998_v16, %v2724_v13  ;;  %v771_v17 = vld [vmem:[#allocation2 + $0x12a] sm:$0xff]  ;;  %v1444_v13 = vunpack.c.l.b16 %v739_v49 }
 0x1a0   : > { %v803_v15 = vpack.c.bf16 %v771_v17, %v771_v17 }
 0x1a1   : > { %v8050_v63 = vadd.f32 %v7988_v23, %v2813_v6  ;;  %2859 = vmatmul.bf16.gmra.mxu0 %v1463_v52  ;;  %v802_v23 = vpack.c.bf16 %v770_v50, %v770_v50  ;;  %v645_v6 = vld [vmem:[#allocation2 + $0x140] sm:$0xff] }
 0x1a2   : > { %v2637_v31 = vpop.f32.mrf.mxu2  ;;  %v1540_v43 = vunpack.c.l.b16 %v803_v15  ;;  %v7107_v15 = vld [vmem:[%s9772_s1 + $0x188] sm:$0xff] }
 0x1a3   : > { %v2638_v51 = vadd.f32 %v2637_v31, %v7848_v55  ;;  %v1539_v12 = vunpack.c.l.b16 %v802_v23  ;;  %v1443_v55 = vunpack.c.l.b16 %v738_v28  ;;  %v8062_v52 = vpop.f32.mrf.mxu1  ;;  %v677_v31 = vpack.c.bf16 %v645_v6, %v645_v6  ;;  %v8069_v50 = vpop.f32.mrf.mxu3  ;;  %2985 = vmatpush.bf16.msra.mxu2 %v7107_v15  ;;  %v772_v6 = vld [vmem:[#allocation2 + $0x13a] sm:$0xff] }
 0x1a4   : > { %v1349_v28 = vunpack.c.l.b16 %v676_v5  ;;  %v773_v5 = vld [vmem:[#allocation2 + $0x142] sm:$0xff]  ;;  %v647_v15 = vld [vmem:[#allocation2 + $0x158] sm:$0xff] }
 0x1a5   : > { %v2727_v16 = vadd.f32 %v7990_v61, %v2638_v51  ;;  %v8067_v57 = vpack.c.b16 %v1540_v43, %v1539_v12  ;;  %v1350_v49 = vunpack.c.l.b16 %v677_v31  ;;  %v709_v12 = vld [vmem:[#allocation2 + $0x141] sm:$0xff]  ;;  %v804_v31 = vpack.c.bf16 %v772_v6, %v772_v6 }
 0x1a6   : > { %v8059_v46 = vpop.f32.mrf.mxu0  ;;  %v741_v30 = vpack.c.bf16 %v709_v12, %v709_v12 }
 0x1a7   : > { %v2816_v59 = vadd.f32 %v8010_v1, %v2727_v16  ;;  %2953 = vmatmul.bf16.gmra.mxu1 %v8067_v57  ;;  %v1464_v16 = vpack.c.b16 %v1444_v13, %v1443_v55  ;;  %v1369_v42 = vpack.c.b16 %v1350_v49, %v1349_v28  ;;  %v1541_v49 = vunpack.c.l.b16 %v804_v31 }
 0x1a9   : > { %v8065_v61 = vadd.f32 %v8000_v11, %v2816_v59 }
 0x1aa   : > { %v2639_v51 = vpop.f32.mrf.mxu2 }
 0x1ab   : > { %v2640_v1 = vadd.f32 %v2639_v51, %v7863_v44  ;;  %v8081_v44 = vpop.f32.mrf.mxu1  ;;  %v805_v51 = vpack.c.bf16 %v773_v5, %v773_v5 }
 0x1ad   : > { %v2729_v17 = vadd.f32 %v8004_v40, %v2640_v1  ;;  %2780 = vmatmul.bf16.gmra.mxu3 %v1369_v42  ;;  %v708_v40 = vld [vmem:[#allocation2 + $0x139] sm:$0xff]  ;;  %v1446_v42 = vunpack.c.l.b16 %v741_v30 }
 0x1ae   : > { %v8074_v23 = vpop.f32.mrf.mxu0  ;;  %v740_v13 = vpack.c.bf16 %v708_v40, %v708_v40 }
 0x1af   : > { %2681 = vmatmul.bf16.gmra.mxu2 %v8002_v19  ;;  %v2818_v11 = vadd.f32 %v8025_v56, %v2729_v17  ;;  %v7115_v19 = vld [vmem:[%s9772_s1 + $0x1c8] sm:$0xff]  ;;  %v8089_v56 = vpop.f32.mrf.mxu3  ;;  %v1542_v17 = vunpack.c.l.b16 %v805_v51 }
 0x1b0   : > { %3074 = vmatpush.bf16.msra.mxu3 %v7115_v19 }
 0x1b1   : > { %v8084_v59 = vadd.f32 %v8016_v25, %v2818_v11  ;;  %2864 = vmatmul.bf16.gmra.mxu0 %v1464_v16  ;;  %v1445_v16 = vunpack.c.l.b16 %v740_v13  ;;  %v8104_v12 = vpack.c.b16 %v1542_v17, %v1541_v49  ;;  %v710_v49 = vld [vmem:[#allocation2 + $0x151] sm:$0xff]  ;;  %v711_v17 = vld [vmem:[#allocation2 + $0x159] sm:$0xff] }
 0x1b2   : > { %v2642_v43 = vpop.f32.mrf.mxu2 }
 0x1b3   : > { %v2643_v55 = vadd.f32 %v2642_v43, %v7867_v53  ;;  %v8096_v11 = vpop.f32.mrf.mxu1  ;;  %v646_v53 = vld [vmem:[#allocation2 + $0x150] sm:$0xff]  ;;  %v679_v43 = vpack.c.bf16 %v647_v15, %v647_v15  ;;  %v1465_v5 = vpack.c.b16 %v1446_v42, %v1445_v16  ;;  %v742_v16 = vpack.c.bf16 %v710_v49, %v710_v49 }
 0x1b4   : > { %v678_v19 = vpack.c.bf16 %v646_v53, %v646_v53  ;;  %v743_v42 = vpack.c.bf16 %v711_v17, %v711_v17 }
 0x1b5   : > { %v2732_v25 = vadd.f32 %v8021_v14, %v2643_v55  ;;  %v7123_v14 = vld [vmem:[%s9772_s1 + $0x208] sm:$0xff]  ;;  %v1352_v6 = vunpack.c.l.b16 %v679_v43 }
 0x1b6   : > { %v8093_v1 = vpop.f32.mrf.mxu0  ;;  %3163 = vmatpush.bf16.msra.mxu0 %v7123_v14  ;;  %v1351_v30 = vunpack.c.l.b16 %v678_v19  ;;  %v774_v14 = vld [vmem:[#allocation2 + $0x152] sm:$0xff]  ;;  %v7135_v19 = vld [vmem:[%s9775_s4 + $0x28] sm:$0xff] }
 0x1b7   : > { %v2821_v28 = vadd.f32 %v8043_v38, %v2732_v25  ;;  %v8106_v55 = vpop.f32.mrf.mxu3  ;;  %2958 = vmatmul.bf16.gmra.mxu1 %v8104_v12 }
 0x1b8   : > { %v1370_v25 = vpack.c.b16 %v1352_v6, %v1351_v30  ;;  %5456 = vmatpush.bf16.msra.mxu1 %v7135_v19 }
 0x1b9   : > { %v8099_v40 = vadd.f32 %v8029_v41, %v2821_v28 }
 0x1ba   : > { %v2644_v38 = vpop.f32.mrf.mxu2 }
 0x1bb   : > { %v2645_v13 = vadd.f32 %v2644_v38, %v7873_v4  ;;  %v8115_v28 = vpop.f32.mrf.mxu1 }
 0x1bd   : > { %v2734_v41 = vadd.f32 %v8039_v24, %v2645_v13  ;;  %2785 = vmatmul.bf16.gmra.mxu3 %v1370_v25  ;;  %v648_v25 = vld [vmem:[#allocation2 + $0x168] sm:$0xff] }
 0x1be   : > { %v8111_v31 = vpop.f32.mrf.mxu0  ;;  %v680_v17 = vpack.c.bf16 %v648_v25, %v648_v25 }
 0x1bf   : > { %2686 = vmatmul.bf16.gmra.mxu2 %v8037_v2  ;;  %v2823_v51 = vadd.f32 %v8059_v46, %v2734_v41  ;;  %v8120_v15 = vpop.f32.mrf.mxu3  ;;  %v775_v2 = vld [vmem:[#allocation2 + $0x15a] sm:$0xff]  ;;  %v1448_v41 = vunpack.c.l.b16 %v743_v42 }
 0x1c0   : > { %v807_v43 = vpack.c.bf16 %v775_v2, %v775_v2 }
 0x1c1   : > { %v8118_v4 = vadd.f32 %v8047_v48, %v2823_v51  ;;  %2869 = vmatmul.bf16.gmra.mxu0 %v1465_v5  ;;  %v806_v48 = vpack.c.bf16 %v774_v14, %v774_v14 }
 0x1c2   : > { %v2647_v53 = vpop.f32.mrf.mxu2  ;;  %v1544_v6 = vunpack.c.l.b16 %v807_v43 }
 0x1c3   : > { %v2648_v24 = vadd.f32 %v2647_v53, %v7877_v8  ;;  %v1543_v30 = vunpack.c.l.b16 %v806_v48  ;;  %v1447_v8 = vunpack.c.l.b16 %v742_v16  ;;  %v8130_v5 = vpop.f32.mrf.mxu1  ;;  %v1353_v16 = vunpack.c.l.b16 %v680_v17  ;;  %v776_v17 = vld [vmem:[#allocation2 + $0x16a] sm:$0xff] }
 0x1c5   : > { %v2737_v46 = vadd.f32 %v8052_v7, %v2648_v24  ;;  %v649_v7 = vld [vmem:[#allocation2 + $0x170] sm:$0xff]  ;;  %v8135_v49 = vpack.c.b16 %v1544_v6, %v1543_v30 }
 0x1c6   : > { %v8127_v38 = vpop.f32.mrf.mxu0  ;;  %v681_v53 = vpack.c.bf16 %v649_v7, %v649_v7 }
 0x1c7   : > { %v2826_v13 = vadd.f32 %v8074_v23, %v2737_v46  ;;  %v8137_v14 = vpop.f32.mrf.mxu3  ;;  %2963 = vmatmul.bf16.gmra.mxu1 %v8135_v49  ;;  %v1466_v46 = vpack.c.b16 %v1448_v41, %v1447_v8  ;;  %v712_v8 = vld [vmem:[#allocation2 + $0x169] sm:$0xff]  ;;  %v713_v41 = vld [vmem:[#allocation2 + $0x171] sm:$0xff] }
 0x1c8   : > { %v1354_v42 = vunpack.c.l.b16 %v681_v53  ;;  %v777_v53 = vld [vmem:[#allocation2 + $0x172] sm:$0xff] }
 0x1c9   : > { %v8133_v51 = vadd.f32 %v8062_v52, %v2826_v13  ;;  %v7281_v52 = vld [vmem:[%s7635_s21 + $0x78] sm:$0xff]   ;;  %s7368_s21 = scalar_lea.hbm %s9778_s7, 512 }
 0x1ca   : > { %v2649_v24 = vpop.f32.mrf.mxu2  ;;  %v1371_v19 = vpack.c.b16 %v1354_v42, %v1353_v16  ;;  %v8150_v13 = vunpack.c.l.bf16 %v7281_v52  ;;  %v8152_v30 = vunpack.c.h.bf16 %v7281_v52  ;;  %v808_v16 = vpack.c.bf16 %v776_v17, %v776_v17  ;;  %p7370_p1 = scmp.lt.s32.totalorder %s7368_s21, %s7364_s14 }
 0x1cb   : > { %v2650_v23 = vadd.f32 %v2649_v24, %v7892_v27  ;;  %v7106_v27 = vld [vmem:[%s9772_s1 + $0x180] sm:$0xff]  ;;  %v8154_v6 = vpop.f32.mrf.mxu1  ;;  %v809_v42 = vpack.c.bf16 %v777_v53, %v777_v53 }
 0x1cc   : > { %9786 = vst [vmem:[#allocation9_spill] sm:$0xff] %v8154_v6  ;;  %2986 = vmatpush.bf16.msra.mxu2 %v7106_v27  ;;  %p7371_p2 = por %p7370_p1, %p7369_p0 }
 0x1cd   : > { %v2739_v2 = vadd.f32 %v8069_v50, %v2650_v23  ;;  %2790 = vmatmul.bf16.gmra.mxu3 %v1371_v19  ;;  %426 = vst [vmem:[#allocation2 + $0x181] sm:$0xff] %v8150_v13  ;;  %v745_v23 = vpack.c.bf16 %v713_v41, %v713_v41  ;;  %v1545_v19 = vunpack.c.l.b16 %v808_v16  ;;  %v1546_v52 = vunpack.c.l.b16 %v809_v42 }
 0x1ce   : > { %v8142_v48 = vpop.f32.mrf.mxu0  ;;  %427 = vst [vmem:[#allocation2 + $0x189] sm:$0xff] %v8152_v30  ;;  %p7372_p3 = pnand %p7371_p2, %p7367_p13 }
 0x1cf   : > { %2691 = vmatmul.bf16.gmra.mxu2 %v8067_v57  ;;  %v2828_v43 = vadd.f32 %v8093_v1, %v2739_v2  ;;  %v7114_v57 = vld [vmem:[%s9772_s1 + $0x1c0] sm:$0xff]  ;;  %v8163_v25 = vpop.f32.mrf.mxu3 }
 0x1d0   : > { %3075 = vmatpush.bf16.msra.mxu3 %v7114_v57  ;;  %v8179_v57 = vpack.c.b16 %v1546_v52, %v1545_v19 }
 0x1d1   : > { %v8157_v50 = vadd.f32 %v8081_v44, %v2828_v43  ;;  %2874 = vmatmul.bf16.gmra.mxu0 %v1466_v46  ;;  %v744_v44 = vpack.c.bf16 %v712_v8, %v712_v8  ;;  %v1450_v8 = vunpack.c.l.b16 %v745_v23 }
 0x1d2   : > { %v2652_v1 = vpop.f32.mrf.mxu2 }
 0x1d3   : > { %v2653_v7 = vadd.f32 %v2652_v1, %v7899_v39  ;;  %v1449_v43 = vunpack.c.l.b16 %v744_v44  ;;  %v8171_v27 = vpop.f32.mrf.mxu1 }
 0x1d4   : > { %v650_v6 = vld [vmem:[#allocation2 + $0x180] sm:$0xff] }
 0x1d5   : > { %v2742_v24 = vadd.f32 %v8089_v56, %v2653_v7  ;;  %v7122_v56 = vld [vmem:[%s9772_s1 + $0x200] sm:$0xff]  ;;  %v651_v1 = vld [vmem:[#allocation2 + $0x188] sm:$0xff]  ;;  %v682_v41 = vpack.c.bf16 %v650_v6, %v650_v6  ;;  %v1467_v23 = vpack.c.b16 %v1450_v8, %v1449_v43 }
 0x1d6   : > { %v8168_v2 = vpop.f32.mrf.mxu0  ;;  %v683_v17 = vpack.c.bf16 %v651_v1, %v651_v1  ;;  %3164 = vmatpush.bf16.msra.mxu0 %v7122_v56  ;;  %v778_v43 = vld [vmem:[#allocation2 + $0x182] sm:$0xff]  ;;  %v779_v8 = vld [vmem:[#allocation2 + $0x18a] sm:$0xff] }
 0x1d7   : > { %v2831_v46 = vadd.f32 %v8111_v31, %v2742_v24  ;;  %v8181_v31 = vpop.f32.mrf.mxu3  ;;  %2968 = vmatmul.bf16.gmra.mxu1 %v8179_v57  ;;  %v810_v1 = vpack.c.bf16 %v778_v43, %v778_v43 }
 0x1d8   : > { %v1356_v53 = vunpack.c.l.b16 %v683_v17 }
 0x1d9   : > { %v8174_v39 = vadd.f32 %v8096_v11, %v2831_v46  ;;  %v1355_v11 = vunpack.c.l.b16 %v682_v41  ;;  %v811_v41 = vpack.c.bf16 %v779_v8, %v779_v8 }
 0x1da   : > { %v2654_v7 = vpop.f32.mrf.mxu2 }
 0x1db   : > { %v2655_v44 = vadd.f32 %v2654_v7, %v7905_v54  ;;  %v1372_v42 = vpack.c.b16 %v1356_v53, %v1355_v11  ;;  %v8190_v46 = vpop.f32.mrf.mxu1  ;;  %v877_v11 = vld [vmem:[#allocation2 + $0x31] sm:$0xff] }
 0x1dd   : > { %v2744_v24 = vadd.f32 %v8106_v55, %v2655_v44  ;;  %2795 = vmatmul.bf16.gmra.mxu3 %v1372_v42  ;;  %v746_v55 = vpack.c.bf16 %v8150_v13, %v8150_v13  ;;  %v1548_v44 = vunpack.c.l.b16 %v811_v41 }
 0x1de   : > { %v2840_v16 = vpop.f32.mrf.mxu0 }
 0x1df   : > { %2696 = vmatmul.bf16.gmra.mxu2 %v8104_v12  ;;  %v8188_v6 = vadd.f32 %v8127_v38, %v2744_v24  ;;  %v8192_v19 = vpop.f32.mrf.mxu3  ;;  %v747_v12 = vpack.c.bf16 %v8152_v30, %v8152_v30  ;;  %v7134_v38 = vld [vmem:[%s9775_s4 + $0x20] sm:$0xff]  ;;  %v1451_v53 = vunpack.c.l.b16 %v746_v55 }
 0x1e0   : > { %5457 = vmatpush.bf16.msra.mxu1 %v7134_v38 }
 0x1e1   : > { %2879 = vmatmul.bf16.gmra.mxu0 %v1467_v23  ;;  %v1452_v30 = vunpack.c.l.b16 %v747_v12  ;;  %v878_v23 = vld [vmem:[#allocation2 + $0x39] sm:$0xff] }
 0x1e2   : > { %v2657_v54 = vpop.f32.mrf.mxu2  ;;  %v910_v43 = vpack.c.bf16 %v878_v23, %v878_v23  ;;  %v879_v23 = vld [vmem:[#allocation2 + $0x49] sm:$0xff] }
 0x1e3   : > { %v2658_v52 = vadd.f32 %v2657_v54, %v7914_v3  ;;  %v1547_v3 = vunpack.c.l.b16 %v810_v1  ;;  %v8204_v13 = vpop.f32.mrf.mxu1  ;;  %v1468_v1 = vpack.c.b16 %v1452_v30, %v1451_v53 }
 0x1e5   : > { %v2747_v56 = vadd.f32 %v8120_v15, %v2658_v52  ;;  %v1564_v24 = vpack.c.b16 %v1548_v44, %v1547_v3  ;;  %v909_v52 = vpack.c.bf16 %v877_v11, %v877_v11  ;;  %v941_v3 = vld [vmem:[#allocation2 + $0x32] sm:$0xff] }
 0x1e6   : > { %v2842_v7 = vpop.f32.mrf.mxu0  ;;  %v973_v53 = vpack.c.bf16 %v941_v3, %v941_v3 }
 0x1e7   : > { %v2836_v17 = vadd.f32 %v8142_v48, %v2747_v56  ;;  %v8209_v54 = vpop.f32.mrf.mxu3  ;;  %2973 = vmatmul.bf16.gmra.mxu1 %v1564_v24  ;;  %v1709_v8 = vunpack.c.l.b16 %v909_v52  ;;  %v1710_v56 = vunpack.c.l.b16 %v910_v43 }
 0x1e9   : > { %v8207_v15 = vadd.f32 %v8130_v5, %v2836_v17  ;;  %v1741_v5 = vpack.c.b16 %v1710_v56, %v1709_v8  ;;  %v911_v8 = vpack.c.bf16 %v879_v23, %v879_v23 }
 0x1ea   : > { %v2659_v42 = vpop.f32.mrf.mxu2 }
 0x1eb   : > { %v2660_v48 = vadd.f32 %v2659_v42, %v7931_v18  ;;  %v8217_v12 = vpop.f32.mrf.mxu1  ;;  %v942_v18 = vld [vmem:[#allocation2 + $0x3a] sm:$0xff]  ;;  %v1805_v42 = vunpack.c.l.b16 %v973_v53 }
 0x1ec   : > { %v974_v30 = vpack.c.bf16 %v942_v18, %v942_v18 }
 0x1ed   : > { %v2749_v38 = vadd.f32 %v8137_v14, %v2660_v48  ;;  %3076 = vmatmul.bf16.vlgmr.msra.gmra.mxu3 %v1741_v5  ;;  %v880_v48 = vld [vmem:[#allocation2 + $0x51] sm:$0xff] }
 0x1ee   : > { %v2845_v41 = vpop.f32.mrf.mxu0  ;;  %v1806_v52 = vunpack.c.l.b16 %v974_v30  ;;  %v943_v30 = vld [vmem:[#allocation2 + $0x4a] sm:$0xff] }
 0x1ef   : > { %2701 = vmatmul.bf16.gmra.mxu2 %v8135_v49  ;;  %v8215_v55 = vadd.f32 %v8168_v2, %v2749_v38  ;;  %v8219_v44 = vpop.f32.mrf.mxu3 }
 0x1f1   : > { %2884 = vmatmul.bf16.gmra.mxu0 %v1468_v1  ;;  %v1711_v1 = vunpack.c.l.b16 %v911_v8  ;;  %v7133_v8 = vld [vmem:[%s9775_s4 + $0x18] sm:$0xff] }
 0x1f2   : > { %v2662_v17 = vpop.f32.mrf.mxu2  ;;  %5458 = vmatpush.bf16.msra.mxu1 %v7133_v8 }
 0x1f3   : > { %v2663_v11 = vadd.f32 %v2662_v17, %v7941_v29  ;;  %v8226_v43 = vpop.f32.mrf.mxu1  ;;  %v912_v29 = vpack.c.bf16 %v880_v48, %v880_v48  ;;  %v1837_v17 = vpack.c.b16 %v1806_v52, %v1805_v42 }
 0x1f5   : > { %v2752_v14 = vadd.f32 %v8163_v25, %v2663_v11  ;;  %v1712_v5 = vunpack.c.l.b16 %v912_v29  ;;  %v813_v11 = vld [vmem:[#allocation2 + $0x30] sm:$0xff] }
 0x1f6   : > { %v2847_v24 = vpop.f32.mrf.mxu0  ;;  %v845_v48 = vpack.c.bf16 %v813_v11, %v813_v11 }
 0x1f7   : > { %v2841_v49 = vadd.f32 %v2840_v16, %v2752_v14  ;;  %v8228_v38 = vpop.f32.mrf.mxu3  ;;  %v814_v14 = vld [vmem:[#allocation2 + $0x38] sm:$0xff] }
 0x1f9   : > { %v8224_v2 = vadd.f32 %v8171_v27, %v2841_v49  ;;  %v1742_v27 = vpack.c.b16 %v1712_v5, %v1711_v1  ;;  %v944_v49 = vld [vmem:[#allocation2 + $0x52] sm:$0xff]  ;;  %v881_v5 = vld [vmem:[#allocation2 + $0x61] sm:$0xff] }
 0x1fa   : > { %v2664_v56 = vpop.f32.mrf.mxu2  ;;  %v913_v11 = vpack.c.bf16 %v881_v5, %v881_v5 }
 0x1fb   : > { %v2665_v25 = vadd.f32 %v2664_v56, %v7948_v0  ;;  %v8238_v42 = vpop.f32.mrf.mxu1 }
 0x1fc   : > { %9787 = vst [vmem:[#allocation10_spill] sm:$0xff] %v8238_v42  ;;  %v948_v42 = vld [vmem:[#allocation2 + $0x82] sm:$0xff] }
 0x1fd   : > { %v2754_v16 = vadd.f32 %v8181_v31, %v2665_v25  ;;  %3081 = vmatmul.bf16.gmra.mxu3 %v1742_v27  ;;  %v846_v31 = vpack.c.bf16 %v814_v14, %v814_v14  ;;  %v1613_v25 = vunpack.c.l.b16 %v845_v48  ;;  %v882_v27 = vld [vmem:[#allocation2 + $0x69] sm:$0xff] }
 0x1fe   : > { %v2850_v3 = vpop.f32.mrf.mxu0 }
 0x1ff   : > { %2706 = vmatmul.bf16.gmra.mxu2 %v8179_v57  ;;  %v8233_v18 = vadd.f32 %v2842_v7, %v2754_v16  ;;  %v8235_v23 = vpop.f32.mrf.mxu3  ;;  %v975_v57 = vpack.c.bf16 %v943_v30, %v943_v30  ;;  %v976_v7 = vpack.c.bf16 %v944_v49, %v944_v49  ;;  %v1614_v1 = vunpack.c.l.b16 %v846_v31 }
 0x201   : > { %3165 = vmatmul.bf16.vlgmr.msra.gmra.mxu0 %v1837_v17  ;;  %v1807_v16 = vunpack.c.l.b16 %v975_v57  ;;  %v1808_v17 = vunpack.c.l.b16 %v976_v7  ;;  %v1645_v49 = vpack.c.b16 %v1614_v1, %v1613_v25  ;;  %v815_v7 = vld [vmem:[#allocation2 + $0x48] sm:$0xff] }
 0x202   : > { %v2667_v53 = vpop.f32.mrf.mxu2 }
 0x203   : > { %v2668_v0 = vadd.f32 %v2667_v53, %v7959_v33  ;;  %v914_v53 = vpack.c.bf16 %v882_v27, %v882_v27  ;;  %v1838_v31 = vpack.c.b16 %v1808_v17, %v1807_v16  ;;  %v945_v27 = vld [vmem:[#allocation2 + $0x62] sm:$0xff] }
 0x205   : > { %v2757_v52 = vadd.f32 %v8192_v19, %v2668_v0  ;;  %v1713_v0 = vunpack.c.l.b16 %v913_v11  ;;  %v977_v11 = vpack.c.bf16 %v945_v27, %v945_v27 }
 0x206   : > { %v2852_v56 = vpop.f32.mrf.mxu0 }
 0x207   : > { %v2846_v29 = vadd.f32 %v2845_v41, %v2757_v52  ;;  %v8247_v14 = vpop.f32.mrf.mxu3  ;;  %v1714_v41 = vunpack.c.l.b16 %v914_v53  ;;  %v8251_v52 = vpop.f32.mrf.mxu1 }
 0x209   : > { %v8245_v33 = vadd.f32 %v8204_v13, %v2846_v29  ;;  %v1743_v8 = vpack.c.b16 %v1714_v41, %v1713_v0  ;;  %v816_v29 = vld [vmem:[#allocation2 + $0x50] sm:$0xff]  ;;  %v883_v41 = vld [vmem:[#allocation2 + $0x79] sm:$0xff] }
 0x20a   : > { %v2669_v19 = vpop.f32.mrf.mxu2  ;;  %v848_v16 = vpack.c.bf16 %v816_v29, %v816_v29 }
 0x20b   : > { %v2670_v30 = vadd.f32 %v2669_v19, %v7972_v32  ;;  %v946_v32 = vld [vmem:[#allocation2 + $0x6a] sm:$0xff] }
 0x20c   : > { %v978_v19 = vpack.c.bf16 %v946_v32, %v946_v32 }
 0x20d   : > { %v2759_v48 = vadd.f32 %v8209_v54, %v2670_v30  ;;  %3086 = vmatmul.bf16.gmra.mxu3 %v1743_v8  ;;  %v847_v54 = vpack.c.bf16 %v815_v7, %v815_v7  ;;  %v915_v7 = vpack.c.bf16 %v883_v41, %v883_v41 }
 0x20e   : > { %v2855_v13 = vpop.f32.mrf.mxu0  ;;  %v1810_v8 = vunpack.c.l.b16 %v978_v19  ;;  %v818_v19 = vld [vmem:[#allocation2 + $0x68] sm:$0xff] }
 0x20f   : > { %2987 = vmatmul.bf16.vlgmr.msra.gmra.mxu2 %v1645_v49  ;;  %v8253_v57 = vadd.f32 %v2847_v24, %v2759_v48  ;;  %v8255_v25 = vpop.f32.mrf.mxu3  ;;  %v1615_v30 = vunpack.c.l.b16 %v847_v54  ;;  %v1616_v49 = vunpack.c.l.b16 %v848_v16  ;;  %v8261_v0 = vpop.f32.mrf.mxu1 }
 0x210   : > { %9788 = vst [vmem:[#allocation11_spill] sm:$0xff] %v8261_v0 }
 0x211   : > { %3170 = vmatmul.bf16.gmra.mxu0 %v1838_v31  ;;  %v1809_v31 = vunpack.c.l.b16 %v977_v11  ;;  %v1646_v32 = vpack.c.b16 %v1616_v49, %v1615_v30  ;;  %v817_v11 = vld [vmem:[#allocation2 + $0x60] sm:$0xff] }
 0x212   : > { %v2672_v5 = vpop.f32.mrf.mxu2  ;;  %v849_v49 = vpack.c.bf16 %v817_v11, %v817_v11 }
 0x213   : > { %v2673_v1 = vadd.f32 %v2672_v5, %v7858_v35  ;;  %v884_v35 = vld [vmem:[#allocation2 + $0x81] sm:$0xff]  ;;  %v1839_v16 = vpack.c.b16 %v1810_v8, %v1809_v31 }
 0x215   : > { %v2762_v17 = vadd.f32 %v8219_v44, %v2673_v1  ;;  %v916_v44 = vpack.c.bf16 %v884_v35, %v884_v35  ;;  %v947_v35 = vld [vmem:[#allocation2 + $0x7a] sm:$0xff] }
 0x216   : > { %v8259_v53 = vpop.f32.mrf.mxu0  ;;  %v979_v8 = vpack.c.bf16 %v947_v35, %v947_v35 }
 0x217   : > { %v2851_v24 = vadd.f32 %v2850_v3, %v2762_v17  ;;  %v8266_v5 = vpop.f32.mrf.mxu3  ;;  %v1715_v3 = vunpack.c.l.b16 %v915_v7  ;;  %v1716_v1 = vunpack.c.l.b16 %v916_v44  ;;  %v980_v7 = vpack.c.bf16 %v948_v42, %v948_v42 }
 0x218   : > { %v1617_v44 = vunpack.c.l.b16 %v849_v49 }
 0x219   : > { %v8264_v48 = vadd.f32 %v8226_v43, %v2851_v24  ;;  %v1744_v0 = vpack.c.b16 %v1716_v1, %v1715_v3  ;;  %v2949_v24 = vpop.f32.mrf.mxu1  ;;  %v1812_v1 = vunpack.c.l.b16 %v980_v7  ;;  %v819_v7 = vld [vmem:[#allocation2 + $0x78] sm:$0xff] }
 0x21a   : > { %v2674_v29 = vpop.f32.mrf.mxu2 }
 0x21b   : > { %v2675_v27 = vadd.f32 %v2674_v29, %v7865_v47 }
 0x21d   : > { %v2764_v54 = vadd.f32 %v8228_v38, %v2675_v27  ;;  %3091 = vmatmul.bf16.gmra.mxu3 %v1744_v0  ;;  %v850_v38 = vpack.c.bf16 %v818_v19, %v818_v19 }
 0x21e   : > { %v2860_v17 = vpop.f32.mrf.mxu0 }
 0x21f   : > { %2992 = vmatmul.bf16.gmra.mxu2 %v1646_v32  ;;  %v8270_v43 = vadd.f32 %v2852_v56, %v2764_v54  ;;  %v7132_v56 = vld [vmem:[%s9775_s4 + $0x10] sm:$0xff]  ;;  %v1618_v27 = vunpack.c.l.b16 %v850_v38  ;;  %v886_v54 = vld [vmem:[#allocation2 + $0x99] sm:$0xff] }
 0x220   : > { %v8272_v47 = vpop.f32.mrf.mxu3  ;;  %5459 = vmatpush.bf16.msra.mxu1 %v7132_v56  ;;  %v885_v32 = vld [vmem:[#allocation2 + $0x91] sm:$0xff]  ;;  %v918_v42 = vpack.c.bf16 %v886_v54, %v886_v54  ;;  %v820_v56 = vld [vmem:[#allocation2 + $0x80] sm:$0xff]  ;;  %v851_v54 = vpack.c.bf16 %v819_v7, %v819_v7 }
 0x221   : > { %3175 = vmatmul.bf16.gmra.mxu0 %v1839_v16  ;;  %v917_v16 = vpack.c.bf16 %v885_v32, %v885_v32  ;;  %v8285_v35 = vpop.f32.mrf.mxu1 }
 0x222   : > { %v2677_v41 = vpop.f32.mrf.mxu2  ;;  %9789 = vst [vmem:[#allocation12_spill] sm:$0xff] %v8285_v35 }
 0x223   : > { %v2678_v30 = vadd.f32 %v2677_v41, %v7871_v60  ;;  %v1811_v60 = vunpack.c.l.b16 %v979_v8  ;;  %v1647_v41 = vpack.c.b16 %v1618_v27, %v1617_v44  ;;  %v950_v44 = vld [vmem:[#allocation2 + $0x9a] sm:$0xff] }
 0x225   : > { %v2767_v31 = vadd.f32 %v8235_v23, %v2678_v30  ;;  %v1718_v30 = vunpack.c.l.b16 %v918_v42  ;;  %v1840_v38 = vpack.c.b16 %v1812_v1, %v1811_v60 }
 0x226   : > { %v2862_v0 = vpop.f32.mrf.mxu0 }
 0x227   : > { %v2856_v29 = vadd.f32 %v2855_v13, %v2767_v31  ;;  %v1717_v13 = vunpack.c.l.b16 %v917_v16 }
 0x228   : > { %v8282_v11 = vpop.f32.mrf.mxu3 }
 0x229   : > { %v8280_v3 = vadd.f32 %v8251_v52, %v2856_v29  ;;  %v1745_v31 = vpack.c.b16 %v1718_v30, %v1717_v13  ;;  %v2954_v1 = vpop.f32.mrf.mxu1  ;;  %v887_v13 = vld [vmem:[#allocation2 + $0xa9] sm:$0xff] }
 0x22a   : > { %v2679_v23 = vpop.f32.mrf.mxu2  ;;  %v919_v35 = vpack.c.bf16 %v887_v13, %v887_v13  ;;  %v951_v13 = vld [vmem:[#allocation2 + $0xaa] sm:$0xff] }
 0x22b   : > { %v2680_v19 = vadd.f32 %v2679_v23, %v7875_v58  ;;  %v949_v58 = vld [vmem:[#allocation2 + $0x92] sm:$0xff]  ;;  %v982_v23 = vpack.c.bf16 %v950_v44, %v950_v44 }
 0x22c   : > { %v981_v16 = vpack.c.bf16 %v949_v58, %v949_v58  ;;  %v1719_v58 = vunpack.c.l.b16 %v919_v35 }
 0x22d   : > { %v2769_v49 = vadd.f32 %v8247_v14, %v2680_v19  ;;  %3096 = vmatmul.bf16.gmra.mxu3 %v1745_v31  ;;  %v852_v14 = vpack.c.bf16 %v820_v56, %v820_v56  ;;  %v1619_v19 = vunpack.c.l.b16 %v851_v54  ;;  %v888_v31 = vld [vmem:[#allocation2 + $0xb1] sm:$0xff] }
 0x22e   : > { %v2865_v52 = vpop.f32.mrf.mxu0  ;;  %v920_v56 = vpack.c.bf16 %v888_v31, %v888_v31  ;;  %v7131_v31 = vld [vmem:[%s9775_s4 + $0x8] sm:$0xff] }
 0x22f   : > { %2997 = vmatmul.bf16.gmra.mxu2 %v1647_v41  ;;  %v8289_v8 = vadd.f32 %v8259_v53, %v2769_v49  ;;  %v1620_v41 = vunpack.c.l.b16 %v852_v14  ;;  %v1813_v49 = vunpack.c.l.b16 %v981_v16  ;;  %v821_v16 = vld [vmem:[#allocation2 + $0x90] sm:$0xff]  ;;  %5460 = vmatpush.bf16.msra.mxu1 %v7131_v31 }
 0x230   : > { %v8291_v27 = vpop.f32.mrf.mxu3  ;;  %v1720_v44 = vunpack.c.l.b16 %v920_v56  ;;  %v824_v31 = vld [vmem:[#allocation2 + $0xb0] sm:$0xff] }
 0x231   : > { %3180 = vmatmul.bf16.gmra.mxu0 %v1840_v38  ;;  %v1814_v38 = vunpack.c.l.b16 %v982_v23  ;;  %v822_v23 = vld [vmem:[#allocation2 + $0x98] sm:$0xff] }
 0x232   : > { %v2682_v29 = vpop.f32.mrf.mxu2  ;;  %v1746_v14 = vpack.c.b16 %v1720_v44, %v1719_v58  ;;  %v889_v58 = vld [vmem:[#allocation2 + $0xc1] sm:$0xff] }
 0x233   : > { %v2683_v32 = vadd.f32 %v2682_v29, %v7887_v20  ;;  %v1648_v29 = vpack.c.b16 %v1620_v41, %v1619_v19  ;;  %v854_v41 = vpack.c.bf16 %v822_v23, %v822_v23 }
 0x235   : > { %v2772_v60 = vadd.f32 %v8255_v25, %v2683_v32  ;;  %v1841_v32 = vpack.c.b16 %v1814_v38, %v1813_v49  ;;  %v983_v38 = vpack.c.bf16 %v951_v13, %v951_v13 }
 0x236   : > { %v8295_v53 = vpop.f32.mrf.mxu0 }
 0x237   : > { %v2861_v42 = vadd.f32 %v2860_v17, %v2772_v60  ;;  %v8305_v60 = vpop.f32.mrf.mxu1 }
 0x238   : > { %v8299_v7 = vpop.f32.mrf.mxu3 }
 0x239   : > { %v8297_v30 = vadd.f32 %v2949_v24, %v2861_v42 }
 0x23a   : > { %v2684_v20 = vpop.f32.mrf.mxu2 }
 0x23b   : > { %v2685_v25 = vadd.f32 %v2684_v20, %v7896_v21  ;;  %v952_v21 = vld [vmem:[#allocation2 + $0xb2] sm:$0xff] }
 0x23d   : > { %v2774_v17 = vadd.f32 %v8266_v5, %v2685_v25  ;;  %3101 = vmatmul.bf16.gmra.mxu3 %v1746_v14  ;;  %v853_v5 = vpack.c.bf16 %v821_v16, %v821_v16  ;;  %v890_v14 = vld [vmem:[#allocation2 + $0xc9] sm:$0xff] }
 0x23e   : > { %v2870_v54 = vpop.f32.mrf.mxu0 }
 0x23f   : > { %3002 = vmatmul.bf16.gmra.mxu2 %v1648_v29  ;;  %v8303_v24 = vadd.f32 %v2862_v0, %v2774_v17  ;;  %v984_v0 = vpack.c.bf16 %v952_v21, %v952_v21  ;;  %v1621_v25 = vunpack.c.l.b16 %v853_v5  ;;  %v1622_v29 = vunpack.c.l.b16 %v854_v41 }
 0x240   : > { %v8307_v19 = vpop.f32.mrf.mxu3  ;;  %v1815_v17 = vunpack.c.l.b16 %v983_v38 }
 0x241   : > { %3185 = vmatmul.bf16.gmra.mxu0 %v1841_v32  ;;  %v1816_v32 = vunpack.c.l.b16 %v984_v0  ;;  %v1649_v21 = vpack.c.b16 %v1622_v29, %v1621_v25  ;;  %v823_v0 = vld [vmem:[#allocation2 + $0xa8] sm:$0xff] }
 0x242   : > { %v2687_v42 = vpop.f32.mrf.mxu2  ;;  %v855_v29 = vpack.c.bf16 %v823_v0, %v823_v0 }
 0x243   : > { %v2688_v35 = vadd.f32 %v2687_v42, %v7903_v45  ;;  %v2959_v45 = vpop.f32.mrf.mxu1  ;;  %v922_v42 = vpack.c.bf16 %v890_v14, %v890_v14  ;;  %v1842_v41 = vpack.c.b16 %v1816_v32, %v1815_v17  ;;  %v954_v14 = vld [vmem:[#allocation2 + $0xca] sm:$0xff] }
 0x245   : > { %v2777_v49 = vadd.f32 %v8272_v47, %v2688_v35  ;;  %v921_v47 = vpack.c.bf16 %v889_v58, %v889_v58  ;;  %v953_v58 = vld [vmem:[#allocation2 + $0xc2] sm:$0xff] }
 0x246   : > { %v8314_v20 = vpop.f32.mrf.mxu0 }
 0x247   : > { %v2866_v56 = vadd.f32 %v2865_v52, %v2777_v49  ;;  %v1721_v35 = vunpack.c.l.b16 %v921_v47  ;;  %v1722_v52 = vunpack.c.l.b16 %v922_v42  ;;  %v985_v47 = vpack.c.bf16 %v953_v58, %v953_v58 }
 0x248   : > { %v8318_v23 = vpop.f32.mrf.mxu3 }
 0x249   : > { %v8316_v44 = vadd.f32 %v2954_v1, %v2866_v56  ;;  %v1747_v1 = vpack.c.b16 %v1722_v52, %v1721_v35  ;;  %v891_v35 = vld [vmem:[#allocation2 + $0xd9] sm:$0xff] }
 0x24a   : > { %v2689_v16 = vpop.f32.mrf.mxu2 }
 0x24b   : > { %v2690_v13 = vadd.f32 %v2689_v16, %v7911_v9  ;;  %v8328_v17 = vpop.f32.mrf.mxu1 }
 0x24d   : > { %v2779_v5 = vadd.f32 %v8282_v11, %v2690_v13  ;;  %3106 = vmatmul.bf16.gmra.mxu3 %v1747_v1  ;;  %v856_v11 = vpack.c.bf16 %v824_v31, %v824_v31  ;;  %v1623_v13 = vunpack.c.l.b16 %v855_v29  ;;  %v892_v1 = vld [vmem:[#allocation2 + $0xe1] sm:$0xff] }
 0x24e   : > { %v2875_v49 = vpop.f32.mrf.mxu0 }
 0x24f   : > { %3007 = vmatmul.bf16.gmra.mxu2 %v1649_v21  ;;  %v8323_v38 = vadd.f32 %v8295_v53, %v2779_v5  ;;  %v986_v53 = vpack.c.bf16 %v954_v14, %v954_v14  ;;  %v1624_v21 = vunpack.c.l.b16 %v856_v11  ;;  %v1817_v5 = vunpack.c.l.b16 %v985_v47 }
 0x250   : > { %v8325_v9 = vpop.f32.mrf.mxu3 }
 0x251   : > { %3190 = vmatmul.bf16.gmra.mxu0 %v1842_v41  ;;  %v1818_v41 = vunpack.c.l.b16 %v986_v53  ;;  %v1650_v58 = vpack.c.b16 %v1624_v21, %v1623_v13  ;;  %v825_v53 = vld [vmem:[#allocation2 + $0xc0] sm:$0xff] }
 0x252   : > { %v2692_v56 = vpop.f32.mrf.mxu2  ;;  %v857_v21 = vpack.c.bf16 %v825_v53, %v825_v53 }
 0x253   : > { %v2693_v25 = vadd.f32 %v2692_v56, %v7926_v10  ;;  %v923_v10 = vpack.c.bf16 %v891_v35, %v891_v35  ;;  %v924_v56 = vpack.c.bf16 %v892_v1, %v892_v1  ;;  %v1843_v29 = vpack.c.b16 %v1818_v41, %v1817_v5  ;;  %v2964_v11 = vpop.f32.mrf.mxu1  ;;  %v955_v1 = vld [vmem:[#allocation2 + $0xda] sm:$0xff] }
 0x254   : > { %v987_v41 = vpack.c.bf16 %v955_v1, %v955_v1 }
 0x255   : > { %v2782_v32 = vadd.f32 %v8291_v27, %v2693_v25  ;;  %v1723_v14 = vunpack.c.l.b16 %v923_v10  ;;  %v1724_v25 = vunpack.c.l.b16 %v924_v56 }
 0x256   : > { %v8331_v16 = vpop.f32.mrf.mxu0 }
 0x257   : > { %v2871_v42 = vadd.f32 %v2870_v54, %v2782_v32 }
 0x258   : > { %v8335_v31 = vpop.f32.mrf.mxu3 }
 0x259   : > { %v8333_v52 = vadd.f32 %v2959_v45, %v2871_v42  ;;  %v1748_v45 = vpack.c.b16 %v1724_v25, %v1723_v14  ;;  %v826_v42 = vld [vmem:[#allocation2 + $0xc8] sm:$0xff] }
 0x25a   : > { %v2694_v0 = vpop.f32.mrf.mxu2  ;;  %v858_v10 = vpack.c.bf16 %v826_v42, %v826_v42 }
 0x25b   : > { %v2695_v27 = vadd.f32 %v2694_v0, %v7937_v37  ;;  %v956_v37 = vld [vmem:[#allocation2 + $0xe2] sm:$0xff]  ;;  %v8351_v25 = vpop.f32.mrf.mxu1 }
 0x25c   : > { %v988_v0 = vpack.c.bf16 %v956_v37, %v956_v37  ;;  %v1626_v14 = vunpack.c.l.b16 %v858_v10  ;;  %9790 = vst [vmem:[#allocation13_spill] sm:$0xff] %v8351_v25 }
 0x25d   : > { %v2784_v54 = vadd.f32 %v8299_v7, %v2695_v27  ;;  %3111 = vmatmul.bf16.gmra.mxu3 %v1748_v45 }
 0x25e   : > { %v2880_v32 = vpop.f32.mrf.mxu0  ;;  %v1820_v45 = vunpack.c.l.b16 %v988_v0  ;;  %v827_v0 = vld [vmem:[#allocation2 + $0xd8] sm:$0xff] }
 0x25f   : > { %3012 = vmatmul.bf16.gmra.mxu2 %v1650_v58  ;;  %v8340_v47 = vadd.f32 %v8314_v20, %v2784_v54  ;;  %v7130_v20 = vld [vmem:[%s9775_s4] sm:$0xff]  ;;  %v1625_v58 = vunpack.c.l.b16 %v857_v21 }
 0x260   : > { %v8343_v7 = vpop.f32.mrf.mxu3  ;;  %5461 = vmatpush.bf16.msra.mxu1 %v7130_v20 }
 0x261   : > { %3195 = vmatmul.bf16.gmra.mxu0 %v1843_v29  ;;  %v1819_v29 = vunpack.c.l.b16 %v987_v41  ;;  %v1651_v37 = vpack.c.b16 %v1626_v14, %v1625_v58  ;;  %v957_v14 = vld [vmem:[#allocation2 + $0xf2] sm:$0xff] }
 0x262   : > { %v2697_v35 = vpop.f32.mrf.mxu2 }
 0x263   : > { %v2698_v13 = vadd.f32 %v2697_v35, %v7946_v34  ;;  %v893_v34 = vld [vmem:[#allocation2 + $0xf1] sm:$0xff]  ;;  %v2969_v58 = vpop.f32.mrf.mxu1 }
 0x264   : > { %v925_v53 = vpack.c.bf16 %v893_v34, %v893_v34  ;;  %v958_v34 = vld [vmem:[#allocation2 + $0xfa] sm:$0xff] }
 0x265   : > { %v2787_v5 = vadd.f32 %v8307_v19, %v2698_v13  ;;  %v894_v19 = vld [vmem:[#allocation2 + $0xf9] sm:$0xff] }
 0x266   : > { %v8349_v56 = vpop.f32.mrf.mxu0  ;;  %v926_v35 = vpack.c.bf16 %v894_v19, %v894_v19 }
 0x267   : > { %v2876_v27 = vadd.f32 %v2875_v49, %v2787_v5  ;;  %v1725_v49 = vunpack.c.l.b16 %v925_v53  ;;  %v1844_v5 = vpack.c.b16 %v1820_v45, %v1819_v29  ;;  %v859_v53 = vpack.c.bf16 %v827_v0, %v827_v0 }
 0x268   : > { %v8356_v13 = vpop.f32.mrf.mxu3  ;;  %v1726_v21 = vunpack.c.l.b16 %v926_v35  ;;  %v990_v35 = vpack.c.bf16 %v958_v34, %v958_v34 }
 0x269   : > { %v8353_v54 = vadd.f32 %v2964_v11, %v2876_v27  ;;  %v828_v27 = vld [vmem:[#allocation2 + $0xe0] sm:$0xff] }
 0x26a   : > { %v2699_v42 = vpop.f32.mrf.mxu2  ;;  %v1749_v11 = vpack.c.b16 %v1726_v21, %v1725_v49  ;;  %v7344_v21 = vld [vmem:[#allocation2] sm:$0xff] }
 0x26b   : > { %9791 = vst [vmem:[#allocation14_spill] sm:$0xff] %v8353_v54  ;;  %v2700_v1 = vadd.f32 %v2699_v42, %v7955_v22  ;;  %v989_v42 = vpack.c.bf16 %v957_v14, %v957_v14 }
 0x26d   : > { %v2789_v10 = vadd.f32 %v8318_v23, %v2700_v1  ;;  %3116 = vmatmul.bf16.gmra.mxu3 %v1749_v11  ;;  %v860_v23 = vpack.c.bf16 %v828_v27, %v828_v27  ;;  %v1821_v25 = vunpack.c.l.b16 %v989_v42  ;;  %v896_v27 = vld [vmem:[#allocation2 + $0x111] sm:$0xff] }
 0x26e   : > { %v8359_v20 = vpop.f32.mrf.mxu0  ;;  %v928_v54 = vpack.c.bf16 %v896_v27, %v896_v27 }
 0x26f   : > { %3017 = vmatmul.bf16.gmra.mxu2 %v1651_v37  ;;  %v8362_v41 = vadd.f32 %v8331_v16, %v2789_v10  ;;  %v1627_v37 = vunpack.c.l.b16 %v859_v53  ;;  %v1628_v49 = vunpack.c.l.b16 %v860_v23  ;;  %v3469_v10 = vpack.c.bf16 %v7344_v21, %v7344_v21 }
 0x270   : > { %v8365_v29 = vpop.f32.mrf.mxu3  ;;  %v1728_v23 = vunpack.c.l.b16 %v928_v54  ;;  %v960_v54 = vld [vmem:[#allocation2 + $0x112] sm:$0xff] }
 0x271   : > { %9792 = vst [vmem:[#allocation15_spill] sm:$0xff] %v8362_v41  ;;  %3200 = vmatmul.bf16.gmra.mxu0 %v1844_v5  ;;  %v895_v5 = vld [vmem:[#allocation2 + $0x109] sm:$0xff]  ;;  %v4046_v0 = vunpack.c.l.b16 %v3469_v10  ;;  %v1652_v14 = vpack.c.b16 %v1628_v49, %v1627_v37  ;;  %v830_v49 = vld [vmem:[#allocation2 + $0xf8] sm:$0xff]  ;;  %v992_v27 = vpack.c.bf16 %v960_v54, %v960_v54 }
 0x272   : > { %v2702_v22 = vpop.f32.mrf.mxu2  ;;  %v927_v41 = vpack.c.bf16 %v895_v5, %v895_v5  ;;  %v829_v37 = vld [vmem:[#allocation2 + $0xf0] sm:$0xff]  ;;  %v862_v5 = vpack.c.bf16 %v830_v49, %v830_v49  ;;  %v9796_v54 = vld [vmem:[#allocation8_spill] sm:$0xff] }
 0x273   : > { %v2703_v19 = vadd.f32 %v2702_v22, %v7970_v62  ;;  %v1822_v62 = vunpack.c.l.b16 %v990_v35  ;;  %v861_v10 = vpack.c.bf16 %v829_v37, %v829_v37  ;;  %v1824_v37 = vunpack.c.l.b16 %v992_v27  ;;  %v7161_v27 = vld [vmem:[%s9775_s4 + $0xf8] sm:$0xff] }
 0x274   : > { %v1727_v53 = vunpack.c.l.b16 %v927_v41  ;;  %v9795_v41 = vld [vmem:[#allocation7_spill] sm:$0xff]  ;;  %5721 = vmatpush.bf16.msrb.mxu0 %v7161_v27 }
 0x275   : > { %v2792_v45 = vadd.f32 %v8325_v9, %v2703_v19  ;;  %v8377_v19 = vpop.f32.mrf.mxu1  ;;  %v900_v27 = vld [vmem:[#allocation2 + $0x141] sm:$0xff] }
 0x276   : > { %v8368_v16 = vpop.f32.mrf.mxu0  ;;  %9793 = vst [vmem:[#allocation16_spill] sm:$0xff] %v8377_v19  ;;  %v1750_v35 = vpack.c.b16 %v1728_v23, %v1727_v53  ;;  %v1629_v53 = vunpack.c.l.b16 %v861_v10  ;;  %v1630_v23 = vunpack.c.l.b16 %v862_v5 }
 0x277   : > { %v2881_v1 = vadd.f32 %v2880_v32, %v2792_v45  ;;  %v8375_v32 = vpack.c.b16 %v4046_v0, %v4046_v0  ;;  %v1845_v45 = vpack.c.b16 %v1822_v62, %v1821_v25  ;;  %v959_v25 = vld [vmem:[#allocation2 + $0x10a] sm:$0xff] }
 0x278   : > { %v8373_v34 = vpop.f32.mrf.mxu3  ;;  %v991_v0 = vpack.c.bf16 %v959_v25, %v959_v25 }
 0x279   : > { %v8370_v11 = vadd.f32 %v2969_v58, %v2881_v1  ;;  %5462 = vmatmul.bf16.vlgmr.msra.gmra.mxu1 %v8375_v32  ;;  %v7145_v1 = vld [vmem:[%s9775_s4 + $0x78] sm:$0xff] }
 0x27a   : > { %v2704_v22 = vpop.f32.mrf.mxu2  ;;  %5543 = vmatpush.bf16.msrb.mxu2 %v7145_v1  ;;  %v1823_v1 = vunpack.c.l.b16 %v991_v0 }
 0x27b   : > { %v2705_v9 = vadd.f32 %v2704_v22, %v7984_v26 }
 0x27c   : > { %v1846_v19 = vpack.c.b16 %v1824_v37, %v1823_v1 }
 0x27d   : > { %v2794_v58 = vadd.f32 %v8335_v31, %v2705_v9  ;;  %3121 = vmatmul.bf16.gmra.mxu3 %v1750_v35  ;;  %v2974_v22 = vpop.f32.mrf.mxu1 }
 0x27e   : > { %v8381_v42 = vpop.f32.mrf.mxu0 }
 0x27f   : > { %3022 = vmatmul.bf16.gmra.mxu2 %v1652_v14  ;;  %v8384_v26 = vadd.f32 %v8349_v56, %v2794_v58  ;;  %v7153_v58 = vld [vmem:[%s9775_s4 + $0xb8] sm:$0xff] }
 0x280   : > { %v8390_v62 = vpop.f32.mrf.mxu3  ;;  %5632 = vmatpush.bf16.msrb.mxu3 %v7153_v58  ;;  %v961_v58 = vld [vmem:[#allocation2 + $0x122] sm:$0xff] }
 0x281   : > { %9794 = vst [vmem:[#allocation17_spill] sm:$0xff] %v8384_v26  ;;  %3205 = vmatmul.bf16.gmra.mxu0 %v1845_v45  ;;  %v897_v45 = vld [vmem:[#allocation2 + $0x121] sm:$0xff] }
 0x282   : > { %v2707_v31 = vpop.f32.mrf.mxu2  ;;  %v929_v49 = vpack.c.bf16 %v897_v45, %v897_v45  ;;  %v962_v45 = vld [vmem:[#allocation2 + $0x12a] sm:$0xff] }
 0x283   : > { %v2708_v21 = vadd.f32 %v2707_v31, %v9795_v41 }
 0x284   : > { %v1729_v10 = vunpack.c.l.b16 %v929_v49 }
 0x285   : > { %v2797_v56 = vadd.f32 %v8343_v7, %v2708_v21  ;;  %v898_v7 = vld [vmem:[#allocation2 + $0x129] sm:$0xff]  ;;  %v1653_v21 = vpack.c.b16 %v1630_v23, %v1629_v53 }
 0x286   : > { %v8393_v9 = vpop.f32.mrf.mxu0  ;;  %v930_v25 = vpack.c.bf16 %v898_v7, %v898_v7  ;;  %v831_v53 = vld [vmem:[#allocation2 + $0x108] sm:$0xff]  ;;  %v832_v23 = vld [vmem:[#allocation2 + $0x110] sm:$0xff] }
 0x287   : > { %v2886_v14 = vadd.f32 %v8359_v20, %v2797_v56  ;;  %v863_v1 = vpack.c.bf16 %v831_v53, %v831_v53  ;;  %v864_v37 = vpack.c.bf16 %v832_v23, %v832_v23  ;;  %v932_v23 = vpack.c.bf16 %v900_v27, %v900_v27 }
 0x288   : > { %v8402_v20 = vpop.f32.mrf.mxu3  ;;  %v1730_v5 = vunpack.c.l.b16 %v930_v25  ;;  %v993_v25 = vpack.c.bf16 %v961_v58, %v961_v58 }
 0x289   : > { %v8399_v35 = vadd.f32 %v2974_v22, %v2886_v14  ;;  %v7169_v14 = vld [vmem:[%s9775_s4 + $0x138] sm:$0xff] }
 0x28a   : > { %v2709_v31 = vpop.f32.mrf.mxu2  ;;  %v1751_v22 = vpack.c.b16 %v1730_v5, %v1729_v10  ;;  %5810 = vmatpush.bf16.msrb.mxu1 %v7169_v14  ;;  %v1632_v10 = vunpack.c.l.b16 %v864_v37  ;;  %v899_v5 = vld [vmem:[#allocation2 + $0x139] sm:$0xff] }
 0x28b   : > { %v2710_v41 = vadd.f32 %v2709_v31, %v9796_v54  ;;  %v8423_v31 = vld [vmem:[%s9773_s2] ss:$0 sm:$0xff]  ;;  %v931_v14 = vpack.c.bf16 %v899_v5, %v899_v5 }
 0x28d   : > { %v2799_v56 = vadd.f32 %v8356_v13, %v2710_v41  ;;  %3126 = vmatmul.bf16.gmra.mxu3 %v1751_v22 }
 0x28e   : > { %v8405_v26 = vpop.f32.mrf.mxu0 }
 0x28f   : > { %3027 = vmatmul.bf16.gmra.mxu2 %v1653_v21  ;;  %v8408_v0 = vadd.f32 %v8368_v16, %v2799_v56  ;;  %v1631_v21 = vunpack.c.l.b16 %v863_v1  ;;  %v1825_v56 = vunpack.c.l.b16 %v993_v25 }
 0x290   : > { %v8417_v7 = vpop.f32.mrf.mxu3 }
 0x291   : > { %9797 = vst [vmem:[#allocation7_spill] sm:$0xff] %v8408_v0  ;;  %3210 = vmatmul.bf16.gmra.mxu0 %v1846_v19  ;;  %v994_v19 = vpack.c.bf16 %v962_v45, %v962_v45  ;;  %v1654_v58 = vpack.c.b16 %v1632_v10, %v1631_v21  ;;  %v833_v21 = vld [vmem:[#allocation2 + $0x120] sm:$0xff]  ;;  %v834_v10 = vld [vmem:[#allocation2 + $0x128] sm:$0xff] }
 0x292   : > { %v2988_v13 = vpop.f32.mrf.mxu2 }
 0x293   : > { %v2989_v16 = vadd.f32 %v2988_v13, %v8032_v36  ;;  %v8431_v36 = vld [vmem:[%s9774_s3] ss:$0 sm:$0xff]  ;;  %v1826_v22 = vunpack.c.l.b16 %v994_v19 }
 0x295   : > { %v3078_v49 = vadd.f32 %v8365_v29, %v2989_v16  ;;  %v1731_v16 = vunpack.c.l.b16 %v931_v14  ;;  %v1847_v0 = vpack.c.b16 %v1826_v22, %v1825_v56  ;;  %v964_v56 = vld [vmem:[#allocation2 + $0x142] sm:$0xff]  ;;  %v866_v14 = vpack.c.bf16 %v834_v10, %v834_v10 }
 0x296   : > { %v8425_v54 = vpop.f32.mrf.mxu0 }
 0x297   : > { %v3167_v41 = vadd.f32 %v8381_v42, %v3078_v49  ;;  %v1732_v49 = vunpack.c.l.b16 %v932_v23 }
 0x298   : > { %v8436_v45 = vpop.f32.mrf.mxu3 }
 0x299   : > { %v3250_v29 = vmul.f32 %v8423_v31, %v3167_v41  ;;  %v1752_v25 = vpack.c.b16 %v1732_v49, %v1731_v16 }
 0x29a   : > { %v2990_v53 = vpop.f32.mrf.mxu2 }
 0x29b   : > { %v3286_v13 = vadd.f32 %v8431_v36, %v3250_v29  ;;  %v2991_v42 = vadd.f32 %v2990_v53, %v8050_v63  ;;  %v7144_v63 = vld [vmem:[%s9775_s4 + $0x70] sm:$0xff]  ;;  %v963_v29 = vld [vmem:[#allocation2 + $0x13a] sm:$0xff] }
 0x29c   : > { %5544 = vmatpush.bf16.msrb.mxu2 %v7144_v63 }
 0x29d   : > { %v3318_v1 = vmax.f32 %v3286_v13, 0.0  ;;  %v3080_v37 = vadd.f32 %v8373_v34, %v2991_v42  ;;  %3131 = vmatmul.bf16.gmra.mxu3 %v1752_v25  ;;  %v995_v42 = vpack.c.bf16 %v963_v29, %v963_v29 }
 0x29e   : > { %v8439_v41 = vpop.f32.mrf.mxu0 }
 0x29f   : > { %3405 = vst [vmem:[#allocation3 + $0x19] sm:$0xff] %v3318_v1  ;;  %v3169_v19 = vadd.f32 %v8393_v9, %v3080_v37  ;;  %3032 = vmatmul.bf16.gmra.mxu2 %v1654_v58  ;;  %v865_v9 = vpack.c.bf16 %v833_v21, %v833_v21  ;;  %v996_v58 = vpack.c.bf16 %v964_v56, %v964_v56  ;;  %v1634_v1 = vunpack.c.l.b16 %v866_v14  ;;  %v901_v37 = vld [vmem:[#allocation2 + $0x151] sm:$0xff] }
 0x2a0   : > { %v8448_v53 = vpop.f32.mrf.mxu3 }
 0x2a1   : > { %v3251_v5 = vmul.f32 %v8423_v31, %v3169_v19  ;;  %3215 = vmatmul.bf16.gmra.mxu0 %v1847_v0  ;;  %v1633_v49 = vunpack.c.l.b16 %v865_v9  ;;  %v1827_v19 = vunpack.c.l.b16 %v995_v42  ;;  %v1828_v63 = vunpack.c.l.b16 %v996_v58 }
 0x2a2   : > { %v2993_v34 = vpop.f32.mrf.mxu2 }
 0x2a3   : > { %v3287_v22 = vadd.f32 %v8431_v36, %v3251_v5  ;;  %v2994_v27 = vadd.f32 %v2993_v34, %v8065_v61  ;;  %v7152_v61 = vld [vmem:[%s9775_s4 + $0xb0] sm:$0xff]  ;;  %v933_v5 = vpack.c.bf16 %v901_v37, %v901_v37  ;;  %v1655_v56 = vpack.c.b16 %v1634_v1, %v1633_v49  ;;  %v836_v1 = vld [vmem:[#allocation2 + $0x140] sm:$0xff] }
 0x2a4   : > { %5633 = vmatpush.bf16.msrb.mxu3 %v7152_v61  ;;  %v1848_v42 = vpack.c.b16 %v1828_v63, %v1827_v19  ;;  %v7160_v49 = vld [vmem:[%s9775_s4 + $0xf0] sm:$0xff] }
 0x2a5   : > { %v3319_v23 = vmax.f32 %v3287_v22, 0.0  ;;  %v3083_v13 = vadd.f32 %v8390_v62, %v2994_v27  ;;  %v902_v62 = vld [vmem:[#allocation2 + $0x159] sm:$0xff]  ;;  %v1733_v27 = vunpack.c.l.b16 %v933_v5  ;;  %5722 = vmatpush.bf16.msrb.mxu0 %v7160_v49 }
 0x2a6   : > { %v8451_v16 = vpop.f32.mrf.mxu0  ;;  %v3439_v10 = vld [vmem:[#allocation3 + $0x18] sm:$0xff]  ;;  %v934_v34 = vpack.c.bf16 %v902_v62, %v902_v62  ;;  %v966_v5 = vld [vmem:[#allocation2 + $0x15a] sm:$0xff] }
 0x2a7   : > { %3406 = vst [vmem:[#allocation3 + $0x21] sm:$0xff] %v3319_v23  ;;  %v3172_v0 = vadd.f32 %v8405_v26, %v3083_v13  ;;  %v3471_v13 = vpack.c.bf16 %v3439_v10, %v3439_v10  ;;  %v965_v10 = vld [vmem:[#allocation2 + $0x152] sm:$0xff] }
 0x2a8   : > { %v8460_v22 = vpop.f32.mrf.mxu3  ;;  %v1734_v9 = vunpack.c.l.b16 %v934_v34 }
 0x2a9   : > { %v3252_v25 = vmul.f32 %v8423_v31, %v3172_v0  ;;  %v4048_v63 = vunpack.c.l.b16 %v3471_v13  ;;  %v998_v13 = vpack.c.bf16 %v966_v5, %v966_v5 }
 0x2aa   : > { %v2995_v21 = vpop.f32.mrf.mxu2  ;;  %v1753_v61 = vpack.c.b16 %v1734_v9, %v1733_v27 }
 0x2ab   : > { %v3288_v29 = vadd.f32 %v8431_v36, %v3252_v25  ;;  %v2996_v26 = vadd.f32 %v2995_v21, %v8084_v59  ;;  %v835_v59 = vld [vmem:[#allocation2 + $0x138] sm:$0xff]  ;;  %v1830_v49 = vunpack.c.l.b16 %v998_v13 }
 0x2ac   : > { %v867_v21 = vpack.c.bf16 %v835_v59, %v835_v59 }
 0x2ad   : > { %v3320_v14 = vmax.f32 %v3288_v29, 0.0  ;;  %v3085_v23 = vadd.f32 %v8402_v20, %v2996_v26  ;;  %v7168_v20 = vld [vmem:[%s9775_s4 + $0x130] sm:$0xff]  ;;  %3136 = vmatmul.bf16.gmra.mxu3 %v1753_v61 }
 0x2ae   : > { %v3440_v58 = vld [vmem:[#allocation3 + $0x20] sm:$0xff]  ;;  %v8463_v0 = vpop.f32.mrf.mxu0  ;;  %5811 = vmatpush.bf16.msrb.mxu1 %v7168_v20  ;;  %v1635_v61 = vunpack.c.l.b16 %v867_v21 }
 0x2af   : > { %3407 = vst [vmem:[#allocation3 + $0x31] sm:$0xff] %v3320_v14  ;;  %v3174_v37 = vadd.f32 %v8425_v54, %v3085_v23  ;;  %3037 = vmatmul.bf16.gmra.mxu2 %v1655_v56  ;;  %v3472_v25 = vpack.c.bf16 %v3440_v58, %v3440_v58  ;;  %v868_v56 = vpack.c.bf16 %v836_v1, %v836_v1  ;;  %v904_v20 = vld [vmem:[#allocation2 + $0x171] sm:$0xff] }
 0x2b0   : > { %v8477_v27 = vpop.f32.mrf.mxu3  ;;  %v997_v23 = vpack.c.bf16 %v965_v10, %v965_v10 }
 0x2b1   : > { %v3253_v19 = vmul.f32 %v8423_v31, %v3174_v37  ;;  %v4049_v62 = vunpack.c.l.b16 %v3472_v25  ;;  %3220 = vmatmul.bf16.gmra.mxu0 %v1848_v42  ;;  %v1636_v37 = vunpack.c.l.b16 %v868_v56 }
 0x2b2   : > { %v2998_v54 = vpop.f32.mrf.mxu2  ;;  %v1829_v59 = vunpack.c.l.b16 %v997_v23 }
 0x2b3   : > { %v3289_v34 = vadd.f32 %v8431_v36, %v3253_v19  ;;  %v2999_v29 = vadd.f32 %v2998_v54, %v8099_v40  ;;  %v8475_v26 = vpack.c.b16 %v4049_v62, %v4048_v63  ;;  %v903_v40 = vld [vmem:[#allocation2 + $0x169] sm:$0xff]  ;;  %v936_v63 = vpack.c.bf16 %v904_v20, %v904_v20 }
 0x2b4   : > { %v1656_v10 = vpack.c.b16 %v1636_v37, %v1635_v61  ;;  %v7143_v61 = vld [vmem:[%s9775_s4 + $0x68] sm:$0xff]  ;;  %v838_v37 = vld [vmem:[#allocation2 + $0x158] sm:$0xff] }
 0x2b5   : > { %v3321_v9 = vmax.f32 %v3289_v34, 0.0  ;;  %v3088_v14 = vadd.f32 %v8417_v7, %v2999_v29  ;;  %5467 = vmatmul.bf16.gmra.mxu1 %v8475_v26  ;;  %v935_v7 = vpack.c.bf16 %v903_v40, %v903_v40  ;;  %v1736_v21 = vunpack.c.l.b16 %v936_v63  ;;  %5545 = vmatpush.bf16.msrb.mxu2 %v7143_v61 }
 0x2b6   : > { %v8481_v42 = vpop.f32.mrf.mxu0  ;;  %v3441_v19 = vld [vmem:[#allocation3 + $0x30] sm:$0xff] }
 0x2b7   : > { %3408 = vst [vmem:[#allocation3 + $0x39] sm:$0xff] %v3321_v9  ;;  %v3177_v58 = vadd.f32 %v8439_v41, %v3088_v14  ;;  %v1735_v41 = vunpack.c.l.b16 %v935_v7  ;;  %v3473_v56 = vpack.c.bf16 %v3441_v19, %v3441_v19  ;;  %v1849_v9 = vpack.c.b16 %v1830_v49, %v1829_v59  ;;  %v968_v19 = vld [vmem:[#allocation2 + $0x172] sm:$0xff] }
 0x2b8   : > { %v8487_v5 = vpop.f32.mrf.mxu3 }
 0x2b9   : > { %v3254_v25 = vmul.f32 %v8423_v31, %v3177_v58  ;;  %v1754_v13 = vpack.c.b16 %v1736_v21, %v1735_v41 }
 0x2ba   : > { %v3000_v1 = vpop.f32.mrf.mxu2 }
 0x2bb   : > { %v3290_v62 = vadd.f32 %v8431_v36, %v3254_v25  ;;  %v3001_v54 = vadd.f32 %v3000_v1, %v8118_v4  ;;  %v837_v4 = vld [vmem:[#allocation2 + $0x150] sm:$0xff]  ;;  %v4050_v25 = vunpack.c.l.b16 %v3473_v56 }
 0x2bc   : > { %v869_v20 = vpack.c.bf16 %v837_v4, %v837_v4  ;;  %v967_v1 = vld [vmem:[#allocation2 + $0x16a] sm:$0xff] }
 0x2bd   : > { %v3322_v34 = vmax.f32 %v3290_v62, 0.0  ;;  %v3090_v29 = vadd.f32 %v8436_v45, %v3001_v54  ;;  %3141 = vmatmul.bf16.gmra.mxu3 %v1754_v13  ;;  %v870_v62 = vpack.c.bf16 %v838_v37, %v838_v37  ;;  %v999_v21 = vpack.c.bf16 %v967_v1, %v967_v1  ;;  %v905_v13 = vld [vmem:[#allocation2 + $0x181] sm:$0xff]  ;;  %v906_v4 = vld [vmem:[#allocation2 + $0x189] sm:$0xff] }
 0x2be   : > { %v3442_v14 = vld [vmem:[#allocation3 + $0x38] sm:$0xff]  ;;  %v8490_v23 = vpop.f32.mrf.mxu0 }
 0x2bf   : > { %3409 = vst [vmem:[#allocation3 + $0x49] sm:$0xff] %v3322_v34  ;;  %v3179_v58 = vadd.f32 %v8451_v16, %v3090_v29  ;;  %3042 = vmatmul.bf16.gmra.mxu2 %v1656_v10  ;;  %v3474_v40 = vpack.c.bf16 %v3442_v14, %v3442_v14  ;;  %v1000_v34 = vpack.c.bf16 %v968_v19, %v968_v19  ;;  %v1638_v14 = vunpack.c.l.b16 %v870_v62 }
 0x2c0   : > { %v8501_v54 = vpop.f32.mrf.mxu3 }
 0x2c1   : > { %v3255_v45 = vmul.f32 %v8423_v31, %v3179_v58  ;;  %v4051_v59 = vunpack.c.l.b16 %v3474_v40  ;;  %3225 = vmatmul.bf16.gmra.mxu0 %v1849_v9  ;;  %v1637_v9 = vunpack.c.l.b16 %v869_v20  ;;  %v1832_v40 = vunpack.c.l.b16 %v1000_v34  ;;  %v839_v34 = vld [vmem:[#allocation2 + $0x168] sm:$0xff] }
 0x2c2   : > { %v3003_v49 = vpop.f32.mrf.mxu2 }
 0x2c3   : > { %v3291_v16 = vadd.f32 %v8431_v36, %v3255_v45  ;;  %v3004_v7 = vadd.f32 %v3003_v49, %v8133_v51  ;;  %v8499_v63 = vpack.c.b16 %v4051_v59, %v4050_v25  ;;  %v7151_v51 = vld [vmem:[%s9775_s4 + $0xa8] sm:$0xff]  ;;  %v937_v45 = vpack.c.bf16 %v905_v13, %v905_v13 }
 0x2c4   : > { %5634 = vmatpush.bf16.msrb.mxu3 %v7151_v51  ;;  %v938_v25 = vpack.c.bf16 %v906_v4, %v906_v4  ;;  %v1657_v49 = vpack.c.b16 %v1638_v14, %v1637_v9  ;;  %v840_v9 = vld [vmem:[#allocation2 + $0x170] sm:$0xff]  ;;  %v7159_v14 = vld [vmem:[%s9775_s4 + $0xe8] sm:$0xff] }
 0x2c5   : > { %v3323_v10 = vmax.f32 %v3291_v16, 0.0  ;;  %v3093_v41 = vadd.f32 %v8448_v53, %v3004_v7  ;;  %5472 = vmatmul.bf16.gmra.mxu1 %v8499_v63  ;;  %v1831_v53 = vunpack.c.l.b16 %v999_v21  ;;  %v1737_v1 = vunpack.c.l.b16 %v937_v45  ;;  %5723 = vmatpush.bf16.msrb.mxu0 %v7159_v14 }
 0x2c6   : > { %v8505_v29 = vpop.f32.mrf.mxu0  ;;  %v3443_v37 = vld [vmem:[#allocation3 + $0x48] sm:$0xff]  ;;  %v1738_v19 = vunpack.c.l.b16 %v938_v25 }
 0x2c7   : > { %3410 = vst [vmem:[#allocation3 + $0x51] sm:$0xff] %v3323_v10  ;;  %v3182_v56 = vadd.f32 %v8463_v0, %v3093_v41  ;;  %v3475_v62 = vpack.c.bf16 %v3443_v37, %v3443_v37  ;;  %v1850_v10 = vpack.c.b16 %v1832_v40, %v1831_v53  ;;  %v969_v40 = vld [vmem:[#allocation2 + $0x182] sm:$0xff]  ;;  %v872_v37 = vpack.c.bf16 %v840_v9, %v840_v9 }
 0x2c8   : > { %v8514_v20 = vpop.f32.mrf.mxu3 }
 0x2c9   : > { %v3256_v58 = vmul.f32 %v8423_v31, %v3182_v56  ;;  %v1755_v56 = vpack.c.b16 %v1738_v19, %v1737_v1 }
 0x2ca   : > { %v3005_v61 = vpop.f32.mrf.mxu2 }
 0x2cb   : > { %v3292_v59 = vadd.f32 %v8431_v36, %v3256_v58  ;;  %v3006_v0 = vadd.f32 %v3005_v61, %v8157_v50  ;;  %v4052_v58 = vunpack.c.l.b16 %v3475_v62  ;;  %v871_v61 = vpack.c.bf16 %v839_v34, %v839_v34 }
 0x2cc   : > { %v1640_v62 = vunpack.c.l.b16 %v872_v37 }
 0x2cd   : > { %v3324_v16 = vmax.f32 %v3292_v59, 0.0  ;;  %v3095_v7 = vadd.f32 %v8460_v22, %v3006_v0  ;;  %v7167_v22 = vld [vmem:[%s9775_s4 + $0x128] sm:$0xff]  ;;  %3146 = vmatmul.bf16.gmra.mxu3 %v1755_v56  ;;  %v907_v56 = vld [vmem:[#allocation2 + $0x199] sm:$0xff] }
 0x2ce   : > { %v3444_v41 = vld [vmem:[#allocation3 + $0x50] sm:$0xff]  ;;  %v8517_v21 = vpop.f32.mrf.mxu0  ;;  %5812 = vmatpush.bf16.msrb.mxu1 %v7167_v22 }
 0x2cf   : > { %3411 = vst [vmem:[#allocation3 + $0x61] sm:$0xff] %v3324_v16  ;;  %v3184_v51 = vadd.f32 %v8481_v42, %v3095_v7  ;;  %3047 = vmatmul.bf16.gmra.mxu2 %v1657_v49  ;;  %v3476_v50 = vpack.c.bf16 %v3444_v41, %v3444_v41  ;;  %v970_v42 = vld [vmem:[#allocation2 + $0x18a] sm:$0xff]  ;;  %v1001_v49 = vpack.c.bf16 %v969_v40, %v969_v40  ;;  %v1639_v7 = vunpack.c.l.b16 %v871_v61  ;;  %v7158_v40 = vld [vmem:[%s9775_s4 + $0xe0] sm:$0xff] }
 0x2d0   : > { %v8531_v0 = vpop.f32.mrf.mxu3  ;;  %v1002_v1 = vpack.c.bf16 %v970_v42, %v970_v42  ;;  %5724 = vmatpush.bf16.msrb.mxu0 %v7158_v40 }
 0x2d1   : > { %v3257_v13 = vmul.f32 %v8423_v31, %v3184_v51  ;;  %v4053_v53 = vunpack.c.l.b16 %v3476_v50  ;;  %3230 = vmatmul.bf16.gmra.mxu0 %v1850_v10  ;;  %v1833_v34 = vunpack.c.l.b16 %v1001_v49  ;;  %v908_v51 = vld [vmem:[#allocation2 + $0x1a1] sm:$0xff]  ;;  %v2922_v50 = vadd.f32 %v8115_v28, %v8188_v6 }
 0x2d2   : > { %v3008_v4 = vpop.f32.mrf.mxu2  ;;  %v940_v22 = vpack.c.bf16 %v908_v51, %v908_v51 }
 0x2d3   : > { %v3293_v45 = vadd.f32 %v8431_v36, %v3257_v13  ;;  %v3009_v25 = vadd.f32 %v3008_v4, %v8174_v39  ;;  %v8529_v59 = vpack.c.b16 %v4053_v53, %v4052_v58  ;;  %v1834_v39 = vunpack.c.l.b16 %v1002_v1  ;;  %v7142_v53 = vld [vmem:[%s9775_s4 + $0x60] sm:$0xff] }
 0x2d4   : > { %v1658_v58 = vpack.c.b16 %v1640_v62, %v1639_v7  ;;  %v1740_v61 = vunpack.c.l.b16 %v940_v22  ;;  %5546 = vmatpush.bf16.msrb.mxu2 %v7142_v53  ;;  %v7141_v7 = vld [vmem:[%s9775_s4 + $0x58] sm:$0xff]  ;;  %v7156_v53 = vld [vmem:[%s9775_s4 + $0xd0] sm:$0xff] }
 0x2d5   : > { %v3325_v19 = vmax.f32 %v3293_v45, 0.0  ;;  %v3098_v16 = vadd.f32 %v8477_v27, %v3009_v25  ;;  %5477 = vmatmul.bf16.gmra.mxu1 %v8529_v59  ;;  %v939_v27 = vpack.c.bf16 %v907_v56, %v907_v56  ;;  %v1851_v37 = vpack.c.b16 %v1834_v39, %v1833_v34  ;;  %v7149_v62 = vld [vmem:[%s9775_s4 + $0x98] sm:$0xff]  ;;  %v842_v56 = vld [vmem:[#allocation2 + $0x188] sm:$0xff] }
 0x2d6   : > { %v8535_v10 = vpop.f32.mrf.mxu0  ;;  %v3445_v14 = vld [vmem:[#allocation3 + $0x60] sm:$0xff]  ;;  %v7157_v39 = vld [vmem:[%s9775_s4 + $0xd8] sm:$0xff] }
 0x2d7   : > { %3412 = vst [vmem:[#allocation3 + $0x69] sm:$0xff] %v3325_v19  ;;  %v3187_v41 = vadd.f32 %v8490_v23, %v3098_v16  ;;  %v7150_v23 = vld [vmem:[%s9775_s4 + $0xa0] sm:$0xff]  ;;  %v1739_v4 = vunpack.c.l.b16 %v939_v27  ;;  %v3477_v49 = vpack.c.bf16 %v3445_v14, %v3445_v14  ;;  %5725 = vmatpush.bf16.msrb.mxu0 %v7157_v39 }
 0x2d8   : > { %v8551_v42 = vpop.f32.mrf.mxu3  ;;  %5635 = vmatpush.bf16.msrb.mxu3 %v7150_v23  ;;  %5547 = vmatpush.bf16.msrb.mxu2 %v7141_v7  ;;  %v971_v14 = vld [vmem:[#allocation2 + $0x19a] sm:$0xff]  ;;  %v972_v27 = vld [vmem:[#allocation2 + $0x1a2] sm:$0xff] }
 0x2d9   : > { %v3258_v9 = vmul.f32 %v8423_v31, %v3187_v41  ;;  %v1756_v1 = vpack.c.b16 %v1740_v61, %v1739_v4 }
 0x2da   : > { %v3010_v13 = vpop.f32.mrf.mxu2 }
 0x2db   : > { %v3294_v28 = vadd.f32 %v8431_v36, %v3258_v9  ;;  %v3011_v6 = vadd.f32 %v3010_v13, %v2922_v50  ;;  %v4054_v50 = vunpack.c.l.b16 %v3477_v49  ;;  %v7140_v13 = vld [vmem:[%s9775_s4 + $0x50] sm:$0xff]  ;;  %5726 = vmatpush.bf16.msrb.mxu0 %v7156_v53 }
 0x2dc   : > { %5636 = vmatpush.bf16.msrb.mxu3 %v7149_v62  ;;  %5548 = vmatpush.bf16.msrb.mxu2 %v7140_v13  ;;  %v7155_v62 = vld [vmem:[%s9775_s4 + $0xc8] sm:$0xff] }
 0x2dd   : > { %v3326_v45 = vmax.f32 %v3294_v28, 0.0  ;;  %v3100_v25 = vadd.f32 %v8487_v5, %v3011_v6  ;;  %v841_v5 = vld [vmem:[#allocation2 + $0x180] sm:$0xff]  ;;  %3151 = vmatmul.bf16.gmra.mxu3 %v1756_v1  ;;  %v874_v6 = vpack.c.bf16 %v842_v56, %v842_v56  ;;  %v7147_v1 = vld [vmem:[%s9775_s4 + $0x88] sm:$0xff] }
 0x2de   : > { %v3446_v19 = vld [vmem:[#allocation3 + $0x68] sm:$0xff]  ;;  %v8554_v16 = vpop.f32.mrf.mxu0 }
 0x2df   : > { %3413 = vst [vmem:[#allocation3 + $0x79] sm:$0xff] %v3326_v45  ;;  %v3189_v41 = vadd.f32 %v8505_v29, %v3100_v25  ;;  %3052 = vmatmul.bf16.gmra.mxu2 %v1658_v58  ;;  %v3478_v34 = vpack.c.bf16 %v3446_v19, %v3446_v19  ;;  %v873_v29 = vpack.c.bf16 %v841_v5, %v841_v5  ;;  %v7148_v58 = vld [vmem:[%s9775_s4 + $0x90] sm:$0xff]  ;;  %v1642_v7 = vunpack.c.l.b16 %v874_v6 }
 0x2e0   : > { %v8580_v4 = vpop.f32.mrf.mxu3  ;;  %v1003_v45 = vpack.c.bf16 %v971_v14, %v971_v14  ;;  %v1004_v25 = vpack.c.bf16 %v972_v27, %v972_v27  ;;  %5637 = vmatpush.bf16.msrb.mxu3 %v7148_v58  ;;  %5727 = vmatpush.bf16.msrb.mxu0 %v7155_v62  ;;  %v7146_v27 = vld [vmem:[%s9775_s4 + $0x80] sm:$0xff] }
 0x2e1   : > { %v3259_v51 = vmul.f32 %v8423_v31, %v3189_v41  ;;  %v4055_v9 = vunpack.c.l.b16 %v3478_v34  ;;  %3235 = vmatmul.bf16.gmra.mxu0 %v1851_v37  ;;  %v1641_v19 = vunpack.c.l.b16 %v873_v29  ;;  %v3565_v41 = vld [vmem:[#allocation3 + $0x2] sm:$0xff] }
 0x2e2   : > { %v3013_v22 = vpop.f32.mrf.mxu2  ;;  %v9798_v34 = vld [vmem:[#allocation9_spill] sm:$0xff] }
 0x2e3   : > { %v3295_v23 = vadd.f32 %v8431_v36, %v3259_v51  ;;  %v3014_v40 = vadd.f32 %v3013_v22, %v8207_v15  ;;  %v8578_v28 = vpack.c.b16 %v4055_v9, %v4054_v50  ;;  %v7139_v15 = vld [vmem:[%s9775_s4 + $0x48] sm:$0xff]  ;;  %v2927_v5 = vadd.f32 %v9798_v34, %v8215_v55  ;;  %v3566_v9 = vld [vmem:[#allocation3 + $0xa] sm:$0xff] }
 0x2e4   : > { %5549 = vmatpush.bf16.msrb.mxu2 %v7139_v15  ;;  %v1835_v51 = vunpack.c.l.b16 %v1003_v45  ;;  %v1836_v50 = vunpack.c.l.b16 %v1004_v25  ;;  %5638 = vmatpush.bf16.msrb.mxu3 %v7147_v1  ;;  %v7154_v55 = vld [vmem:[%s9775_s4 + $0xc0] sm:$0xff]  ;;  %v3597_v22 = vpack.c.bf16 %v3565_v41, %v3565_v41  ;;  %v3598_v29 = vpack.c.bf16 %v3566_v9, %v3566_v9  ;;  %v3567_v9 = vld [vmem:[#allocation3 + $0x1a] sm:$0xff] }
 0x2e5   : > { %v8582_v61 = vmax.f32 %v3295_v23, 0.0  ;;  %v3103_v37 = vadd.f32 %v8501_v54, %v3014_v40  ;;  %5482 = vmatmul.bf16.gmra.mxu1 %v8578_v28  ;;  %v1659_v53 = vpack.c.b16 %v1642_v7, %v1641_v19  ;;  %5728 = vmatpush.bf16.msrb.mxu0 %v7154_v55  ;;  %v7166_v7 = vld [vmem:[%s9775_s4 + $0x120] sm:$0xff] }
 0x2e6   : > { %v8586_v49 = vpop.f32.mrf.mxu0  ;;  %v3447_v56 = vld [vmem:[#allocation3 + $0x78] sm:$0xff]  ;;  %v4238_v40 = vunpack.c.l.b16 %v3597_v22  ;;  %v4239_v6 = vunpack.c.l.b16 %v3598_v29  ;;  %v1852_v15 = vpack.c.b16 %v1836_v50, %v1835_v51  ;;  %5813 = vmatpush.bf16.msrb.mxu1 %v7166_v7  ;;  %v3599_v22 = vpack.c.bf16 %v3567_v9, %v3567_v9  ;;  %v3501_v7 = vld [vmem:[#allocation3 + $0x1] sm:$0xff] }
 0x2e7   : > { %3414 = vst [vmem:[#allocation3 + $0x81] sm:$0xff] %v8582_v61  ;;  %v3192_v54 = vadd.f32 %v8517_v21, %v3103_v37  ;;  %v7138_v21 = vld [vmem:[%s9775_s4 + $0x40] sm:$0xff]  ;;  %v3479_v25 = vpack.c.bf16 %v3447_v56, %v3447_v56 }
 0x2e8   : > { %v8612_v23 = vpop.f32.mrf.mxu3  ;;  %5550 = vmatpush.bf16.msrb.mxu2 %v7138_v21  ;;  %5639 = vmatpush.bf16.msrb.mxu3 %v7146_v27  ;;  %v4270_v62 = vpack.c.b16 %v4239_v6, %v4238_v40  ;;  %v4240_v6 = vunpack.c.l.b16 %v3599_v22 }
 0x2e9   : > { %v3260_v39 = vmul.f32 %v8423_v31, %v3192_v54  ;;  %v4056_v34 = vunpack.c.l.b16 %v3479_v25 }
 0x2ea   : > { %v3015_v14 = vpop.f32.mrf.mxu2 }
 0x2eb   : > { %v3296_v13 = vadd.f32 %v8431_v36, %v3260_v39  ;;  %v3016_v58 = vadd.f32 %v3015_v14, %v2927_v5  ;;  %v3568_v14 = vld [vmem:[#allocation3 + $0x22] sm:$0xff] }
 0x2ec   : > { %v3600_v29 = vpack.c.bf16 %v3568_v14, %v3568_v14 }
 0x2ed   : > { %v3328_v37 = vmax.f32 %v3296_v13, 0.0  ;;  %v3105_v45 = vadd.f32 %v8514_v20, %v3016_v58  ;;  %5640 = vmatmul.bf16.vlgmr.msrb.gmra.mxu3 %v4270_v62  ;;  %v2932_v13 = vadd.f32 %v8190_v46, %v8233_v18 }
 0x2ee   : > { %v3448_v1 = vld [vmem:[#allocation3 + $0x80] sm:$0xff]  ;;  %v8615_v54 = vpop.f32.mrf.mxu0 }
 0x2ef   : > { %3415 = vst [vmem:[#allocation3 + $0x91] sm:$0xff] %v3328_v37  ;;  %v3194_v41 = vadd.f32 %v8535_v10, %v3105_v45  ;;  %3057 = vmatmul.bf16.gmra.mxu2 %v1659_v53  ;;  %v3480_v19 = vpack.c.bf16 %v3448_v1, %v3448_v1  ;;  %v4241_v37 = vunpack.c.l.b16 %v3600_v29 }
 0x2f0   : > { %v8626_v10 = vpop.f32.mrf.mxu3 }
 0x2f1   : > { %v3261_v20 = vmul.f32 %v8423_v31, %v3194_v41  ;;  %v4057_v5 = vunpack.c.l.b16 %v3480_v19  ;;  %3240 = vmatmul.bf16.gmra.mxu0 %v1852_v15  ;;  %v4271_v19 = vpack.c.b16 %v4241_v37, %v4240_v6  ;;  %v2937_v6 = vadd.f32 %v8217_v12, %v8253_v57 }
 0x2f2   : > { %v3018_v39 = vpop.f32.mrf.mxu2 }
 0x2f3   : > { %v3297_v56 = vadd.f32 %v8431_v36, %v3261_v20  ;;  %v3019_v51 = vadd.f32 %v3018_v39, %v8224_v2  ;;  %v8624_v50 = vpack.c.b16 %v4057_v5, %v4056_v34  ;;  %v3502_v20 = vld [vmem:[#allocation3 + $0x9] sm:$0xff] }
 0x2f5   : > { %v8628_v21 = vmax.f32 %v3297_v56, 0.0  ;;  %v3108_v27 = vadd.f32 %v8531_v0, %v3019_v51  ;;  %5487 = vmatmul.bf16.gmra.mxu1 %v8624_v50  ;;  %v3533_v56 = vpack.c.bf16 %v3501_v7, %v3501_v7 }
 0x2f6   : > { %v8632_v55 = vpop.f32.mrf.mxu0  ;;  %v3449_v40 = vld [vmem:[#allocation3 + $0x90] sm:$0xff] }
 0x2f7   : > { %3416 = vst [vmem:[#allocation3 + $0x99] sm:$0xff] %v8628_v21  ;;  %v3197_v2 = vadd.f32 %v8554_v16, %v3108_v27  ;;  %v3481_v62 = vpack.c.bf16 %v3449_v40, %v3449_v40  ;;  %v3570_v27 = vld [vmem:[#allocation3 + $0x3a] sm:$0xff] }
 0x2f8   : > { %v8640_v25 = vpop.f32.mrf.mxu3 }
 0x2f9   : > { %v3262_v58 = vmul.f32 %v8423_v31, %v3197_v2  ;;  %v4058_v5 = vunpack.c.l.b16 %v3481_v62 }
 0x2fa   : > { %v3020_v53 = vpop.f32.mrf.mxu2 }
 0x2fb   : > { %v3298_v0 = vadd.f32 %v8431_v36, %v3262_v58  ;;  %v3021_v45 = vadd.f32 %v3020_v53, %v2932_v13  ;;  %v3602_v58 = vpack.c.bf16 %v3570_v27, %v3570_v27  ;;  %v4142_v53 = vunpack.c.l.b16 %v3533_v56  ;;  %v3572_v27 = vld [vmem:[#allocation3 + $0x52] sm:$0xff] }
 0x2fd   : > { %v3330_v15 = vmax.f32 %v3298_v0, 0.0  ;;  %v3110_v1 = vadd.f32 %v8551_v42, %v3021_v45  ;;  %5645 = vmatmul.bf16.gmra.mxu3 %v4271_v19 }
 0x2fe   : > { %v3450_v41 = vld [vmem:[#allocation3 + $0x98] sm:$0xff]  ;;  %v8643_v16 = vpop.f32.mrf.mxu0 }
 0x2ff   : > { %3417 = vst [vmem:[#allocation3 + $0xa9] sm:$0xff] %v3330_v15  ;;  %v3199_v46 = vadd.f32 %v8586_v49, %v3110_v1  ;;  %3062 = vmatmul.bf16.gmra.mxu2 %v8375_v32  ;;  %v3482_v18 = vpack.c.bf16 %v3450_v41, %v3450_v41  ;;  %v3534_v49 = vpack.c.bf16 %v3502_v20, %v3502_v20  ;;  %v3569_v32 = vld [vmem:[#allocation3 + $0x32] sm:$0xff]  ;;  %v4243_v15 = vunpack.c.l.b16 %v3602_v58 }
 0x300   : > { %v3601_v13 = vpack.c.bf16 %v3569_v32, %v3569_v32  ;;  %v3571_v32 = vld [vmem:[#allocation3 + $0x4a] sm:$0xff] }
 0x301   : > { %v3263_v34 = vmul.f32 %v8423_v31, %v3199_v46  ;;  %v4059_v39 = vunpack.c.l.b16 %v3482_v18  ;;  %5729 = vmatmul.bf16.vlgmr.msrb.gmra.mxu0 %v8475_v26  ;;  %v8659_v26 = vpop.f32.mrf.mxu3  ;;  %v4143_v40 = vunpack.c.l.b16 %v3534_v49 }
 0x302   : > { %v3023_v42 = vpop.f32.mrf.mxu2  ;;  %v4242_v45 = vunpack.c.l.b16 %v3601_v13 }
 0x303   : > { %v3299_v51 = vadd.f32 %v8431_v36, %v3263_v34  ;;  %v3024_v9 = vadd.f32 %v3023_v42, %v8245_v33  ;;  %v8651_v14 = vpack.c.b16 %v4059_v39, %v4058_v5  ;;  %v4174_v41 = vpack.c.b16 %v4143_v40, %v4142_v53  ;;  %v7165_v5 = vld [vmem:[%s9775_s4 + $0x118] sm:$0xff] }
 0x304   : > { %v4272_v12 = vpack.c.b16 %v4243_v15, %v4242_v45  ;;  %5814 = vmatpush.bf16.msrb.mxu1 %v7165_v5  ;;  %v9799_v45 = vld [vmem:[#allocation10_spill] sm:$0xff] }
 0x305   : > { %v8653_v22 = vmax.f32 %v3299_v51, 0.0  ;;  %v3113_v29 = vadd.f32 %v8580_v4, %v3024_v9  ;;  %5492 = vmatmul.bf16.gmra.mxu1 %v8651_v14  ;;  %v3504_v51 = vld [vmem:[#allocation3 + $0x21] sm:$0xff]  ;;  %v2942_v15 = vadd.f32 %v9799_v45, %v8270_v43 }
 0x306   : > { %v8657_v2 = vpop.f32.mrf.mxu0  ;;  %v3451_v0 = vld [vmem:[#allocation3 + $0xa8] sm:$0xff] }
 0x307   : > { %3418 = vst [vmem:[#allocation3 + $0xb1] sm:$0xff] %v8653_v22  ;;  %v3202_v33 = vadd.f32 %v8615_v54, %v3113_v29  ;;  %v3483_v18 = vpack.c.bf16 %v3451_v0, %v3451_v0  ;;  %v3503_v29 = vld [vmem:[#allocation3 + $0x19] sm:$0xff] }
 0x309   : > { %v3264_v37 = vmul.f32 %v8423_v31, %v3202_v33  ;;  %v8670_v20 = vpop.f32.mrf.mxu3  ;;  %v3536_v33 = vpack.c.bf16 %v3504_v51, %v3504_v51 }
 0x30a   : > { %v3025_v4 = vpop.f32.mrf.mxu2 }
 0x30b   : > { %v3300_v1 = vadd.f32 %v8431_v36, %v3264_v37  ;;  %v3026_v62 = vadd.f32 %v3025_v4, %v2937_v6  ;;  %v3603_v6 = vpack.c.bf16 %v3571_v32, %v3571_v32  ;;  %v3604_v37 = vpack.c.bf16 %v3572_v27, %v3572_v27 }
 0x30c   : > { %v3535_v4 = vpack.c.bf16 %v3503_v29, %v3503_v29 }
 0x30d   : > { %v3332_v19 = vmax.f32 %v3300_v1, 0.0  ;;  %v3115_v46 = vadd.f32 %v8612_v23, %v3026_v62  ;;  %5650 = vmatmul.bf16.gmra.mxu3 %v4272_v12  ;;  %v4060_v23 = vunpack.c.l.b16 %v3483_v18  ;;  %v8691_v1 = vpop.f32.mrf.mxu1  ;;  %v4145_v62 = vunpack.c.l.b16 %v3536_v33 }
 0x30e   : > { %v3452_v54 = vld [vmem:[#allocation3 + $0xb0] sm:$0xff]  ;;  %v8668_v7 = vpop.f32.mrf.mxu0  ;;  %v4245_v12 = vunpack.c.l.b16 %v3604_v37 }
 0x30f   : > { %3419 = vst [vmem:[#allocation3 + $0xc1] sm:$0xff] %v3332_v19  ;;  %v3204_v57 = vadd.f32 %v8632_v55, %v3115_v46  ;;  %5551 = vmatmul.bf16.vlgmr.msrb.gmra.mxu2 %v4174_v41  ;;  %v3484_v34 = vpack.c.bf16 %v3452_v54, %v3452_v54  ;;  %v3549_v53 = vpack.c.bf16 %v3332_v19, %v3332_v19  ;;  %v4244_v54 = vunpack.c.l.b16 %v3603_v6 }
 0x311   : > { %v3265_v39 = vmul.f32 %v8423_v31, %v3204_v57  ;;  %v4061_v42 = vunpack.c.l.b16 %v3484_v34  ;;  %5734 = vmatmul.bf16.gmra.mxu0 %v8499_v63  ;;  %v8686_v40 = vpop.f32.mrf.mxu3  ;;  %v8694_v41 = vunpack.c.l.b16 %v3549_v53  ;;  %v4144_v34 = vunpack.c.l.b16 %v3535_v4  ;;  %v3506_v53 = vld [vmem:[#allocation3 + $0x39] sm:$0xff]  ;;  %v3574_v4 = vld [vmem:[#allocation3 + $0x6a] sm:$0xff] }
 0x312   : > { %v3028_v56 = vpop.f32.mrf.mxu2 }
 0x313   : > { %v3301_v9 = vadd.f32 %v8431_v36, %v3265_v39  ;;  %v3029_v55 = vadd.f32 %v3028_v56, %v8264_v48  ;;  %v8680_v49 = vpack.c.b16 %v4061_v42, %v4060_v23  ;;  %v8702_v23 = vpack.c.b16 %v4145_v62, %v4144_v34 }
 0x315   : > { %v3333_v13 = vmax.f32 %v3301_v9, 0.0  ;;  %v3118_v58 = vadd.f32 %v8626_v10, %v3029_v55  ;;  %5497 = vmatmul.bf16.gmra.mxu1 %v8680_v49  ;;  %v4273_v55 = vpack.c.b16 %v4245_v12, %v4244_v54  ;;  %v8710_v29 = vpop.f32.mrf.mxu1  ;;  %v3606_v54 = vpack.c.bf16 %v3574_v4, %v3574_v4 }
 0x316   : > { %v8684_v63 = vpop.f32.mrf.mxu0  ;;  %v3453_v18 = vld [vmem:[#allocation3 + $0xc0] sm:$0xff] }
 0x317   : > { %3420 = vst [vmem:[#allocation3 + $0xc9] sm:$0xff] %v3333_v13  ;;  %v3207_v48 = vadd.f32 %v8643_v16, %v3118_v58  ;;  %v3550_v0 = vpack.c.bf16 %v3333_v13, %v3333_v13  ;;  %v3485_v42 = vpack.c.bf16 %v3453_v18, %v3453_v18 }
 0x319   : > { %v3266_v10 = vmul.f32 %v8423_v31, %v3207_v48  ;;  %v8696_v19 = vunpack.c.l.b16 %v3550_v0  ;;  %v8706_v9 = vpop.f32.mrf.mxu3  ;;  %v4062_v13 = vunpack.c.l.b16 %v3485_v42  ;;  %v3505_v0 = vld [vmem:[#allocation3 + $0x31] sm:$0xff] }
 0x31a   : > { %v3030_v46 = vpop.f32.mrf.mxu2  ;;  %v3537_v12 = vpack.c.bf16 %v3505_v0, %v3505_v0 }
 0x31b   : > { %v3302_v16 = vadd.f32 %v8431_v36, %v3266_v10  ;;  %v3031_v57 = vadd.f32 %v3030_v46, %v2942_v15  ;;  %v3538_v10 = vpack.c.bf16 %v3506_v53, %v3506_v53 }
 0x31d   : > { %v3334_v5 = vmax.f32 %v3302_v16, 0.0  ;;  %v3120_v39 = vadd.f32 %v8640_v25, %v3031_v57  ;;  %5655 = vmatmul.bf16.gmra.mxu3 %v4273_v55  ;;  %v9800_v57 = vld [vmem:[#allocation11_spill] sm:$0xff] }
 0x31e   : > { %v3454_v56 = vld [vmem:[#allocation3 + $0xc8] sm:$0xff]  ;;  %v8704_v51 = vpop.f32.mrf.mxu0  ;;  %v2947_v34 = vadd.f32 %v9800_v57, %v8289_v8 }
 0x31f   : > { %3421 = vst [vmem:[#allocation3 + $0xd9] sm:$0xff] %v3334_v5  ;;  %v3209_v32 = vadd.f32 %v8657_v2, %v3120_v39  ;;  %5556 = vmatmul.bf16.gmra.mxu2 %v8702_v23  ;;  %v3486_v27 = vpack.c.bf16 %v3454_v56, %v3454_v56  ;;  %v3573_v2 = vld [vmem:[#allocation3 + $0x62] sm:$0xff]  ;;  %v3551_v62 = vpack.c.bf16 %v3334_v5, %v3334_v5  ;;  %v4147_v39 = vunpack.c.l.b16 %v3538_v10  ;;  %v8732_v56 = vpop.f32.mrf.mxu1 }
 0x320   : > { %v3605_v18 = vpack.c.bf16 %v3573_v2, %v3573_v2 }
 0x321   : > { %v3267_v25 = vmul.f32 %v8423_v31, %v3209_v32  ;;  %v4063_v58 = vunpack.c.l.b16 %v3486_v27  ;;  %5739 = vmatmul.bf16.gmra.mxu0 %v8529_v59  ;;  %v8722_v59 = vpop.f32.mrf.mxu3  ;;  %v8728_v42 = vunpack.c.l.b16 %v3551_v62 }
 0x322   : > { %v3033_v33 = vpop.f32.mrf.mxu2  ;;  %v4246_v27 = vunpack.c.l.b16 %v3605_v18 }
 0x323   : > { %v3303_v6 = vadd.f32 %v8431_v36, %v3267_v25  ;;  %v3034_v37 = vadd.f32 %v3033_v33, %v8280_v3  ;;  %v8716_v48 = vpack.c.b16 %v4063_v58, %v4062_v13  ;;  %v4247_v25 = vunpack.c.l.b16 %v3606_v54 }
 0x324   : > { %v4146_v58 = vunpack.c.l.b16 %v3537_v12  ;;  %v8761_v12 = vld [vmem:[%s9774_s3] ss:$0 sm:$0xff] }
 0x325   : > { %v3335_v45 = vmax.f32 %v3303_v6, 0.0  ;;  %v3123_v15 = vadd.f32 %v8659_v26, %v3034_v37  ;;  %5502 = vmatmul.bf16.gmra.mxu1 %v8716_v48  ;;  %v4274_v0 = vpack.c.b16 %v4247_v25, %v4246_v27 }
 0x326   : > { %v8720_v46 = vpop.f32.mrf.mxu0  ;;  %v3455_v32 = vld [vmem:[#allocation3 + $0xd8] sm:$0xff]  ;;  %v8738_v53 = vpack.c.b16 %v4147_v39, %v4146_v58  ;;  %v3576_v39 = vld [vmem:[#allocation3 + $0x82] sm:$0xff] }
 0x327   : > { %3422 = vst [vmem:[#allocation3 + $0xe1] sm:$0xff] %v3335_v45  ;;  %v3212_v3 = vadd.f32 %v8668_v7, %v3123_v15  ;;  %v3552_v16 = vpack.c.bf16 %v3335_v45, %v3335_v45  ;;  %v3487_v6 = vpack.c.bf16 %v3455_v32, %v3455_v32  ;;  %v7164_v15 = vld [vmem:[%s9775_s4 + $0x110] sm:$0xff] }
 0x328   : > { %5815 = vmatpush.bf16.msrb.mxu1 %v7164_v15 }
 0x329   : > { %v3268_v26 = vmul.f32 %v8423_v31, %v3212_v3  ;;  %v8730_v5 = vunpack.c.l.b16 %v3552_v16  ;;  %v8742_v4 = vpop.f32.mrf.mxu3  ;;  %v4064_v62 = vunpack.c.l.b16 %v3487_v6  ;;  %v3508_v3 = vld [vmem:[#allocation3 + $0x51] sm:$0xff] }
 0x32a   : > { %v3035_v55 = vpop.f32.mrf.mxu2  ;;  %v3540_v27 = vpack.c.bf16 %v3508_v3, %v3508_v3 }
 0x32b   : > { %v3304_v7 = vadd.f32 %v8431_v36, %v3268_v26  ;;  %v3036_v13 = vadd.f32 %v3035_v55, %v2947_v34  ;;  %v3575_v26 = vld [vmem:[#allocation3 + $0x7a] sm:$0xff]  ;;  %v3507_v55 = vld [vmem:[#allocation3 + $0x49] sm:$0xff] }
 0x32c   : > { %v3607_v58 = vpack.c.bf16 %v3575_v26, %v3575_v26  ;;  %v3539_v6 = vpack.c.bf16 %v3507_v55, %v3507_v55 }
 0x32d   : > { %v3336_v33 = vmax.f32 %v3304_v7, 0.0  ;;  %v3125_v31 = vadd.f32 %v8670_v20, %v3036_v13  ;;  %5660 = vmatmul.bf16.gmra.mxu3 %v4274_v0  ;;  %v8752_v20 = vld [vmem:[%s9773_s2] ss:$0 sm:$0xff]  ;;  %v9801_v0 = vld [vmem:[#allocation12_spill] sm:$0xff] }
 0x32e   : > { %v3456_v37 = vld [vmem:[#allocation3 + $0xe0] sm:$0xff]  ;;  %v8740_v2 = vpop.f32.mrf.mxu0 }
 0x32f   : > { %3423 = vst [vmem:[#allocation3 + $0xf1] sm:$0xff] %v3336_v33  ;;  %v3214_v36 = vadd.f32 %v8684_v63, %v3125_v31  ;;  %5561 = vmatmul.bf16.gmra.mxu2 %v8738_v53  ;;  %v3488_v45 = vpack.c.bf16 %v3456_v37, %v3456_v37  ;;  %v3553_v25 = vpack.c.bf16 %v3336_v33, %v3336_v33 }
 0x330   : > { %v3608_v31 = vpack.c.bf16 %v3576_v39, %v3576_v39 }
 0x331   : > { %v3269_v10 = vmul.f32 %v8752_v20, %v3214_v36  ;;  %v4065_v18 = vunpack.c.l.b16 %v3488_v45  ;;  %5744 = vmatmul.bf16.gmra.mxu0 %v8578_v28  ;;  %v8771_v13 = vpop.f32.mrf.mxu3  ;;  %v2952_v36 = vadd.f32 %v9801_v0, %v8303_v24  ;;  %v4149_v45 = vunpack.c.l.b16 %v3540_v27 }
 0x332   : > { %v3038_v63 = vpop.f32.mrf.mxu2  ;;  %v8756_v54 = vpop.f32.mrf.mxu1  ;;  %v8777_v15 = vunpack.c.l.b16 %v3553_v25  ;;  %v4249_v3 = vunpack.c.l.b16 %v3608_v31 }
 0x333   : > { %v3305_v16 = vadd.f32 %v8761_v12, %v3269_v10  ;;  %v3039_v57 = vadd.f32 %v3038_v63, %v8297_v30  ;;  %v8765_v34 = vpack.c.b16 %v4065_v18, %v4064_v62  ;;  %v4248_v63 = vunpack.c.l.b16 %v3607_v58 }
 0x335   : > { %v3337_v28 = vmax.f32 %v3305_v16, 0.0  ;;  %v3128_v32 = vadd.f32 %v8686_v40, %v3039_v57  ;;  %5507 = vmatmul.bf16.gmra.mxu1 %v8765_v34  ;;  %v4148_v57 = vunpack.c.l.b16 %v3539_v6  ;;  %v4275_v58 = vpack.c.b16 %v4249_v3, %v4248_v63  ;;  %v3578_v63 = vld [vmem:[#allocation3 + $0x9a] sm:$0xff] }
 0x336   : > { %v8769_v7 = vpop.f32.mrf.mxu0  ;;  %v3457_v18 = vld [vmem:[#allocation3 + $0xf0] sm:$0xff]  ;;  %v3509_v3 = vld [vmem:[#allocation3 + $0x61] sm:$0xff] }
 0x337   : > { %3424 = vst [vmem:[#allocation3 + $0xf9] sm:$0xff] %v3337_v28  ;;  %v3217_v30 = vadd.f32 %v8704_v51, %v3128_v32  ;;  %v3554_v37 = vpack.c.bf16 %v3337_v28, %v3337_v28  ;;  %v8787_v55 = vpack.c.b16 %v4149_v45, %v4148_v57  ;;  %v3489_v28 = vpack.c.bf16 %v3457_v18, %v3457_v18 }
 0x339   : > { %v3270_v40 = vmul.f32 %v8752_v20, %v3217_v30  ;;  %v8779_v33 = vunpack.c.l.b16 %v3554_v37  ;;  %v8791_v25 = vpop.f32.mrf.mxu3  ;;  %v4066_v37 = vunpack.c.l.b16 %v3489_v28 }
 0x33a   : > { %v3040_v10 = vpop.f32.mrf.mxu2  ;;  %v8781_v62 = vpop.f32.mrf.mxu1 }
 0x33b   : > { %v3306_v51 = vadd.f32 %v8761_v12, %v3270_v40  ;;  %v3041_v16 = vadd.f32 %v3040_v10, %v2952_v36  ;;  %v3510_v40 = vld [vmem:[#allocation3 + $0x69] sm:$0xff] }
 0x33c   : > { %v3542_v57 = vpack.c.bf16 %v3510_v40, %v3510_v40 }
 0x33d   : > { %v3338_v26 = vmax.f32 %v3306_v51, 0.0  ;;  %v3130_v39 = vadd.f32 %v8706_v9, %v3041_v16  ;;  %5665 = vmatmul.bf16.gmra.mxu3 %v4275_v58  ;;  %v3610_v58 = vpack.c.bf16 %v3578_v63, %v3578_v63 }
 0x33e   : > { %v3458_v32 = vld [vmem:[#allocation3 + $0xf8] sm:$0xff]  ;;  %v8789_v27 = vpop.f32.mrf.mxu0 }
 0x33f   : > { %3425 = vst [vmem:[#allocation3 + $0x109] sm:$0xff] %v3338_v26  ;;  %v3219_v31 = vadd.f32 %v8720_v46, %v3130_v39  ;;  %5566 = vmatmul.bf16.gmra.mxu2 %v8787_v55  ;;  %v3490_v30 = vpack.c.bf16 %v3458_v32, %v3458_v32  ;;  %v3577_v46 = vld [vmem:[#allocation3 + $0x92] sm:$0xff] }
 0x340   : > { %v3609_v32 = vpack.c.bf16 %v3577_v46, %v3577_v46  ;;  %v4251_v46 = vunpack.c.l.b16 %v3610_v58 }
 0x341   : > { %v3271_v6 = vmul.f32 %v8752_v20, %v3219_v31  ;;  %v4067_v9 = vunpack.c.l.b16 %v3490_v30  ;;  %5749 = vmatmul.bf16.gmra.mxu0 %v8624_v50  ;;  %v3555_v50 = vpack.c.bf16 %v3338_v26, %v3338_v26  ;;  %v8807_v28 = vpop.f32.mrf.mxu3  ;;  %v3541_v31 = vpack.c.bf16 %v3509_v3, %v3509_v3 }
 0x342   : > { %v3043_v0 = vpop.f32.mrf.mxu2  ;;  %v8797_v36 = vpop.f32.mrf.mxu1 }
 0x343   : > { %v3307_v45 = vadd.f32 %v8761_v12, %v3271_v6  ;;  %v3044_v10 = vadd.f32 %v3043_v0, %v8316_v44  ;;  %v8801_v18 = vpack.c.b16 %v4067_v9, %v4066_v37  ;;  %v2957_v6 = vadd.f32 %v8305_v60, %v8323_v38 }
 0x344   : > { %v4151_v37 = vunpack.c.l.b16 %v3542_v57  ;;  %v8813_v9 = vunpack.c.l.b16 %v3555_v50  ;;  %v4150_v3 = vunpack.c.l.b16 %v3541_v31 }
 0x345   : > { %v3339_v51 = vmax.f32 %v3307_v45, 0.0  ;;  %v3133_v16 = vadd.f32 %v8722_v59, %v3044_v10  ;;  %5512 = vmatmul.bf16.gmra.mxu1 %v8801_v18  ;;  %v4250_v10 = vunpack.c.l.b16 %v3609_v32 }
 0x346   : > { %v8805_v39 = vpop.f32.mrf.mxu0  ;;  %v3459_v45 = vld [vmem:[#allocation3 + $0x108] sm:$0xff] }
 0x347   : > { %3426 = vst [vmem:[#allocation3 + $0x111] sm:$0xff] %v3339_v51  ;;  %v3222_v44 = vadd.f32 %v8740_v2, %v3133_v16  ;;  %v3556_v30 = vpack.c.bf16 %v3339_v51, %v3339_v51  ;;  %v8823_v16 = vpack.c.b16 %v4151_v37, %v4150_v3  ;;  %v3491_v57 = vpack.c.bf16 %v3459_v45, %v3459_v45  ;;  %v3580_v3 = vld [vmem:[#allocation3 + $0xb2] sm:$0xff] }
 0x348   : > { %v4276_v32 = vpack.c.b16 %v4251_v46, %v4250_v10 }
 0x349   : > { %v3272_v59 = vmul.f32 %v8752_v20, %v3222_v44  ;;  %v8815_v26 = vunpack.c.l.b16 %v3556_v30  ;;  %v8827_v30 = vpop.f32.mrf.mxu3 }
 0x34a   : > { %v3045_v0 = vpop.f32.mrf.mxu2  ;;  %v8817_v40 = vpop.f32.mrf.mxu1 }
 0x34b   : > { %v3308_v2 = vadd.f32 %v8761_v12, %v3272_v59  ;;  %v3046_v63 = vadd.f32 %v3045_v0, %v2957_v6  ;;  %v7163_v6 = vld [vmem:[%s9775_s4 + $0x108] sm:$0xff]  ;;  %v4068_v59 = vunpack.c.l.b16 %v3491_v57 }
 0x34c   : > { %v3511_v0 = vld [vmem:[#allocation3 + $0x79] sm:$0xff]  ;;  %5816 = vmatpush.bf16.msrb.mxu1 %v7163_v6 }
 0x34d   : > { %v3340_v38 = vmax.f32 %v3308_v2, 0.0  ;;  %v3135_v51 = vadd.f32 %v8742_v4, %v3046_v63  ;;  %5670 = vmatmul.bf16.gmra.mxu3 %v4276_v32  ;;  %v3579_v63 = vld [vmem:[#allocation3 + $0xaa] sm:$0xff] }
 0x34e   : > { %v3460_v50 = vld [vmem:[#allocation3 + $0x110] sm:$0xff]  ;;  %v8825_v44 = vpop.f32.mrf.mxu0  ;;  %v3611_v6 = vpack.c.bf16 %v3579_v63, %v3579_v63 }
 0x34f   : > { %3427 = vst [vmem:[#allocation3 + $0x121] sm:$0xff] %v3340_v38  ;;  %v3224_v58 = vadd.f32 %v8769_v7, %v3135_v51  ;;  %5571 = vmatmul.bf16.gmra.mxu2 %v8823_v16  ;;  %v3492_v31 = vpack.c.bf16 %v3460_v50, %v3460_v50  ;;  %v3543_v51 = vpack.c.bf16 %v3511_v0, %v3511_v0 }
 0x350   : > { %v3557_v32 = vpack.c.bf16 %v3340_v38, %v3340_v38 }
 0x351   : > { %v3273_v4 = vmul.f32 %v8752_v20, %v3224_v58  ;;  %v4069_v37 = vunpack.c.l.b16 %v3492_v31  ;;  %5754 = vmatmul.bf16.gmra.mxu0 %v8651_v14  ;;  %v3544_v14 = vpack.c.bf16 %v8582_v61, %v8582_v61  ;;  %v8848_v31 = vpop.f32.mrf.mxu3 }
 0x352   : > { %v3048_v45 = vpop.f32.mrf.mxu2  ;;  %v8836_v10 = vpop.f32.mrf.mxu1  ;;  %v8856_v61 = vunpack.c.l.b16 %v3557_v32 }
 0x353   : > { %v3309_v7 = vadd.f32 %v8761_v12, %v3273_v4  ;;  %v3049_v46 = vadd.f32 %v3048_v45, %v8333_v52  ;;  %v8840_v2 = vpack.c.b16 %v4069_v37, %v4068_v59  ;;  %v3612_v52 = vpack.c.bf16 %v3580_v3, %v3580_v3 }
 0x354   : > { %v2962_v37 = vadd.f32 %v8328_v17, %v8340_v47  ;;  %v4153_v45 = vunpack.c.l.b16 %v3544_v14  ;;  %v4252_v3 = vunpack.c.l.b16 %v3611_v6 }
 0x355   : > { %v3341_v50 = vmax.f32 %v3309_v7, 0.0  ;;  %v3138_v57 = vadd.f32 %v8771_v13, %v3049_v46  ;;  %5517 = vmatmul.bf16.gmra.mxu1 %v8840_v2  ;;  %v8853_v13 = vunpack.c.l.b16 %v3543_v51  ;;  %v4253_v60 = vunpack.c.l.b16 %v3612_v52 }
 0x356   : > { %v8846_v58 = vpop.f32.mrf.mxu0  ;;  %v3461_v63 = vld [vmem:[#allocation3 + $0x120] sm:$0xff] }
 0x357   : > { %3428 = vst [vmem:[#allocation3 + $0x129] sm:$0xff] %v3341_v50  ;;  %v3227_v4 = vadd.f32 %v8789_v27, %v3138_v57  ;;  %v3558_v59 = vpack.c.bf16 %v3341_v50, %v3341_v50  ;;  %v4179_v57 = vpack.c.b16 %v4153_v45, %v8853_v13  ;;  %v3493_v14 = vpack.c.bf16 %v3461_v63, %v3461_v63 }
 0x358   : > { %9802 = vst [vmem:[#allocation8_spill] sm:$0xff] %v8853_v13  ;;  %v4277_v24 = vpack.c.b16 %v4253_v60, %v4252_v3 }
 0x359   : > { %v3274_v0 = vmul.f32 %v8752_v20, %v3227_v4  ;;  %v8858_v38 = vunpack.c.l.b16 %v3558_v59  ;;  %v8869_v59 = vpop.f32.mrf.mxu3 }
 0x35a   : > { %v3050_v7 = vpop.f32.mrf.mxu2  ;;  %v8860_v46 = vpop.f32.mrf.mxu1 }
 0x35b   : > { %v3310_v27 = vadd.f32 %v8761_v12, %v3274_v0  ;;  %v3051_v50 = vadd.f32 %v3050_v7, %v2962_v37  ;;  %v4070_v0 = vunpack.c.l.b16 %v3493_v14 }
 0x35d   : > { %v3342_v47 = vmax.f32 %v3310_v27, 0.0  ;;  %v3140_v51 = vadd.f32 %v8791_v25, %v3051_v50  ;;  %5675 = vmatmul.bf16.gmra.mxu3 %v4277_v24  ;;  %v3513_v25 = vld [vmem:[#allocation3 + $0x91] sm:$0xff]  ;;  %v9803_v50 = vld [vmem:[#allocation14_spill] sm:$0xff] }
 0x35e   : > { %v3462_v32 = vld [vmem:[#allocation3 + $0x128] sm:$0xff]  ;;  %v8867_v4 = vpop.f32.mrf.mxu0 }
 0x35f   : > { %3429 = vst [vmem:[#allocation3 + $0x139] sm:$0xff] %v3342_v47  ;;  %v3229_v6 = vadd.f32 %v8805_v39, %v3140_v51  ;;  %5576 = vmatmul.bf16.gmra.mxu2 %v4179_v57  ;;  %v3494_v52 = vpack.c.bf16 %v3462_v32, %v3462_v32  ;;  %v3581_v39 = vld [vmem:[#allocation3 + $0xc2] sm:$0xff]  ;;  %v3582_v51 = vld [vmem:[#allocation3 + $0xca] sm:$0xff]  ;;  %v3545_v57 = vpack.c.bf16 %v3513_v25, %v3513_v25 }
 0x360   : > { %v3559_v14 = vpack.c.bf16 %v3342_v47, %v3342_v47  ;;  %v9804_v25 = vld [vmem:[#allocation15_spill] sm:$0xff] }
 0x361   : > { %v3275_v37 = vmul.f32 %v8752_v20, %v3229_v6  ;;  %v4071_v7 = vunpack.c.l.b16 %v3494_v52  ;;  %5759 = vmatmul.bf16.gmra.mxu0 %v8680_v49  ;;  %v3546_v49 = vpack.c.bf16 %v8628_v21, %v8628_v21  ;;  %v8886_v52 = vpop.f32.mrf.mxu3 }
 0x362   : > { %v3053_v45 = vpop.f32.mrf.mxu2  ;;  %v8874_v63 = vpop.f32.mrf.mxu1  ;;  %v8894_v21 = vunpack.c.l.b16 %v3559_v14 }
 0x363   : > { %v3311_v27 = vadd.f32 %v8761_v12, %v3275_v37  ;;  %v3054_v60 = vadd.f32 %v3053_v45, %v9803_v50  ;;  %v8878_v3 = vpack.c.b16 %v4071_v7, %v4070_v0  ;;  %v3613_v37 = vpack.c.bf16 %v3581_v39, %v3581_v39 }
 0x364   : > { %v3614_v45 = vpack.c.bf16 %v3582_v51, %v3582_v51  ;;  %v4155_v17 = vunpack.c.l.b16 %v3546_v49 }
 0x365   : > { %v3343_v24 = vmax.f32 %v3311_v27, 0.0  ;;  %v3143_v32 = vadd.f32 %v8807_v28, %v3054_v60  ;;  %5522 = vmatmul.bf16.gmra.mxu1 %v8878_v3  ;;  %v9805_v27 = vld [vmem:[#allocation13_spill] sm:$0xff]  ;;  %v8891_v28 = vunpack.c.l.b16 %v3545_v57  ;;  %v4254_v51 = vunpack.c.l.b16 %v3613_v37 }
 0x366   : > { %v8884_v6 = vpop.f32.mrf.mxu0  ;;  %v2967_v50 = vadd.f32 %v9805_v27, %v9804_v25  ;;  %v3463_v39 = vld [vmem:[#allocation3 + $0x138] sm:$0xff]  ;;  %v4255_v13 = vunpack.c.l.b16 %v3614_v45  ;;  %v7162_v45 = vld [vmem:[%s9775_s4 + $0x100] sm:$0xff] }
 0x367   : > { %3430 = vst [vmem:[#allocation3 + $0x141] sm:$0xff] %v3343_v24  ;;  %v3232_v0 = vadd.f32 %v8825_v44, %v3143_v32  ;;  %v3560_v7 = vpack.c.bf16 %v3343_v24, %v3343_v24  ;;  %v4180_v49 = vpack.c.b16 %v4155_v17, %v8891_v28  ;;  %v3495_v14 = vpack.c.bf16 %v3463_v39, %v3463_v39 }
 0x368   : > { %9806 = vst [vmem:[#allocation9_spill] sm:$0xff] %v8891_v28  ;;  %5817 = vmatpush.bf16.msrb.mxu1 %v7162_v45 }
 0x369   : > { %v3276_v60 = vmul.f32 %v8752_v20, %v3232_v0  ;;  %v8896_v47 = vunpack.c.l.b16 %v3560_v7  ;;  %v8907_v27 = vpop.f32.mrf.mxu3  ;;  %v4072_v17 = vunpack.c.l.b16 %v3495_v14 }
 0x36a   : > { %v3055_v8 = vpop.f32.mrf.mxu2  ;;  %v8898_v43 = vpop.f32.mrf.mxu1 }
 0x36b   : > { %9807 = vst [vmem:[#allocation10_spill] sm:$0xff] %v8898_v43  ;;  %v3312_v44 = vadd.f32 %v8761_v12, %v3276_v60  ;;  %v3056_v24 = vadd.f32 %v3055_v8, %v2967_v50  ;;  %v4278_v43 = vpack.c.b16 %v4255_v13, %v4254_v51  ;;  %v3515_v60 = vld [vmem:[#allocation3 + $0xa9] sm:$0xff] }
 0x36d   : > { %v3344_v32 = vmax.f32 %v3312_v44, 0.0  ;;  %v3145_v0 = vadd.f32 %v8827_v30, %v3056_v24  ;;  %5680 = vmatmul.bf16.gmra.mxu3 %v4278_v43  ;;  %v3583_v24 = vld [vmem:[#allocation3 + $0xda] sm:$0xff]  ;;  %v3547_v43 = vpack.c.bf16 %v3515_v60, %v3515_v60 }
 0x36e   : > { %v3464_v7 = vld [vmem:[#allocation3 + $0x140] sm:$0xff]  ;;  %v8905_v25 = vpop.f32.mrf.mxu0  ;;  %v3615_v45 = vpack.c.bf16 %v3583_v24, %v3583_v24  ;;  %v9810_v60 = vld [vmem:[#allocation16_spill] sm:$0xff] }
 0x36f   : > { %3431 = vst [vmem:[#allocation3 + $0x151] sm:$0xff] %v3344_v32  ;;  %v3234_v37 = vadd.f32 %v8846_v58, %v3145_v0  ;;  %5581 = vmatmul.bf16.gmra.mxu2 %v4180_v49  ;;  %v3496_v8 = vpack.c.bf16 %v3464_v7, %v3464_v7  ;;  %v3584_v0 = vld [vmem:[#allocation3 + $0xe2] sm:$0xff]  ;;  %v3561_v7 = vpack.c.bf16 %v3344_v32, %v3344_v32 }
 0x370   : > { %v4256_v57 = vunpack.c.l.b16 %v3615_v45 }
 0x371   : > { %v3277_v30 = vmul.f32 %v8752_v20, %v3234_v37  ;;  %v4073_v50 = vunpack.c.l.b16 %v3496_v8  ;;  %5764 = vmatmul.bf16.gmra.mxu0 %v8716_v48  ;;  %v3548_v48 = vpack.c.bf16 %v8653_v22, %v8653_v22  ;;  %v8927_v8 = vpop.f32.mrf.mxu3 }
 0x372   : > { %v3058_v39 = vpop.f32.mrf.mxu2  ;;  %v8915_v13 = vpop.f32.mrf.mxu1 }
 0x373   : > { %9808 = vst [vmem:[#allocation11_spill] sm:$0xff] %v8915_v13  ;;  %v3313_v58 = vadd.f32 %v8761_v12, %v3277_v30  ;;  %v3059_v51 = vadd.f32 %v3058_v39, %v8370_v11  ;;  %v8919_v44 = vpack.c.b16 %v4073_v50, %v4072_v17  ;;  %v3616_v11 = vpack.c.bf16 %v3584_v0, %v3584_v0  ;;  %v7177_v17 = vld [vmem:[%s9775_s4 + $0x178] sm:$0xff]  ;;  %v9809_v50 = vld [vmem:[#allocation17_spill] sm:$0xff] }
 0x374   : > { %v2972_v39 = vadd.f32 %v9810_v60, %v9809_v50  ;;  %v4157_v32 = vunpack.c.l.b16 %v3548_v48  ;;  %5899 = vmatpush.bf16.msra.mxu2 %v7177_v17  ;;  %v7185_v17 = vld [vmem:[%s9775_s4 + $0x1b8] sm:$0xff] }
 0x375   : > { %v3345_v49 = vmax.f32 %v3313_v58, 0.0  ;;  %v3148_v14 = vadd.f32 %v8848_v31, %v3059_v51  ;;  %5527 = vmatmul.bf16.gmra.mxu1 %v8919_v44  ;;  %v8935_v58 = vunpack.c.l.b16 %v3547_v43  ;;  %v8938_v51 = vunpack.c.l.b16 %v3561_v7  ;;  %5988 = vmatpush.bf16.msra.mxu3 %v7185_v17 }
 0x376   : > { %v8925_v37 = vpop.f32.mrf.mxu0  ;;  %v4257_v28 = vunpack.c.l.b16 %v3616_v11 }
 0x377   : > { %3432 = vst [vmem:[#allocation3 + $0x159] sm:$0xff] %v3345_v49  ;;  %v3237_v30 = vadd.f32 %v8867_v4, %v3148_v14  ;;  %v3562_v31 = vpack.c.bf16 %v3345_v49, %v3345_v49  ;;  %v3465_v14 = vld [vmem:[#allocation3 + $0x150] sm:$0xff]  ;;  %v4181_v7 = vpack.c.b16 %v4157_v32, %v8935_v58 }
 0x378   : > { %9811 = vst [vmem:[#allocation12_spill] sm:$0xff] %v8935_v58  ;;  %v4279_v11 = vpack.c.b16 %v4257_v28, %v4256_v57 }
 0x379   : > { %v3278_v22 = vmul.f32 %v8752_v20, %v3237_v30  ;;  %v8940_v24 = vunpack.c.l.b16 %v3562_v31  ;;  %v3497_v30 = vpack.c.bf16 %v3465_v14, %v3465_v14  ;;  %v8954_v45 = vpop.f32.mrf.mxu3 }
 0x37a   : > { %v3060_v0 = vpop.f32.mrf.mxu2  ;;  %v8942_v4 = vpop.f32.mrf.mxu1 }
 0x37b   : > { %v3314_v49 = vadd.f32 %v8761_v12, %v3278_v22  ;;  %v3061_v13 = vadd.f32 %v3060_v0, %v2972_v39 }
 0x37d   : > { %v3346_v50 = vmax.f32 %v3314_v49, 0.0  ;;  %v3150_v48 = vadd.f32 %v8869_v59, %v3061_v13  ;;  %5685 = vmatmul.bf16.gmra.mxu3 %v4279_v11  ;;  %v4074_v13 = vunpack.c.l.b16 %v3497_v30  ;;  %v7201_v30 = vld [vmem:[%s9775_s4 + $0x238] sm:$0xff] }
 0x37e   : > { %v3466_v31 = vld [vmem:[#allocation3 + $0x158] sm:$0xff]  ;;  %v8952_v60 = vpop.f32.mrf.mxu0  ;;  %6166 = vmatpush.bf16.msra.mxu1 %v7201_v30 }
 0x37f   : > { %3433 = vst [vmem:[#allocation3 + $0x169] sm:$0xff] %v3346_v50  ;;  %v3239_v39 = vadd.f32 %v8884_v6, %v3150_v48  ;;  %5586 = vmatmul.bf16.gmra.mxu2 %v4181_v7  ;;  %v3498_v22 = vpack.c.bf16 %v3466_v31, %v3466_v31  ;;  %v3585_v6 = vld [vmem:[#allocation3 + $0xf2] sm:$0xff]  ;;  %v3586_v48 = vld [vmem:[#allocation3 + $0xfa] sm:$0xff]  ;;  %v3563_v31 = vpack.c.bf16 %v3346_v50, %v3346_v50 }
 0x381   : > { %v3279_v59 = vmul.f32 %v8752_v20, %v3239_v39  ;;  %v4075_v32 = vunpack.c.l.b16 %v3498_v22  ;;  %5769 = vmatmul.bf16.gmra.mxu0 %v8765_v34  ;;  %v7193_v34 = vld [vmem:[%s9775_s4 + $0x1f8] sm:$0xff]  ;;  %v3617_v39 = vpack.c.bf16 %v3585_v6, %v3585_v6  ;;  %v3618_v22 = vpack.c.bf16 %v3586_v48, %v3586_v48 }
 0x382   : > { %v3063_v0 = vpop.f32.mrf.mxu2  ;;  %v8959_v14 = vpop.f32.mrf.mxu1  ;;  %6077 = vmatpush.bf16.msra.mxu0 %v7193_v34 }
 0x383   : > { %v3315_v49 = vadd.f32 %v8761_v12, %v3279_v59  ;;  %v3064_v28 = vadd.f32 %v3063_v0, %v8399_v35  ;;  %v8963_v57 = vpack.c.b16 %v4075_v32, %v4074_v13  ;;  %v8975_v35 = vpop.f32.mrf.mxu3  ;;  %v9812_v13 = vld [vmem:[#allocation7_spill] sm:$0xff]  ;;  %v4258_v48 = vunpack.c.l.b16 %v3617_v39 }
 0x384   : > { %v2977_v32 = vadd.f32 %v8691_v1, %v9812_v13  ;;  %v4259_v58 = vunpack.c.l.b16 %v3618_v22  ;;  %v9814_v39 = vpack.c.b16 %v8696_v19, %v8694_v41  ;;  %v3588_v41 = vld [vmem:[#allocation3 + $0x112] sm:$0xff] }
 0x385   : > { %v3347_v7 = vmax.f32 %v3315_v49, 0.0  ;;  %v3153_v17 = vadd.f32 %v8886_v52, %v3064_v28  ;;  %5532 = vmatmul.bf16.gmra.mxu1 %v8963_v57  ;;  %v8981_v49 = vunpack.c.l.b16 %v3563_v31 }
 0x386   : > { %v8973_v11 = vpop.f32.mrf.mxu0  ;;  %v3467_v6 = vld [vmem:[#allocation3 + $0x168] sm:$0xff]  ;;  %v4280_v13 = vpack.c.b16 %v4259_v58, %v4258_v48 }
 0x387   : > { %3434 = vst [vmem:[#allocation3 + $0x171] sm:$0xff] %v3347_v7  ;;  %v3242_v52 = vadd.f32 %v8905_v25, %v3153_v17  ;;  %v3564_v59 = vpack.c.bf16 %v3347_v7, %v3347_v7  ;;  %v3499_v30 = vpack.c.bf16 %v3467_v6, %v3467_v6 }
 0x389   : > { %v3280_v0 = vmul.f32 %v8752_v20, %v3242_v52  ;;  %v8983_v50 = vunpack.c.l.b16 %v3564_v59 }
 0x38a   : > { %v3065_v28 = vpop.f32.mrf.mxu2  ;;  %v8985_v43 = vpop.f32.mrf.mxu1 }
 0x38b   : > { %9813 = vst [vmem:[#allocation14_spill] sm:$0xff] %v8985_v43  ;;  %v3316_v25 = vadd.f32 %v8761_v12, %v3280_v0  ;;  %v3066_v17 = vadd.f32 %v3065_v28, %v2977_v32  ;;  %v4189_v7 = vpack.c.b16 %v8983_v50, %v8981_v49  ;;  %v8991_v59 = vpop.f32.mrf.mxu3  ;;  %v4076_v0 = vunpack.c.l.b16 %v3499_v30  ;;  %v3889_v50 = vld [vmem:[#allocation3 + $0x51] sm:$0xff] }
 0x38d   : > { %v3348_v34 = vmax.f32 %v3316_v25, 0.0  ;;  %v3155_v1 = vadd.f32 %v8907_v27, %v3066_v17  ;;  %5690 = vmatmul.bf16.gmra.mxu3 %v4280_v13  ;;  %v3587_v25 = vld [vmem:[#allocation3 + $0x10a] sm:$0xff] }
 0x38e   : > { %v3468_v31 = vld [vmem:[#allocation3 + $0x170] sm:$0xff]  ;;  %v5735_v52 = vpop.f32.mrf.mxu0 }
 0x38f   : > { %3435 = vst [vmem:[#allocation3 + $0x181] sm:$0xff] %v3348_v34  ;;  %v3244_v43 = vadd.f32 %v8925_v37, %v3155_v1  ;;  %5591 = vmatmul.bf16.gmra.mxu2 %v9814_v39  ;;  %v3500_v22 = vpack.c.bf16 %v3468_v31, %v3468_v31  ;;  %v3619_v34 = vpack.c.bf16 %v3587_v25, %v3587_v25  ;;  %v3590_v25 = vld [vmem:[#allocation3 + $0x12a] sm:$0xff] }
 0x390   : > { %v3620_v1 = vpack.c.bf16 %v3588_v41, %v3588_v41 }
 0x391   : > { %v3281_v32 = vmul.f32 %v8752_v20, %v3244_v43  ;;  %v4077_v28 = vunpack.c.l.b16 %v3500_v22  ;;  %5774 = vmatmul.bf16.gmra.mxu0 %v8801_v18  ;;  %v7176_v20 = vld [vmem:[%s9775_s4 + $0x170] sm:$0xff]  ;;  %v4260_v31 = vunpack.c.l.b16 %v3619_v34 }
 0x392   : > { %v8999_v27 = vpop.f32.mrf.mxu1  ;;  %v5552_v6 = vpop.f32.mrf.mxu2  ;;  %5900 = vmatpush.bf16.msra.mxu2 %v7176_v20  ;;  %v7184_v22 = vld [vmem:[%s9775_s4 + $0x1b0] sm:$0xff] }
 0x393   : > { %v3317_v58 = vadd.f32 %v8761_v12, %v3281_v32  ;;  %v5553_v48 = vadd.f32 %v5552_v6, %v8710_v29  ;;  %v9003_v37 = vpack.c.b16 %v4077_v28, %v4076_v0  ;;  %v5651_v43 = vpop.f32.mrf.mxu3  ;;  %5989 = vmatpush.bf16.msra.mxu3 %v7184_v22 }
 0x395   : > { %v3349_v19 = vmax.f32 %v3317_v58, 0.0  ;;  %v5642_v17 = vadd.f32 %v8927_v8, %v5553_v48  ;;  %5537 = vmatmul.bf16.gmra.mxu1 %v9003_v37  ;;  %v4261_v8 = vunpack.c.l.b16 %v3620_v1  ;;  %v3589_v48 = vld [vmem:[#allocation3 + $0x122] sm:$0xff] }
 0x396   : > { %v5737_v18 = vpop.f32.mrf.mxu0 }
 0x397   : > { %3436 = vst [vmem:[#allocation3 + $0x189] sm:$0xff] %v3349_v19  ;;  %v9011_v29 = vadd.f32 %v8952_v60, %v5642_v17  ;;  %v4281_v28 = vpack.c.b16 %v4261_v8, %v4260_v31  ;;  %v9815_v60 = vpack.c.b16 %v8730_v5, %v8728_v42  ;;  %v7192_v42 = vld [vmem:[%s9775_s4 + $0x1f0] sm:$0xff]  ;;  %v3621_v19 = vpack.c.bf16 %v3589_v48, %v3589_v48 }
 0x398   : > { %v7200_v5 = vld [vmem:[%s9775_s4 + $0x230] sm:$0xff]  ;;  %v3622_v17 = vpack.c.bf16 %v3590_v25, %v3590_v25  ;;  %6078 = vmatpush.bf16.msra.mxu0 %v7192_v42 }
 0x399   : > { %6167 = vmatpush.bf16.msra.mxu1 %v7200_v5 }
 0x39a   : > { %v9013_v12 = vpop.f32.mrf.mxu1  ;;  %v5554_v30 = vpop.f32.mrf.mxu2  ;;  %v4263_v34 = vunpack.c.l.b16 %v3622_v17 }
 0x39b   : > { %v5555_v13 = vadd.f32 %v5554_v30, %v8732_v56  ;;  %v5653_v0 = vpop.f32.mrf.mxu3 }
 0x39d   : > { %v5644_v39 = vadd.f32 %v8954_v45, %v5555_v13  ;;  %5695 = vmatmul.bf16.gmra.mxu3 %v4281_v28 }
 0x39e   : > { %v5740_v32 = vpop.f32.mrf.mxu0 }
 0x39f   : > { %5596 = vmatmul.bf16.gmra.mxu2 %v9815_v60  ;;  %v9024_v6 = vadd.f32 %v8973_v11, %v5644_v39  ;;  %v9816_v39 = vpack.c.b16 %v8779_v33, %v8777_v15  ;;  %v7175_v15 = vld [vmem:[%s9775_s4 + $0x168] sm:$0xff] }
 0x3a0   : > { %5901 = vmatpush.bf16.msra.mxu2 %v7175_v15 }
 0x3a1   : > { %5779 = vmatmul.bf16.gmra.mxu0 %v8840_v2 }
 0x3a2   : > { %v9027_v56 = vpop.f32.mrf.mxu1  ;;  %v5557_v45 = vpop.f32.mrf.mxu2 }
 0x3a3   : > { %v5558_v58 = vadd.f32 %v5557_v45, %v8756_v54  ;;  %v5656_v11 = vpop.f32.mrf.mxu3  ;;  %v3592_v45 = vld [vmem:[#allocation3 + $0x142] sm:$0xff] }
 0x3a4   : > { %v3624_v48 = vpack.c.bf16 %v3592_v45, %v3592_v45 }
 0x3a5   : > { %v5647_v41 = vadd.f32 %v8975_v35, %v5558_v58  ;;  %5818 = vmatmul.bf16.vlgmr.msrb.gmra.mxu1 %v8702_v23  ;;  %v4262_v23 = vunpack.c.l.b16 %v3621_v19 }
 0x3a6   : > { %v5742_v2 = vpop.f32.mrf.mxu0  ;;  %v4265_v42 = vunpack.c.l.b16 %v3624_v48 }
 0x3a7   : > { %v9038_v54 = vadd.f32 %v5735_v52, %v5647_v41  ;;  %v4282_v13 = vpack.c.b16 %v4263_v34, %v4262_v23  ;;  %v9817_v23 = vpack.c.b16 %v8815_v26, %v8813_v9  ;;  %v7191_v9 = vld [vmem:[%s9775_s4 + $0x1e8] sm:$0xff] }
 0x3a8   : > { %v7199_v26 = vld [vmem:[%s9775_s4 + $0x228] sm:$0xff]  ;;  %6079 = vmatpush.bf16.msra.mxu0 %v7191_v9  ;;  %v7182_v9 = vld [vmem:[%s9775_s4 + $0x1a0] sm:$0xff] }
 0x3a9   : > { %6168 = vmatpush.bf16.msra.mxu1 %v7199_v26  ;;  %v7190_v26 = vld [vmem:[%s9775_s4 + $0x1e0] sm:$0xff] }
 0x3aa   : > { %v9040_v20 = vpop.f32.mrf.mxu1  ;;  %v5559_v35 = vpop.f32.mrf.mxu2 }
 0x3ab   : > { %v5560_v1 = vadd.f32 %v5559_v35, %v8781_v62  ;;  %v5658_v8 = vpop.f32.mrf.mxu3  ;;  %v3591_v62 = vld [vmem:[#allocation3 + $0x13a] sm:$0xff] }
 0x3ac   : > { %v3623_v58 = vpack.c.bf16 %v3591_v62, %v3591_v62  ;;  %6080 = vmatpush.bf16.msra.mxu0 %v7190_v26 }
 0x3ad   : > { %v5649_v30 = vadd.f32 %v8991_v59, %v5560_v1  ;;  %5700 = vmatmul.bf16.gmra.mxu3 %v4282_v13  ;;  %v3593_v1 = vld [vmem:[#allocation3 + $0x152] sm:$0xff] }
 0x3ae   : > { %v5745_v31 = vpop.f32.mrf.mxu0 }
 0x3af   : > { %5601 = vmatmul.bf16.gmra.mxu2 %v9816_v39  ;;  %v9047_v22 = vadd.f32 %v5737_v18, %v5649_v30  ;;  %v3594_v30 = vld [vmem:[#allocation3 + $0x15a] sm:$0xff]  ;;  %v3625_v39 = vpack.c.bf16 %v3593_v1, %v3593_v1 }
 0x3b1   : > { %5784 = vmatmul.bf16.gmra.mxu0 %v8878_v3 }
 0x3b2   : > { %v9050_v52 = vpop.f32.mrf.mxu1  ;;  %v5562_v28 = vpop.f32.mrf.mxu2 }
 0x3b3   : > { %v5563_v60 = vadd.f32 %v5562_v28, %v8797_v36  ;;  %v5661_v18 = vpop.f32.mrf.mxu3  ;;  %v4264_v36 = vunpack.c.l.b16 %v3623_v58  ;;  %v3626_v28 = vpack.c.bf16 %v3594_v30, %v3594_v30 }
 0x3b5   : > { %v5652_v59 = vadd.f32 %v5651_v43, %v5563_v60  ;;  %5823 = vmatmul.bf16.gmra.mxu1 %v8738_v53  ;;  %v7183_v53 = vld [vmem:[%s9775_s4 + $0x1a8] sm:$0xff]  ;;  %v4283_v35 = vpack.c.b16 %v4265_v42, %v4264_v36  ;;  %v4266_v60 = vunpack.c.l.b16 %v3625_v39  ;;  %v4267_v62 = vunpack.c.l.b16 %v3626_v28 }
 0x3b6   : > { %v5747_v33 = vpop.f32.mrf.mxu0  ;;  %5990 = vmatpush.bf16.msra.mxu3 %v7183_v53 }
 0x3b7   : > { %v9057_v3 = vadd.f32 %v5740_v32, %v5652_v59  ;;  %v4284_v48 = vpack.c.b16 %v4267_v62, %v4266_v60  ;;  %v7181_v62 = vld [vmem:[%s9775_s4 + $0x198] sm:$0xff] }
 0x3ba   : > { %v9059_v25 = vpop.f32.mrf.mxu1  ;;  %v5564_v41 = vpop.f32.mrf.mxu2  ;;  %5991 = vmatpush.bf16.msra.mxu3 %v7182_v9 }
 0x3bb   : > { %v5565_v43 = vadd.f32 %v5564_v41, %v8817_v40  ;;  %v5663_v17 = vpop.f32.mrf.mxu3  ;;  %v9818_v41 = vpack.c.b16 %v8858_v38, %v8856_v61  ;;  %v7174_v61 = vld [vmem:[%s9775_s4 + $0x160] sm:$0xff] }
 0x3bc   : > { %5902 = vmatpush.bf16.msra.mxu2 %v7174_v61  ;;  %v7188_v61 = vld [vmem:[%s9775_s4 + $0x1d0] sm:$0xff] }
 0x3bd   : > { %v5654_v5 = vadd.f32 %v5653_v0, %v5565_v43  ;;  %5705 = vmatmul.bf16.gmra.mxu3 %v4283_v35  ;;  %v3596_v43 = vld [vmem:[#allocation3 + $0x172] sm:$0xff] }
 0x3be   : > { %v5750_v19 = vpop.f32.mrf.mxu0  ;;  %5992 = vmatpush.bf16.msra.mxu3 %v7181_v62 }
 0x3bf   : > { %5606 = vmatmul.bf16.gmra.mxu2 %v9817_v23  ;;  %v9068_v32 = vadd.f32 %v5742_v2, %v5654_v5  ;;  %v3702_v23 = vld [vmem:[#allocation3 + $0x81] sm:$0xff] }
 0x3c0   : > { %v3734_v30 = vpack.c.bf16 %v3702_v23, %v3702_v23 }
 0x3c1   : > { %5789 = vmatmul.bf16.gmra.mxu0 %v8919_v44 }
 0x3c2   : > { %v9071_v34 = vpop.f32.mrf.mxu1  ;;  %v5567_v40 = vpop.f32.mrf.mxu2  ;;  %v9127_v60 = vunpack.c.l.b16 %v3734_v30  ;;  %v3704_v30 = vld [vmem:[#allocation3 + $0x99] sm:$0xff] }
 0x3c3   : > { %v5568_v0 = vadd.f32 %v5567_v40, %v8836_v10  ;;  %v9081_v44 = vpop.f32.mrf.mxu3 }
 0x3c5   : > { %v5657_v13 = vadd.f32 %v5656_v11, %v5568_v0  ;;  %5828 = vmatmul.bf16.gmra.mxu1 %v8787_v55 }
 0x3c6   : > { %v5752_v2 = vpop.f32.mrf.mxu0 }
 0x3c7   : > { %v9083_v10 = vadd.f32 %v5745_v31, %v5657_v13 }
 0x3ca   : > { %v9085_v11 = vpop.f32.mrf.mxu1  ;;  %v5569_v55 = vpop.f32.mrf.mxu2 }
 0x3cb   : > { %v5570_v45 = vadd.f32 %v5569_v55, %v8860_v46  ;;  %v9090_v58 = vpop.f32.mrf.mxu3  ;;  %v9820_v55 = vpack.c.b16 %v8896_v47, %v8894_v21  ;;  %v7189_v21 = vld [vmem:[%s9775_s4 + $0x1d8] sm:$0xff] }
 0x3cc   : > { %6081 = vmatpush.bf16.msra.mxu0 %v7189_v21  ;;  %v3736_v21 = vpack.c.bf16 %v3704_v30, %v3704_v30  ;;  %v3825_v30 = vld [vmem:[#allocation3 + $0x50] sm:$0xff] }
 0x3cd   : > { %v5659_v59 = vadd.f32 %v5658_v8, %v5570_v45  ;;  %5710 = vmatmul.bf16.gmra.mxu3 %v4284_v48  ;;  %v3595_v8 = vld [vmem:[#allocation3 + $0x16a] sm:$0xff] }
 0x3ce   : > { %v9088_v15 = vpop.f32.mrf.mxu0  ;;  %v3627_v53 = vpack.c.bf16 %v3595_v8, %v3595_v8  ;;  %v9821_v48 = vld [vmem:[#allocation11_spill] sm:$0xff]  ;;  %v3823_v8 = vld [vmem:[#allocation3 + $0x38] sm:$0xff] }
 0x3cf   : > { %5611 = vmatmul.bf16.gmra.mxu2 %v9818_v41  ;;  %v9095_v36 = vadd.f32 %v5747_v33, %v5659_v59  ;;  %v3855_v9 = vpack.c.bf16 %v3823_v8, %v3823_v8 }
 0x3d0   : > { %6082 = vmatpush.bf16.msra.mxu0 %v7188_v61 }
 0x3d1   : > { %5794 = vmatmul.bf16.gmra.mxu0 %v8963_v57  ;;  %v3628_v57 = vpack.c.bf16 %v3596_v43, %v3596_v43 }
 0x3d2   : > { %v9098_v31 = vpop.f32.mrf.mxu1  ;;  %v5572_v42 = vpop.f32.mrf.mxu2 }
 0x3d3   : > { %v5573_v46 = vadd.f32 %v5572_v42, %v8874_v63  ;;  %v9107_v33 = vpop.f32.mrf.mxu3  ;;  %v4269_v0 = vunpack.c.l.b16 %v3628_v57  ;;  %v9822_v42 = vld [vmem:[#allocation8_spill] sm:$0xff]  ;;  %v3659_v57 = vld [vmem:[#allocation3 + $0x180] sm:$0xff] }
 0x3d4   : > { %v3691_v26 = vpack.c.bf16 %v3659_v57, %v3659_v57 }
 0x3d5   : > { %v5662_v5 = vadd.f32 %v5661_v18, %v5573_v46  ;;  %5833 = vmatmul.bf16.gmra.mxu1 %v8823_v16  ;;  %v4268_v18 = vunpack.c.l.b16 %v3627_v53  ;;  %v9819_v16 = vld [vmem:[#allocation10_spill] sm:$0xff]  ;;  %v4466_v46 = vpack.c.b16 %v9127_v60, %v9822_v42  ;;  %v7170_v42 = vld [vmem:[%s9775_s4 + $0x140] sm:$0xff] }
 0x3d6   : > { %v9105_v38 = vpop.f32.mrf.mxu0 }
 0x3d7   : > { %v9109_v35 = vadd.f32 %v5750_v19, %v5662_v5  ;;  %v4285_v28 = vpack.c.b16 %v4269_v0, %v4268_v18  ;;  %v7180_v5 = vld [vmem:[%s9775_s4 + $0x190] sm:$0xff]  ;;  %v7171_v18 = vld [vmem:[%s9775_s4 + $0x148] sm:$0xff] }
 0x3d8   : > { %5993 = vmatpush.bf16.msra.mxu3 %v7180_v5  ;;  %v7179_v0 = vld [vmem:[%s9775_s4 + $0x188] sm:$0xff] }
 0x3da   : > { %v9111_v63 = vpop.f32.mrf.mxu1  ;;  %v5574_v40 = vpop.f32.mrf.mxu2 }
 0x3db   : > { %v5575_v1 = vadd.f32 %v5574_v40, %v9819_v16  ;;  %v9122_v39 = vpop.f32.mrf.mxu3  ;;  %v3822_v16 = vld [vmem:[#allocation3 + $0x30] sm:$0xff] }
 0x3dc   : > { %5994 = vmatpush.bf16.msra.mxu3 %v7179_v0  ;;  %v9824_v0 = vld [vmem:[#allocation9_spill] sm:$0xff] }
 0x3dd   : > { %v5664_v13 = vadd.f32 %v5663_v17, %v5575_v1  ;;  %v7173_v17 = vld [vmem:[%s9775_s4 + $0x158] sm:$0xff]  ;;  %5715 = vmatmul.bf16.gmra.mxu3 %v4285_v28 }
 0x3de   : > { %v9120_v19 = vpop.f32.mrf.mxu0  ;;  %5903 = vmatpush.bf16.msra.mxu2 %v7173_v17  ;;  %v3854_v17 = vpack.c.bf16 %v3822_v16, %v3822_v16 }
 0x3df   : > { %5616 = vmatmul.bf16.gmra.mxu2 %v9820_v55  ;;  %v9135_v45 = vadd.f32 %v5752_v2, %v5664_v13  ;;  %v3660_v2 = vld [vmem:[#allocation3 + $0x188] sm:$0xff]  ;;  %v7187_v13 = vld [vmem:[%s9775_s4 + $0x1c8] sm:$0xff] }
 0x3e0   : > { %v3692_v40 = vpack.c.bf16 %v3660_v2, %v3660_v2  ;;  %6083 = vmatpush.bf16.msra.mxu0 %v7187_v13  ;;  %v3886_v13 = vld [vmem:[#allocation3 + $0x31] sm:$0xff] }
 0x3e1   : > { %5799 = vmatmul.bf16.gmra.mxu0 %v9003_v37  ;;  %v7172_v37 = vld [vmem:[%s9775_s4 + $0x150] sm:$0xff] }
 0x3e2   : > { %v9141_v47 = vpop.f32.mrf.mxu1  ;;  %v5577_v59 = vpop.f32.mrf.mxu2  ;;  %5904 = vmatpush.bf16.msra.mxu2 %v7172_v37  ;;  %v9195_v37 = vunpack.c.l.b16 %v3736_v21  ;;  %v3918_v21 = vpack.c.bf16 %v3886_v13, %v3886_v13 }
 0x3e3   : > { %v5578_v41 = vadd.f32 %v5577_v59, %v9821_v48  ;;  %v9158_v23 = vpop.f32.mrf.mxu3  ;;  %v4365_v59 = vunpack.c.l.b16 %v3692_v40 }
 0x3e5   : > { %v5667_v43 = vadd.f32 %v9081_v44, %v5578_v41  ;;  %5838 = vmatmul.bf16.gmra.mxu1 %v4466_v46  ;;  %v7198_v44 = vld [vmem:[%s9775_s4 + $0x220] sm:$0xff]  ;;  %v4364_v41 = vunpack.c.l.b16 %v3691_v26 }
 0x3e6   : > { %v9156_v53 = vpop.f32.mrf.mxu0  ;;  %6169 = vmatpush.bf16.msra.mxu1 %v7198_v44  ;;  %5905 = vmatpush.bf16.msra.mxu2 %v7171_v18  ;;  %v7178_v46 = vld [vmem:[%s9775_s4 + $0x180] sm:$0xff] }
 0x3e7   : > { %v9170_v1 = vadd.f32 %v9088_v15, %v5667_v43  ;;  %v4623_v15 = vunpack.c.l.b16 %v3855_v9  ;;  %v4622_v43 = vunpack.c.l.b16 %v3854_v17  ;;  %v4381_v5 = vpack.c.b16 %v4365_v59, %v4364_v41  ;;  %5995 = vmatpush.bf16.msra.mxu3 %v7178_v46 }
 0x3e9   : > { %v4654_v57 = vpack.c.b16 %v4623_v15, %v4622_v43 }
 0x3ea   : > { %v9175_v28 = vpop.f32.mrf.mxu1  ;;  %v5579_v55 = vpop.f32.mrf.mxu2  ;;  %5906 = vmatpush.bf16.msra.mxu2 %v7170_v42 }
 0x3eb   : > { %v5580_v62 = vadd.f32 %v5579_v55, %v8942_v4  ;;  %v7186_v4 = vld [vmem:[%s9775_s4 + $0x1c0] sm:$0xff]  ;;  %v9190_v8 = vpop.f32.mrf.mxu3  ;;  %v3824_v55 = vld [vmem:[#allocation3 + $0x48] sm:$0xff] }
 0x3ec   : > { %6084 = vmatpush.bf16.msra.mxu0 %v7186_v4 }
 0x3ed   : > { %v5669_v48 = vadd.f32 %v9090_v58, %v5580_v62  ;;  %v9823_v58 = vpack.c.b16 %v8940_v24, %v8938_v51  ;;  %5996 = vmatmul.bf16.vlgmr.msra.gmra.mxu3 %v4654_v57  ;;  %v4467_v51 = vpack.c.b16 %v9195_v37, %v9824_v0  ;;  %v3887_v24 = vld [vmem:[#allocation3 + $0x39] sm:$0xff]  ;;  %v3706_v62 = vld [vmem:[#allocation3 + $0xb1] sm:$0xff] }
 0x3ee   : > { %v9188_v2 = vpop.f32.mrf.mxu0  ;;  %v3919_v26 = vpack.c.bf16 %v3887_v24, %v3887_v24  ;;  %v3738_v42 = vpack.c.bf16 %v3706_v62, %v3706_v62  ;;  %v7197_v62 = vld [vmem:[%s9775_s4 + $0x218] sm:$0xff] }
 0x3ef   : > { %5621 = vmatmul.bf16.gmra.mxu2 %v9823_v58  ;;  %v9198_v61 = vadd.f32 %v9105_v38, %v5669_v48  ;;  %v3856_v48 = vpack.c.bf16 %v3824_v55, %v3824_v55  ;;  %v4718_v58 = vunpack.c.l.b16 %v3918_v21  ;;  %6170 = vmatpush.bf16.msra.mxu1 %v7197_v62 }
 0x3f0   : > { %v4719_v46 = vunpack.c.l.b16 %v3919_v26  ;;  %v9826_v26 = vld [vmem:[#allocation12_spill] sm:$0xff] }
 0x3f1   : > { %5804 = vmatmul.bf16.gmra.mxu0 %v4381_v5 }
 0x3f2   : > { %v9200_v44 = vpop.f32.mrf.mxu1  ;;  %v5582_v40 = vpop.f32.mrf.mxu2 }
 0x3f3   : > { %v5583_v18 = vadd.f32 %v5582_v40, %v8959_v14  ;;  %v9208_v9 = vpop.f32.mrf.mxu3  ;;  %v3857_v14 = vpack.c.bf16 %v3825_v30, %v3825_v30  ;;  %v9224_v40 = vunpack.c.l.b16 %v3738_v42  ;;  %v3758_v30 = vld [vmem:[#allocation3 + $0x22] sm:$0xff] }
 0x3f5   : > { %v5672_v16 = vadd.f32 %v9107_v33, %v5583_v18  ;;  %5843 = vmatmul.bf16.gmra.mxu1 %v4467_v51  ;;  %v9825_v33 = vld [vmem:[#allocation14_spill] sm:$0xff]  ;;  %v4625_v4 = vunpack.c.l.b16 %v3857_v14  ;;  %v4750_v18 = vpack.c.b16 %v4719_v46, %v4718_v58  ;;  %v4468_v49 = vpack.c.b16 %v9224_v40, %v9826_v26 }
 0x3f6   : > { %v9206_v38 = vpop.f32.mrf.mxu0  ;;  %v3827_v14 = vld [vmem:[#allocation3 + $0x68] sm:$0xff] }
 0x3f7   : > { %v9211_v17 = vadd.f32 %v9120_v19, %v5672_v16  ;;  %v4624_v19 = vunpack.c.l.b16 %v3856_v48  ;;  %v3757_v16 = vld [vmem:[#allocation3 + $0x1a] sm:$0xff]  ;;  %v3859_v42 = vpack.c.bf16 %v3827_v14, %v3827_v14 }
 0x3f8   : > { %v3789_v55 = vpack.c.bf16 %v3757_v16, %v3757_v16 }
 0x3f9   : > { %v4655_v51 = vpack.c.b16 %v4625_v4, %v4624_v19 }
 0x3fa   : > { %v9213_v59 = vpop.f32.mrf.mxu1  ;;  %v5584_v15 = vpop.f32.mrf.mxu2  ;;  %v4526_v46 = vunpack.c.l.b16 %v3789_v55 }
 0x3fb   : > { %v5585_v41 = vadd.f32 %v5584_v15, %v9825_v33  ;;  %v9219_v57 = vpop.f32.mrf.mxu3  ;;  %v3888_v15 = vld [vmem:[#allocation3 + $0x49] sm:$0xff]  ;;  %v3826_v33 = vld [vmem:[#allocation3 + $0x60] sm:$0xff] }
 0x3fd   : > { %v5674_v43 = vadd.f32 %v9122_v39, %v5585_v41  ;;  %6001 = vmatmul.bf16.gmra.mxu3 %v4655_v51  ;;  %v3858_v51 = vpack.c.bf16 %v3826_v33, %v3826_v33 }
 0x3fe   : > { %v9217_v5 = vpop.f32.mrf.mxu0 }
 0x3ff   : > { %5626 = vmatmul.bf16.gmra.mxu2 %v4189_v7  ;;  %v9227_v0 = vadd.f32 %v9156_v53, %v5674_v43  ;;  %v3790_v53 = vpack.c.bf16 %v3758_v30, %v3758_v30  ;;  %v3920_v43 = vpack.c.bf16 %v3888_v15, %v3888_v15 }
 0x401   : > { %6085 = vmatmul.bf16.vlgmr.msra.gmra.mxu0 %v4750_v18  ;;  %v4527_v4 = vunpack.c.l.b16 %v3790_v53  ;;  %v3707_v18 = vld [vmem:[#allocation3 + $0xc1] sm:$0xff]  ;;  %v4626_v53 = vunpack.c.l.b16 %v3858_v51 }
 0x402   : > { %v9229_v24 = vpop.f32.mrf.mxu1  ;;  %v5587_v39 = vpop.f32.mrf.mxu2  ;;  %v3829_v51 = vld [vmem:[#allocation3 + $0x80] sm:$0xff] }
 0x403   : > { %v5588_v13 = vadd.f32 %v5587_v39, %v8999_v27  ;;  %v9240_v48 = vpop.f32.mrf.mxu3  ;;  %v3921_v27 = vpack.c.bf16 %v3889_v50, %v3889_v50  ;;  %v4720_v50 = vunpack.c.l.b16 %v3920_v43  ;;  %v3891_v43 = vld [vmem:[#allocation3 + $0x69] sm:$0xff] }
 0x405   : > { %v5677_v7 = vadd.f32 %v9158_v23, %v5588_v13  ;;  %5848 = vmatmul.bf16.gmra.mxu1 %v4468_v49  ;;  %v3708_v23 = vld [vmem:[#allocation3 + $0xc9] sm:$0xff]  ;;  %v4721_v30 = vunpack.c.l.b16 %v3921_v27  ;;  %v4627_v13 = vunpack.c.l.b16 %v3859_v42  ;;  %v4558_v49 = vpack.c.b16 %v4527_v4, %v4526_v46  ;;  %v3760_v42 = vld [vmem:[#allocation3 + $0x3a] sm:$0xff] }
 0x406   : > { %v9238_v21 = vpop.f32.mrf.mxu0  ;;  %v3740_v16 = vpack.c.bf16 %v3708_v23, %v3708_v23  ;;  %v3759_v23 = vld [vmem:[#allocation3 + $0x32] sm:$0xff] }
 0x407   : > { %v9243_v41 = vadd.f32 %v9188_v2, %v5677_v7  ;;  %v3739_v2 = vpack.c.bf16 %v3707_v18, %v3707_v18  ;;  %v4751_v14 = vpack.c.b16 %v4721_v30, %v4720_v50  ;;  %v3792_v18 = vpack.c.bf16 %v3760_v42, %v3760_v42 }
 0x408   : > { %v4445_v62 = vunpack.c.l.b16 %v3740_v16  ;;  %v3890_v16 = vld [vmem:[#allocation3 + $0x61] sm:$0xff] }
 0x409   : > { %v4444_v33 = vunpack.c.l.b16 %v3739_v2  ;;  %v3861_v2 = vpack.c.bf16 %v3829_v51, %v3829_v51 }
 0x40a   : > { %v9245_v58 = vpop.f32.mrf.mxu1  ;;  %v5589_v19 = vpop.f32.mrf.mxu2 }
 0x40b   : > { %v5590_v39 = vadd.f32 %v5589_v19, %v9013_v12  ;;  %v9251_v55 = vpop.f32.mrf.mxu3  ;;  %v4656_v12 = vpack.c.b16 %v4627_v13, %v4626_v53  ;;  %v9259_v4 = vpack.c.b16 %v4445_v62, %v4444_v33  ;;  %v3923_v13 = vpack.c.bf16 %v3891_v43, %v3891_v43 }
 0x40c   : > { %v4529_v53 = vunpack.c.l.b16 %v3792_v18 }
 0x40d   : > { %v5679_v26 = vadd.f32 %v9190_v8, %v5590_v39  ;;  %6006 = vmatmul.bf16.gmra.mxu3 %v4656_v12  ;;  %v3709_v12 = vld [vmem:[#allocation3 + $0xd9] sm:$0xff]  ;;  %v4723_v42 = vunpack.c.l.b16 %v3923_v13 }
 0x40e   : > { %v9249_v7 = vpop.f32.mrf.mxu0 }
 0x40f   : > { %5907 = vmatmul.bf16.vlgmr.msra.gmra.mxu2 %v4558_v49  ;;  %v9254_v15 = vadd.f32 %v9206_v38, %v5679_v26  ;;  %v3791_v38 = vpack.c.bf16 %v3759_v23, %v3759_v23  ;;  %v3828_v26 = vld [vmem:[#allocation3 + $0x78] sm:$0xff] }
 0x410   : > { %v3860_v33 = vpack.c.bf16 %v3828_v26, %v3828_v26 }
 0x411   : > { %9827 = vst [vmem:[#allocation15_spill] sm:$0xff] %v9254_v15  ;;  %6090 = vmatmul.bf16.gmra.mxu0 %v4751_v14  ;;  %v4528_v50 = vunpack.c.l.b16 %v3791_v38 }
 0x412   : > { %v9256_v27 = vpop.f32.mrf.mxu1  ;;  %v5592_v8 = vpop.f32.mrf.mxu2  ;;  %v4628_v18 = vunpack.c.l.b16 %v3860_v33 }
 0x413   : > { %v5593_v46 = vadd.f32 %v5592_v8, %v9027_v56  ;;  %v9265_v30 = vpop.f32.mrf.mxu3  ;;  %v3710_v56 = vld [vmem:[#allocation3 + $0xe1] sm:$0xff]  ;;  %v9274_v15 = vpack.c.b16 %v4529_v53, %v4528_v50  ;;  %v3761_v50 = vld [vmem:[#allocation3 + $0x4a] sm:$0xff]  ;;  %v3762_v53 = vld [vmem:[#allocation3 + $0x52] sm:$0xff] }
 0x414   : > { %v3742_v23 = vpack.c.bf16 %v3710_v56, %v3710_v56 }
 0x415   : > { %v5682_v19 = vadd.f32 %v9208_v9, %v5593_v46  ;;  %5853 = vmatmul.bf16.gmra.mxu1 %v9259_v4  ;;  %v3922_v9 = vpack.c.bf16 %v3890_v16, %v3890_v16  ;;  %v4629_v46 = vunpack.c.l.b16 %v3861_v2 }
 0x416   : > { %v9263_v39 = vpop.f32.mrf.mxu0  ;;  %v4447_v16 = vunpack.c.l.b16 %v3742_v23  ;;  %v7196_v23 = vld [vmem:[%s9775_s4 + $0x210] sm:$0xff] }
 0x417   : > { %v9268_v49 = vadd.f32 %v9217_v5, %v5682_v19  ;;  %v3741_v5 = vpack.c.bf16 %v3709_v12, %v3709_v12  ;;  %v4722_v19 = vunpack.c.l.b16 %v3922_v9  ;;  %v4657_v13 = vpack.c.b16 %v4629_v46, %v4628_v18  ;;  %6171 = vmatpush.bf16.msra.mxu1 %v7196_v23 }
 0x419   : > { %v4752_v26 = vpack.c.b16 %v4723_v42, %v4722_v19  ;;  %v4446_v56 = vunpack.c.l.b16 %v3741_v5  ;;  %v3831_v42 = vld [vmem:[#allocation3 + $0x98] sm:$0xff] }
 0x41a   : > { %v9270_v62 = vpop.f32.mrf.mxu1  ;;  %v5594_v14 = vpop.f32.mrf.mxu2  ;;  %v3863_v19 = vpack.c.bf16 %v3831_v42, %v3831_v42 }
 0x41b   : > { %v5595_v8 = vadd.f32 %v5594_v14, %v9040_v20  ;;  %v9278_v38 = vpop.f32.mrf.mxu3  ;;  %v9288_v12 = vpack.c.b16 %v4447_v16, %v4446_v56 }
 0x41c   : > { %v4631_v23 = vunpack.c.l.b16 %v3863_v19 }
 0x41d   : > { %v5684_v43 = vadd.f32 %v9219_v57, %v5595_v8  ;;  %6011 = vmatmul.bf16.gmra.mxu3 %v4657_v13  ;;  %v3794_v8 = vpack.c.bf16 %v3762_v53, %v3762_v53 }
 0x41e   : > { %v9276_v51 = vpop.f32.mrf.mxu0 }
 0x41f   : > { %5912 = vmatmul.bf16.gmra.mxu2 %v9274_v15  ;;  %v9282_v20 = vadd.f32 %v9238_v21, %v5684_v43  ;;  %v3793_v21 = vpack.c.bf16 %v3761_v50, %v3761_v50  ;;  %v3892_v43 = vld [vmem:[#allocation3 + $0x79] sm:$0xff]  ;;  %v4531_v16 = vunpack.c.l.b16 %v3794_v8 }
 0x421   : > { %9828 = vst [vmem:[#allocation13_spill] sm:$0xff] %v9282_v20  ;;  %6095 = vmatmul.bf16.gmra.mxu0 %v4752_v26  ;;  %v4530_v18 = vunpack.c.l.b16 %v3793_v21  ;;  %v3924_v26 = vpack.c.bf16 %v3892_v43, %v3892_v43 }
 0x422   : > { %v5597_v57 = vpop.f32.mrf.mxu2  ;;  %v5819_v2 = vpop.f32.mrf.mxu1 }
 0x423   : > { %v5598_v9 = vadd.f32 %v5597_v57, %v9050_v52  ;;  %v9286_v14 = vadd.f32 %v5819_v2, %v9011_v29  ;;  %v9297_v52 = vpop.f32.mrf.mxu3  ;;  %v3830_v29 = vld [vmem:[#allocation3 + $0x90] sm:$0xff]  ;;  %v4724_v42 = vunpack.c.l.b16 %v3924_v26 }
 0x424   : > { %v3711_v57 = vld [vmem:[#allocation3 + $0xf1] sm:$0xff]  ;;  %v3862_v2 = vpack.c.bf16 %v3830_v29, %v3830_v29 }
 0x425   : > { %v5687_v33 = vadd.f32 %v9240_v48, %v5598_v9  ;;  %5858 = vmatmul.bf16.gmra.mxu1 %v9288_v12  ;;  %v3712_v48 = vld [vmem:[#allocation3 + $0xf9] sm:$0xff]  ;;  %v3764_v26 = vld [vmem:[#allocation3 + $0x6a] sm:$0xff] }
 0x426   : > { %v9295_v46 = vpop.f32.mrf.mxu0  ;;  %v3744_v9 = vpack.c.bf16 %v3712_v48, %v3712_v48  ;;  %v4630_v43 = vunpack.c.l.b16 %v3862_v2  ;;  %v3833_v2 = vld [vmem:[#allocation3 + $0xb0] sm:$0xff] }
 0x427   : > { %v9300_v5 = vadd.f32 %v9249_v7, %v5687_v33  ;;  %v9307_v7 = vpack.c.b16 %v4531_v16, %v4530_v18  ;;  %v3743_v33 = vpack.c.bf16 %v3711_v57, %v3711_v57  ;;  %v3763_v16 = vld [vmem:[#allocation3 + $0x62] sm:$0xff] }
 0x428   : > { %v4449_v29 = vunpack.c.l.b16 %v3744_v9  ;;  %v4658_v48 = vpack.c.b16 %v4631_v23, %v4630_v43  ;;  %v3894_v9 = vld [vmem:[#allocation3 + $0x91] sm:$0xff] }
 0x429   : > { %v4448_v19 = vunpack.c.l.b16 %v3743_v33  ;;  %v3832_v33 = vld [vmem:[#allocation3 + $0xa8] sm:$0xff] }
 0x42a   : > { %v5599_v13 = vpop.f32.mrf.mxu2  ;;  %v5821_v56 = vpop.f32.mrf.mxu1 }
 0x42b   : > { %v5600_v50 = vadd.f32 %v5599_v13, %v9059_v25  ;;  %v9304_v53 = vadd.f32 %v5821_v56, %v9024_v6  ;;  %v9311_v8 = vpop.f32.mrf.mxu3  ;;  %v4753_v25 = vpack.c.b16 %v9127_v60, %v4724_v42  ;;  %v9322_v57 = vpack.c.b16 %v4449_v29, %v4448_v19  ;;  %v3713_v19 = vld [vmem:[#allocation3 + $0x109] sm:$0xff] }
 0x42c   : > { %v3865_v42 = vpack.c.bf16 %v3833_v2, %v3833_v2 }
 0x42d   : > { %v5689_v20 = vadd.f32 %v9251_v55, %v5600_v50  ;;  %6016 = vmatmul.bf16.gmra.mxu3 %v4658_v48 }
 0x42e   : > { %v9309_v21 = vpop.f32.mrf.mxu0 }
 0x42f   : > { %5917 = vmatmul.bf16.gmra.mxu2 %v9307_v7  ;;  %v9316_v6 = vadd.f32 %v9263_v39, %v5689_v20  ;;  %v3795_v39 = vpack.c.bf16 %v3763_v16, %v3763_v16  ;;  %v3796_v20 = vpack.c.bf16 %v3764_v26, %v3764_v26 }
 0x431   : > { %9829 = vst [vmem:[#allocation17_spill] sm:$0xff] %v9316_v6  ;;  %6100 = vmatmul.bf16.gmra.mxu0 %v4753_v25  ;;  %v4532_v43 = vunpack.c.l.b16 %v3795_v39  ;;  %v4533_v29 = vunpack.c.l.b16 %v3796_v20  ;;  %v3926_v25 = vpack.c.bf16 %v3894_v9, %v3894_v9 }
 0x432   : > { %v5602_v55 = vpop.f32.mrf.mxu2  ;;  %v5824_v18 = vpop.f32.mrf.mxu1 }
 0x433   : > { %v5603_v13 = vadd.f32 %v5602_v55, %v9071_v34  ;;  %v9320_v56 = vadd.f32 %v5824_v18, %v9038_v54  ;;  %v9328_v23 = vpop.f32.mrf.mxu3  ;;  %v3714_v54 = vld [vmem:[#allocation3 + $0x111] sm:$0xff]  ;;  %v3864_v55 = vpack.c.bf16 %v3832_v33, %v3832_v33  ;;  %v4726_v2 = vunpack.c.l.b16 %v3926_v25  ;;  %v3766_v25 = vld [vmem:[#allocation3 + $0x82] sm:$0xff] }
 0x434   : > { %v3746_v26 = vpack.c.bf16 %v3714_v54, %v3714_v54 }
 0x435   : > { %v5692_v60 = vadd.f32 %v9265_v30, %v5603_v13  ;;  %5863 = vmatmul.bf16.gmra.mxu1 %v9322_v57  ;;  %v4633_v13 = vunpack.c.l.b16 %v3865_v42  ;;  %v4632_v20 = vunpack.c.l.b16 %v3864_v55  ;;  %v4754_v33 = vpack.c.b16 %v9195_v37, %v4726_v2  ;;  %v7195_v55 = vld [vmem:[%s9775_s4 + $0x208] sm:$0xff] }
 0x436   : > { %v9326_v50 = vpop.f32.mrf.mxu0  ;;  %v4451_v9 = vunpack.c.l.b16 %v3746_v26  ;;  %6172 = vmatpush.bf16.msra.mxu1 %v7195_v55 }
 0x437   : > { %v9331_v34 = vadd.f32 %v9276_v51, %v5692_v60  ;;  %v9338_v51 = vpack.c.b16 %v4533_v29, %v4532_v43  ;;  %v3745_v60 = vpack.c.bf16 %v3713_v19, %v3713_v19  ;;  %v4659_v54 = vpack.c.b16 %v4633_v13, %v4632_v20  ;;  %v3765_v29 = vld [vmem:[#allocation3 + $0x7a] sm:$0xff]  ;;  %v3896_v13 = vld [vmem:[#allocation3 + $0xa9] sm:$0xff] }
 0x439   : > { %v4450_v42 = vunpack.c.l.b16 %v3745_v60  ;;  %v3716_v60 = vld [vmem:[#allocation3 + $0x129] sm:$0xff] }
 0x43a   : > { %v5604_v30 = vpop.f32.mrf.mxu2  ;;  %v5826_v48 = vpop.f32.mrf.mxu1 }
 0x43b   : > { %v5605_v18 = vadd.f32 %v5604_v30, %v9085_v11  ;;  %v9335_v16 = vadd.f32 %v5826_v48, %v9047_v22  ;;  %v9344_v11 = vpop.f32.mrf.mxu3  ;;  %v9353_v19 = vpack.c.b16 %v4451_v9, %v4450_v42  ;;  %v3928_v9 = vpack.c.bf16 %v3896_v13, %v3896_v13 }
 0x43d   : > { %v5694_v6 = vadd.f32 %v9278_v38, %v5605_v18  ;;  %6021 = vmatmul.bf16.gmra.mxu3 %v4659_v54  ;;  %v3835_v18 = vld [vmem:[#allocation3 + $0xc8] sm:$0xff] }
 0x43e   : > { %v9340_v39 = vpop.f32.mrf.mxu0  ;;  %v3867_v2 = vpack.c.bf16 %v3835_v18, %v3835_v18 }
 0x43f   : > { %5922 = vmatmul.bf16.gmra.mxu2 %v9338_v51  ;;  %v9347_v22 = vadd.f32 %v9295_v46, %v5694_v6  ;;  %v3797_v46 = vpack.c.bf16 %v3765_v29, %v3765_v29  ;;  %v3798_v6 = vpack.c.bf16 %v3766_v25, %v3766_v25 }
 0x440   : > { %v4635_v55 = vunpack.c.l.b16 %v3867_v2 }
 0x441   : > { %6105 = vmatmul.bf16.gmra.mxu0 %v4754_v33  ;;  %v4535_v20 = vunpack.c.l.b16 %v3798_v6  ;;  %v4728_v6 = vunpack.c.l.b16 %v3928_v9 }
 0x442   : > { %v5607_v38 = vpop.f32.mrf.mxu2  ;;  %v5829_v43 = vpop.f32.mrf.mxu1 }
 0x443   : > { %v5608_v30 = vadd.f32 %v5607_v38, %v9098_v31  ;;  %v9351_v48 = vadd.f32 %v5829_v43, %v9057_v3  ;;  %v3834_v31 = vld [vmem:[#allocation3 + $0xc0] sm:$0xff]  ;;  %v9365_v33 = vpop.f32.mrf.mxu3 }
 0x444   : > { %v3715_v38 = vld [vmem:[#allocation3 + $0x121] sm:$0xff]  ;;  %v3866_v43 = vpack.c.bf16 %v3834_v31, %v3834_v31  ;;  %v4755_v31 = vpack.c.b16 %v9224_v40, %v4728_v6 }
 0x445   : > { %v5697_v37 = vadd.f32 %v9297_v52, %v5608_v30  ;;  %5868 = vmatmul.bf16.gmra.mxu1 %v9353_v19  ;;  %v4534_v52 = vunpack.c.l.b16 %v3797_v46  ;;  %v3748_v30 = vpack.c.bf16 %v3716_v60, %v3716_v60  ;;  %v3747_v46 = vpack.c.bf16 %v3715_v38, %v3715_v38 }
 0x446   : > { %v9360_v26 = vpop.f32.mrf.mxu0  ;;  %v4634_v13 = vunpack.c.l.b16 %v3866_v43 }
 0x447   : > { %v9363_v3 = vadd.f32 %v9309_v21, %v5697_v37  ;;  %v9372_v37 = vpack.c.b16 %v4535_v20, %v4534_v52  ;;  %v4452_v60 = vunpack.c.l.b16 %v3747_v46  ;;  %v3767_v52 = vld [vmem:[#allocation3 + $0x92] sm:$0xff]  ;;  %v3768_v20 = vld [vmem:[#allocation3 + $0x9a] sm:$0xff] }
 0x448   : > { %v3800_v43 = vpack.c.bf16 %v3768_v20, %v3768_v20 }
 0x449   : > { %9830 = vst [vmem:[#allocation16_spill] sm:$0xff] %v9363_v3  ;;  %v4453_v3 = vunpack.c.l.b16 %v3748_v30 }
 0x44a   : > { %v5609_v54 = vpop.f32.mrf.mxu2  ;;  %v5831_v42 = vpop.f32.mrf.mxu1 }
 0x44b   : > { %v5610_v29 = vadd.f32 %v5609_v54, %v9111_v63  ;;  %v9369_v25 = vadd.f32 %v5831_v42, %v9068_v32  ;;  %v4660_v32 = vpack.c.b16 %v4635_v55, %v4634_v13  ;;  %v9385_v42 = vpack.c.b16 %v4453_v3, %v4452_v60  ;;  %v9387_v38 = vpop.f32.mrf.mxu3  ;;  %v3836_v55 = vld [vmem:[#allocation3 + $0xd8] sm:$0xff] }
 0x44c   : > { %v4537_v3 = vunpack.c.l.b16 %v3800_v43 }
 0x44d   : > { %v5699_v21 = vadd.f32 %v9311_v8, %v5610_v29  ;;  %6026 = vmatmul.bf16.gmra.mxu3 %v4660_v32  ;;  %v3837_v29 = vld [vmem:[#allocation3 + $0xe0] sm:$0xff]  ;;  %v3868_v32 = vpack.c.bf16 %v3836_v55, %v3836_v55 }
 0x44e   : > { %v9374_v18 = vpop.f32.mrf.mxu0 }
 0x44f   : > { %5927 = vmatmul.bf16.gmra.mxu2 %v9372_v37  ;;  %v9379_v63 = vadd.f32 %v9326_v50, %v5699_v21  ;;  %v3799_v50 = vpack.c.bf16 %v3767_v52, %v3767_v52 }
 0x451   : > { %6110 = vmatmul.bf16.gmra.mxu0 %v4755_v31  ;;  %v4536_v46 = vunpack.c.l.b16 %v3799_v50  ;;  %v3717_v31 = vld [vmem:[#allocation3 + $0x139] sm:$0xff] }
 0x452   : > { %v5612_v2 = vpop.f32.mrf.mxu2  ;;  %v5834_v8 = vpop.f32.mrf.mxu1 }
 0x453   : > { %v5613_v9 = vadd.f32 %v5612_v2, %v9141_v47  ;;  %v9383_v54 = vadd.f32 %v5834_v8, %v9083_v10  ;;  %v3718_v47 = vld [vmem:[#allocation3 + $0x141] sm:$0xff]  ;;  %v3869_v10 = vpack.c.bf16 %v3837_v29, %v3837_v29  ;;  %v9401_v20 = vpack.c.b16 %v4537_v3, %v4536_v46 }
 0x454   : > { %v3750_v2 = vpack.c.bf16 %v3718_v47, %v3718_v47 }
 0x455   : > { %v5702_v40 = vadd.f32 %v9328_v23, %v5613_v9  ;;  %5873 = vmatmul.bf16.gmra.mxu1 %v9385_v42  ;;  %v4637_v8 = vunpack.c.l.b16 %v3869_v10  ;;  %v5711_v9 = vpop.f32.mrf.mxu3  ;;  %v3769_v10 = vld [vmem:[#allocation3 + $0xaa] sm:$0xff] }
 0x456   : > { %v9391_v30 = vpop.f32.mrf.mxu0  ;;  %v4455_v50 = vunpack.c.l.b16 %v3750_v2  ;;  %v3838_v2 = vld [vmem:[#allocation3 + $0xf0] sm:$0xff] }
 0x457   : > { %v9394_v21 = vadd.f32 %v9340_v39, %v5702_v40  ;;  %v3749_v39 = vpack.c.bf16 %v3717_v31, %v3717_v31  ;;  %v4636_v40 = vunpack.c.l.b16 %v3868_v32  ;;  %v3839_v32 = vld [vmem:[#allocation3 + $0xf8] sm:$0xff] }
 0x459   : > { %v4454_v55 = vunpack.c.l.b16 %v3749_v39 }
 0x45a   : > { %v5614_v6 = vpop.f32.mrf.mxu2  ;;  %v5836_v13 = vpop.f32.mrf.mxu1 }
 0x45b   : > { %v5615_v23 = vadd.f32 %v5614_v6, %v9175_v28  ;;  %v9398_v60 = vadd.f32 %v5836_v13, %v9095_v36  ;;  %v4661_v28 = vpack.c.b16 %v4637_v8, %v4636_v40  ;;  %v9412_v6 = vpack.c.b16 %v4455_v50, %v4454_v55 }
 0x45c   : > { %v3871_v8 = vpack.c.bf16 %v3839_v32, %v3839_v32  ;;  %v3870_v55 = vpack.c.bf16 %v3838_v2, %v3838_v2 }
 0x45d   : > { %v5704_v52 = vadd.f32 %v9344_v11, %v5615_v23  ;;  %v3770_v11 = vld [vmem:[#allocation3 + $0xb2] sm:$0xff]  ;;  %6031 = vmatmul.bf16.gmra.mxu3 %v4661_v28  ;;  %v5713_v23 = vpop.f32.mrf.mxu3 }
 0x45e   : > { %v5800_v43 = vpop.f32.mrf.mxu0  ;;  %v3802_v31 = vpack.c.bf16 %v3770_v11, %v3770_v11  ;;  %v3719_v28 = vld [vmem:[#allocation3 + $0x151] sm:$0xff]  ;;  %v4639_v11 = vunpack.c.l.b16 %v3871_v8  ;;  %v3771_v8 = vld [vmem:[#allocation3 + $0xc2] sm:$0xff] }
 0x45f   : > { %5932 = vmatmul.bf16.gmra.mxu2 %v9401_v20  ;;  %v9405_v29 = vadd.f32 %v9360_v26, %v5704_v52  ;;  %v3801_v26 = vpack.c.bf16 %v3769_v10, %v3769_v10 }
 0x460   : > { %v4539_v39 = vunpack.c.l.b16 %v3802_v31 }
 0x461   : > { %6115 = vmatmul.bf16.gmra.mxu0 %v9259_v4  ;;  %v7194_v4 = vld [vmem:[%s9775_s4 + $0x200] sm:$0xff]  ;;  %v4538_v52 = vunpack.c.l.b16 %v3801_v26 }
 0x462   : > { %v5617_v36 = vpop.f32.mrf.mxu2  ;;  %v5839_v47 = vpop.f32.mrf.mxu1  ;;  %6173 = vmatpush.bf16.msra.mxu1 %v7194_v4  ;;  %v4638_v4 = vunpack.c.l.b16 %v3870_v55 }
 0x463   : > { %v5618_v46 = vadd.f32 %v5617_v36, %v9200_v44  ;;  %v9410_v3 = vadd.f32 %v5839_v47, %v9109_v35  ;;  %v3720_v35 = vld [vmem:[#allocation3 + $0x159] sm:$0xff] }
 0x464   : > { %v3752_v10 = vpack.c.bf16 %v3720_v35, %v3720_v35  ;;  %v4662_v32 = vpack.c.b16 %v4639_v11, %v4638_v4  ;;  %v3722_v11 = vld [vmem:[#allocation3 + $0x171] sm:$0xff] }
 0x465   : > { %v5707_v13 = vadd.f32 %v9365_v33, %v5618_v46  ;;  %5878 = vmatmul.bf16.gmra.mxu1 %v9412_v6 }
 0x466   : > { %v5802_v33 = vpop.f32.mrf.mxu0  ;;  %v4457_v26 = vunpack.c.l.b16 %v3752_v10 }
 0x467   : > { %v9420_v44 = vadd.f32 %v9374_v18, %v5707_v13  ;;  %v9427_v18 = vpack.c.b16 %v4539_v39, %v4538_v52  ;;  %v3751_v13 = vpack.c.bf16 %v3719_v28, %v3719_v28  ;;  %v3803_v28 = vpack.c.bf16 %v3771_v8, %v3771_v8 }
 0x469   : > { %v4456_v2 = vunpack.c.l.b16 %v3751_v13  ;;  %v4540_v13 = vunpack.c.l.b16 %v3803_v28 }
 0x46a   : > { %v5619_v40 = vpop.f32.mrf.mxu2  ;;  %v5841_v50 = vpop.f32.mrf.mxu1 }
 0x46b   : > { %v5620_v36 = vadd.f32 %v5619_v40, %v9213_v59  ;;  %v9424_v47 = vadd.f32 %v5841_v50, %v9135_v45  ;;  %v5716_v45 = vpop.f32.mrf.mxu3  ;;  %v3772_v40 = vld [vmem:[#allocation3 + $0xca] sm:$0xff]  ;;  %v9438_v39 = vpack.c.b16 %v4457_v26, %v4456_v2  ;;  %v3754_v2 = vpack.c.bf16 %v3722_v11, %v3722_v11  ;;  %v3773_v11 = vld [vmem:[#allocation3 + $0xda] sm:$0xff] }
 0x46c   : > { %v3804_v55 = vpack.c.bf16 %v3772_v40, %v3772_v40 }
 0x46d   : > { %v5709_v46 = vadd.f32 %v9387_v38, %v5620_v36  ;;  %6036 = vmatmul.bf16.gmra.mxu3 %v4662_v32  ;;  %v3840_v36 = vld [vmem:[#allocation3 + $0x108] sm:$0xff]  ;;  %v4459_v28 = vunpack.c.l.b16 %v3754_v2 }
 0x46e   : > { %v5805_v50 = vpop.f32.mrf.mxu0  ;;  %v4541_v4 = vunpack.c.l.b16 %v3804_v55 }
 0x46f   : > { %5937 = vmatmul.bf16.gmra.mxu2 %v9427_v18  ;;  %v9431_v31 = vadd.f32 %v9391_v30, %v5709_v46 }
 0x471   : > { %6120 = vmatmul.bf16.gmra.mxu0 %v9288_v12  ;;  %v3841_v12 = vld [vmem:[#allocation3 + $0x110] sm:$0xff] }
 0x472   : > { %v5622_v59 = vpop.f32.mrf.mxu2  ;;  %v5844_v35 = vpop.f32.mrf.mxu1  ;;  %v3873_v46 = vpack.c.bf16 %v3841_v12, %v3841_v12 }
 0x473   : > { %v5623_v38 = vadd.f32 %v5622_v59, %v9229_v24  ;;  %v9436_v52 = vadd.f32 %v5844_v35, %v9170_v1  ;;  %v3721_v1 = vld [vmem:[#allocation3 + $0x169] sm:$0xff]  ;;  %v3872_v59 = vpack.c.bf16 %v3840_v36, %v3840_v36  ;;  %v5718_v35 = vpop.f32.mrf.mxu3 }
 0x474   : > { %v4641_v8 = vunpack.c.l.b16 %v3873_v46 }
 0x475   : > { %9831 = vst [vmem:[#allocation7_spill] sm:$0xff] %v9436_v52  ;;  %v5712_v30 = vadd.f32 %v5711_v9, %v5623_v38  ;;  %5883 = vmatmul.bf16.gmra.mxu1 %v9438_v39  ;;  %v9447_v38 = vpack.c.b16 %v4541_v4, %v4540_v13  ;;  %v4640_v12 = vunpack.c.l.b16 %v3872_v59  ;;  %v3843_v59 = vld [vmem:[#allocation3 + $0x128] sm:$0xff] }
 0x477   : > { %v9441_v10 = vadd.f32 %v5800_v43, %v5712_v30  ;;  %v5807_v43 = vpop.f32.mrf.mxu0  ;;  %v3753_v30 = vpack.c.bf16 %v3721_v1, %v3721_v1  ;;  %v4663_v36 = vpack.c.b16 %v4641_v8, %v4640_v12  ;;  %v3724_v8 = vld [vmem:[#allocation3 + $0x189] sm:$0xff] }
 0x479   : > { %v4458_v52 = vunpack.c.l.b16 %v3753_v30 }
 0x47a   : > { %v5624_v24 = vpop.f32.mrf.mxu2  ;;  %v5846_v32 = vpop.f32.mrf.mxu1 }
 0x47b   : > { %v5625_v26 = vadd.f32 %v5624_v24, %v9245_v58  ;;  %v9445_v9 = vadd.f32 %v5846_v32, %v9198_v61  ;;  %v3774_v24 = vld [vmem:[#allocation3 + $0xe2] sm:$0xff]  ;;  %v9457_v13 = vpack.c.b16 %v4459_v28, %v4458_v52  ;;  %v5997_v1 = vpop.f32.mrf.mxu3 }
 0x47c   : > { %v3806_v32 = vpack.c.bf16 %v3774_v24, %v3774_v24 }
 0x47d   : > { %v5714_v40 = vadd.f32 %v5713_v23, %v5625_v26  ;;  %6041 = vmatmul.bf16.gmra.mxu3 %v4663_v36  ;;  %v3842_v26 = vld [vmem:[#allocation3 + $0x120] sm:$0xff] }
 0x47e   : > { %v3723_v36 = vld [vmem:[#allocation3 + $0x181] sm:$0xff]  ;;  %v3874_v52 = vpack.c.bf16 %v3842_v26, %v3842_v26 }
 0x47f   : > { %5942 = vmatmul.bf16.gmra.mxu2 %v9447_v38  ;;  %v9450_v55 = vadd.f32 %v5802_v33, %v5714_v40  ;;  %v3805_v33 = vpack.c.bf16 %v3773_v11, %v3773_v11  ;;  %v3875_v40 = vpack.c.bf16 %v3843_v59, %v3843_v59 }
 0x481   : > { %6125 = vmatmul.bf16.gmra.mxu0 %v9322_v57  ;;  %v6086_v57 = vpop.f32.mrf.mxu0  ;;  %v4542_v30 = vunpack.c.l.b16 %v3805_v33 }
 0x482   : > { %v5627_v61 = vpop.f32.mrf.mxu2  ;;  %v5849_v58 = vpop.f32.mrf.mxu1 }
 0x483   : > { %v5628_v23 = vadd.f32 %v5627_v61, %v9256_v27  ;;  %v9455_v46 = vadd.f32 %v5849_v58, %v9211_v17  ;;  %v4543_v27 = vunpack.c.l.b16 %v3806_v32  ;;  %v3756_v61 = vpack.c.bf16 %v3724_v8, %v3724_v8  ;;  %v5999_v33 = vpop.f32.mrf.mxu3  ;;  %v3775_v8 = vld [vmem:[#allocation3 + $0xf2] sm:$0xff] }
 0x484   : > { %v4643_v58 = vunpack.c.l.b16 %v3875_v40  ;;  %v3776_v40 = vld [vmem:[#allocation3 + $0xfa] sm:$0xff] }
 0x485   : > { %9832 = vst [vmem:[#allocation10_spill] sm:$0xff] %v9455_v46  ;;  %v5717_v4 = vadd.f32 %v5716_v45, %v5628_v23  ;;  %5888 = vmatmul.bf16.gmra.mxu1 %v9457_v13  ;;  %v9466_v24 = vpack.c.b16 %v4543_v27, %v4542_v30  ;;  %v4642_v23 = vunpack.c.l.b16 %v3874_v52  ;;  %v3844_v52 = vld [vmem:[#allocation3 + $0x138] sm:$0xff] }
 0x487   : > { %v9460_v2 = vadd.f32 %v5805_v50, %v5717_v4  ;;  %v3755_v50 = vpack.c.bf16 %v3723_v36, %v3723_v36  ;;  %v4461_v4 = vunpack.c.l.b16 %v3756_v61  ;;  %v4664_v59 = vpack.c.b16 %v4643_v58, %v4642_v23  ;;  %v3845_v36 = vld [vmem:[#allocation3 + $0x140] sm:$0xff] }
 0x488   : > { %v3876_v23 = vpack.c.bf16 %v3844_v52, %v3844_v52 }
 0x489   : > { %v6088_v26 = vpop.f32.mrf.mxu0  ;;  %v4460_v46 = vunpack.c.l.b16 %v3755_v50 }
 0x48a   : > { %v5629_v12 = vpop.f32.mrf.mxu2  ;;  %v5851_v17 = vpop.f32.mrf.mxu1 }
 0x48b   : > { %v5630_v45 = vadd.f32 %v5629_v12, %v9270_v62  ;;  %v9464_v28 = vadd.f32 %v5851_v17, %v9227_v0  ;;  %v9476_v27 = vpack.c.b16 %v4461_v4, %v4460_v46  ;;  %v3808_v17 = vpack.c.bf16 %v3776_v40, %v3776_v40 }
 0x48d   : > { %v5719_v11 = vadd.f32 %v5718_v35, %v5630_v45  ;;  %6046 = vmatmul.bf16.gmra.mxu3 %v4664_v59  ;;  %v3877_v45 = vpack.c.bf16 %v3845_v36, %v3845_v36  ;;  %v4545_v58 = vunpack.c.l.b16 %v3808_v17  ;;  %v9833_v59 = vld [vmem:[#allocation15_spill] sm:$0xff] }
 0x48e   : > { %v3778_v17 = vld [vmem:[#allocation3 + $0x112] sm:$0xff] }
 0x48f   : > { %5947 = vmatmul.bf16.gmra.mxu2 %v9466_v24  ;;  %v9469_v32 = vadd.f32 %v5807_v43, %v5719_v11  ;;  %v3807_v43 = vpack.c.bf16 %v3775_v8, %v3775_v8  ;;  %v6002_v11 = vpop.f32.mrf.mxu3  ;;  %v4645_v4 = vunpack.c.l.b16 %v3877_v45  ;;  %v4644_v8 = vunpack.c.l.b16 %v3876_v23 }
 0x491   : > { %6130 = vmatmul.bf16.gmra.mxu0 %v9353_v19  ;;  %v4544_v61 = vunpack.c.l.b16 %v3807_v43  ;;  %v4665_v40 = vpack.c.b16 %v4645_v4, %v4644_v8  ;;  %v3777_v43 = vld [vmem:[#allocation3 + $0x10a] sm:$0xff] }
 0x492   : > { %v5854_v0 = vpop.f32.mrf.mxu1  ;;  %v5908_v62 = vpop.f32.mrf.mxu2 }
 0x493   : > { %v9473_v35 = vadd.f32 %v5854_v0, %v9243_v41  ;;  %v5909_v30 = vadd.f32 %v5908_v62, %v9286_v14  ;;  %v9485_v62 = vpack.c.b16 %v4545_v58, %v4544_v61  ;;  %v3810_v61 = vpack.c.bf16 %v3778_v17, %v3778_v17  ;;  %v3847_v58 = vld [vmem:[#allocation3 + $0x158] sm:$0xff] }
 0x495   : > { %v5998_v12 = vadd.f32 %v5997_v1, %v5909_v30  ;;  %5893 = vmatmul.bf16.gmra.mxu1 %v9476_v27  ;;  %v6091_v1 = vpop.f32.mrf.mxu0 }
 0x497   : > { %v9479_v19 = vadd.f32 %v6086_v57, %v5998_v12  ;;  %v6004_v36 = vpop.f32.mrf.mxu3 }
 0x49a   : > { %v5856_v50 = vpop.f32.mrf.mxu1  ;;  %v5910_v41 = vpop.f32.mrf.mxu2 }
 0x49b   : > { %v9482_v14 = vadd.f32 %v5856_v50, %v9833_v59  ;;  %v5911_v46 = vadd.f32 %v5910_v41, %v9304_v53  ;;  %v3846_v50 = vld [vmem:[#allocation3 + $0x150] sm:$0xff]  ;;  %v3879_v41 = vpack.c.bf16 %v3847_v58, %v3847_v58  ;;  %v4547_v59 = vunpack.c.l.b16 %v3810_v61 }
 0x49c   : > { %v3780_v61 = vld [vmem:[#allocation3 + $0x12a] sm:$0xff] }
 0x49d   : > { %v6000_v0 = vadd.f32 %v5999_v33, %v5911_v46  ;;  %6051 = vmatmul.bf16.gmra.mxu3 %v4665_v40  ;;  %v6093_v45 = vpop.f32.mrf.mxu0 }
 0x49f   : > { %5952 = vmatmul.bf16.gmra.mxu2 %v9485_v62  ;;  %v9488_v57 = vadd.f32 %v6088_v26, %v6000_v0  ;;  %v3809_v26 = vpack.c.bf16 %v3777_v43, %v3777_v43  ;;  %v9834_v0 = vld [vmem:[#allocation13_spill] sm:$0xff] }
 0x4a1   : > { %6135 = vmatmul.bf16.gmra.mxu0 %v9385_v42  ;;  %v4546_v23 = vunpack.c.l.b16 %v3809_v26  ;;  %v3779_v26 = vld [vmem:[#allocation3 + $0x122] sm:$0xff] }
 0x4a2   : > { %v5859_v30 = vpop.f32.mrf.mxu1  ;;  %v5913_v12 = vpop.f32.mrf.mxu2 }
 0x4a3   : > { %v9492_v53 = vadd.f32 %v5859_v30, %v9268_v49  ;;  %v5914_v33 = vadd.f32 %v5913_v12, %v9320_v56  ;;  %v3878_v49 = vpack.c.bf16 %v3846_v50, %v3846_v50  ;;  %v6007_v30 = vpop.f32.mrf.mxu3  ;;  %v3811_v50 = vpack.c.bf16 %v3779_v26, %v3779_v26 }
 0x4a5   : > { %v6003_v52 = vadd.f32 %v6002_v11, %v5914_v33  ;;  %6174 = vmatmul.bf16.vlgmr.msra.gmra.mxu1 %v9274_v15  ;;  %v4647_v11 = vunpack.c.l.b16 %v3879_v41  ;;  %v9502_v15 = vpack.c.b16 %v4547_v59, %v4546_v23  ;;  %v4646_v12 = vunpack.c.l.b16 %v3878_v49  ;;  %v6096_v43 = vpop.f32.mrf.mxu0  ;;  %v3848_v59 = vld [vmem:[#allocation3 + $0x168] sm:$0xff] }
 0x4a6   : > { %v3812_v41 = vpack.c.bf16 %v3780_v61, %v3780_v61  ;;  %v4548_v49 = vunpack.c.l.b16 %v3811_v50  ;;  %v3782_v50 = vld [vmem:[#allocation3 + $0x142] sm:$0xff] }
 0x4a7   : > { %v9496_v42 = vadd.f32 %v6091_v1, %v6003_v52  ;;  %v4666_v17 = vpack.c.b16 %v4647_v11, %v4646_v12 }
 0x4aa   : > { %v5861_v46 = vpop.f32.mrf.mxu1  ;;  %v5915_v4 = vpop.f32.mrf.mxu2 }
 0x4ab   : > { %v9499_v8 = vadd.f32 %v5861_v46, %v9834_v0  ;;  %v5916_v56 = vadd.f32 %v5915_v4, %v9335_v16  ;;  %v6009_v23 = vpop.f32.mrf.mxu3  ;;  %v4549_v0 = vunpack.c.l.b16 %v3812_v41 }
 0x4ad   : > { %v6005_v40 = vadd.f32 %v6004_v36, %v5916_v56  ;;  %6056 = vmatmul.bf16.gmra.mxu3 %v4666_v17  ;;  %v6098_v4 = vpop.f32.mrf.mxu0  ;;  %v9519_v17 = vpack.c.b16 %v4549_v0, %v4548_v49  ;;  %v3850_v49 = vld [vmem:[#allocation3 + $0x180] sm:$0xff] }
 0x4af   : > { %5957 = vmatmul.bf16.gmra.mxu2 %v9502_v15  ;;  %v9505_v1 = vadd.f32 %v6093_v45, %v6005_v40  ;;  %v3849_v45 = vld [vmem:[#allocation3 + $0x170] sm:$0xff]  ;;  %v9835_v40 = vld [vmem:[#allocation17_spill] sm:$0xff] }
 0x4b1   : > { %6140 = vmatmul.bf16.gmra.mxu0 %v9412_v6  ;;  %v3881_v6 = vpack.c.bf16 %v3849_v45, %v3849_v45 }
 0x4b2   : > { %v5864_v33 = vpop.f32.mrf.mxu1  ;;  %v5918_v52 = vpop.f32.mrf.mxu2 }
 0x4b3   : > { %v9509_v16 = vadd.f32 %v5864_v33, %v9300_v5  ;;  %v5919_v36 = vadd.f32 %v5918_v52, %v9351_v48  ;;  %v3880_v5 = vpack.c.bf16 %v3848_v59, %v3848_v59  ;;  %v6012_v26 = vpop.f32.mrf.mxu3 }
 0x4b5   : > { %v6008_v58 = vadd.f32 %v6007_v30, %v5919_v36  ;;  %6179 = vmatmul.bf16.gmra.mxu1 %v9307_v7  ;;  %v4649_v7 = vunpack.c.l.b16 %v3881_v6  ;;  %v4648_v33 = vunpack.c.l.b16 %v3880_v5  ;;  %v6101_v45 = vpop.f32.mrf.mxu0  ;;  %v3814_v6 = vpack.c.bf16 %v3782_v50, %v3782_v50  ;;  %v3783_v50 = vld [vmem:[#allocation3 + $0x152] sm:$0xff] }
 0x4b7   : > { %v9513_v46 = vadd.f32 %v6096_v43, %v6008_v58  ;;  %v4667_v52 = vpack.c.b16 %v4649_v7, %v4648_v33  ;;  %v3781_v58 = vld [vmem:[#allocation3 + $0x13a] sm:$0xff] }
 0x4b8   : > { %v3813_v59 = vpack.c.bf16 %v3781_v58, %v3781_v58 }
 0x4ba   : > { %v5866_v56 = vpop.f32.mrf.mxu1  ;;  %v5920_v11 = vpop.f32.mrf.mxu2 }
 0x4bb   : > { %v9516_v12 = vadd.f32 %v5866_v56, %v9835_v40  ;;  %v5921_v48 = vadd.f32 %v5920_v11, %v9369_v25  ;;  %v4550_v56 = vunpack.c.l.b16 %v3813_v59  ;;  %v4551_v11 = vunpack.c.l.b16 %v3814_v6  ;;  %v6014_v7 = vpop.f32.mrf.mxu3 }
 0x4bd   : > { %v6010_v30 = vadd.f32 %v6009_v23, %v5921_v48  ;;  %6061 = vmatmul.bf16.gmra.mxu3 %v4667_v52  ;;  %v3882_v48 = vpack.c.bf16 %v3850_v49, %v3850_v49  ;;  %v9536_v33 = vpack.c.b16 %v4551_v11, %v4550_v56  ;;  %v6103_v52 = vpop.f32.mrf.mxu0 }
 0x4bf   : > { %5962 = vmatmul.bf16.gmra.mxu2 %v9519_v17  ;;  %v9522_v43 = vadd.f32 %v6098_v4, %v6010_v30  ;;  %v3851_v4 = vld [vmem:[#allocation3 + $0x188] sm:$0xff] }
 0x4c1   : > { %6145 = vmatmul.bf16.gmra.mxu0 %v9438_v39  ;;  %v3883_v39 = vpack.c.bf16 %v3851_v4, %v3851_v4 }
 0x4c2   : > { %v5869_v61 = vpop.f32.mrf.mxu1  ;;  %v5923_v36 = vpop.f32.mrf.mxu2 }
 0x4c3   : > { %v9526_v25 = vadd.f32 %v5869_v61, %v9331_v34  ;;  %v5924_v41 = vadd.f32 %v5923_v36, %v9383_v54  ;;  %v4651_v30 = vunpack.c.l.b16 %v3883_v39 }
 0x4c5   : > { %v6013_v23 = vadd.f32 %v6012_v26, %v5924_v41  ;;  %6184 = vmatmul.bf16.gmra.mxu1 %v9338_v51  ;;  %v4650_v26 = vunpack.c.l.b16 %v3882_v48  ;;  %v9836_v41 = vld [vmem:[#allocation16_spill] sm:$0xff] }
 0x4c7   : > { %v9530_v0 = vadd.f32 %v6101_v45, %v6013_v23  ;;  %v4668_v36 = vpack.c.b16 %v4651_v30, %v4650_v26  ;;  %v3815_v45 = vpack.c.bf16 %v3783_v50, %v3783_v50  ;;  %v3916_v30 = vld [vmem:[#allocation3 + $0x199] sm:$0xff] }
 0x4c9   : > { %v4552_v59 = vunpack.c.l.b16 %v3815_v45 }
 0x4ca   : > { %v5871_v5 = vpop.f32.mrf.mxu1  ;;  %v5925_v40 = vpop.f32.mrf.mxu2 }
 0x4cb   : > { %v9533_v34 = vadd.f32 %v5871_v5, %v9347_v22  ;;  %v5926_v54 = vadd.f32 %v5925_v40, %v9398_v60  ;;  %v3784_v22 = vld [vmem:[#allocation3 + $0x15a] sm:$0xff]  ;;  %v3785_v40 = vld [vmem:[#allocation3 + $0x16a] sm:$0xff] }
 0x4cc   : > { %v3816_v23 = vpack.c.bf16 %v3784_v22, %v3784_v22 }
 0x4cd   : > { %v6015_v51 = vadd.f32 %v6014_v7, %v5926_v54  ;;  %6066 = vmatmul.bf16.gmra.mxu3 %v4668_v36 }
 0x4ce   : > { %v4553_v6 = vunpack.c.l.b16 %v3816_v23  ;;  %v3787_v23 = vld [vmem:[#allocation3 + $0x182] sm:$0xff] }
 0x4cf   : > { %5967 = vmatmul.bf16.gmra.mxu2 %v9536_v33  ;;  %v9539_v61 = vadd.f32 %v6103_v52, %v6015_v51  ;;  %v3917_v51 = vld [vmem:[#allocation3 + $0x1a1] sm:$0xff]  ;;  %v3948_v52 = vpack.c.bf16 %v3916_v30, %v3916_v30 }
 0x4d0   : > { %v9549_v39 = vpack.c.b16 %v4553_v6, %v4552_v59  ;;  %v3949_v26 = vpack.c.bf16 %v3917_v51, %v3917_v51  ;;  %v3788_v59 = vld [vmem:[#allocation3 + $0x18a] sm:$0xff] }
 0x4d1   : > { %6150 = vmatmul.bf16.gmra.mxu0 %v9457_v13  ;;  %v7347_v13 = vld [vmem:[#allocation2] sm:$0xff] }
 0x4d2   : > { %v5874_v58 = vpop.f32.mrf.mxu1  ;;  %v3884_v56 = vpack.c.bf16 %v7347_v13, %v7347_v13  ;;  %v4749_v50 = vunpack.c.l.b16 %v3949_v26  ;;  %v3820_v13 = vpack.c.bf16 %v3788_v59, %v3788_v59  ;;  %v5928_v51 = vpop.f32.mrf.mxu2 }
 0x4d3   : > { %v9543_v60 = vadd.f32 %v5874_v58, %v9836_v41 }
 0x4d4   : > { %v4652_v11 = vunpack.c.l.b16 %v3884_v56 }
 0x4d5   : > { %6189 = vmatmul.bf16.gmra.mxu1 %v9372_v37  ;;  %v3786_v37 = vld [vmem:[#allocation3 + $0x172] sm:$0xff] }
 0x4d6   : > { %v4669_v54 = vpack.c.b16 %v4652_v11, %v4652_v11  ;;  %v3818_v7 = vpack.c.bf16 %v3786_v37, %v3786_v37  ;;  %v4557_v11 = vunpack.c.l.b16 %v3820_v13 }
 0x4d8   : > { %v4555_v58 = vunpack.c.l.b16 %v3818_v7 }
 0x4da   : > { %v5876_v4 = vpop.f32.mrf.mxu1 }
 0x4db   : > { %v9547_v49 = vadd.f32 %v5876_v4, %v9379_v63  ;;  %v3817_v63 = vpack.c.bf16 %v3785_v40, %v3785_v40  ;;  %v3819_v4 = vpack.c.bf16 %v3787_v23, %v3787_v23 }
 0x4dd   : > { %6071 = vmatmul.bf16.gmra.mxu3 %v4669_v54  ;;  %v4554_v36 = vunpack.c.l.b16 %v3817_v63  ;;  %v4556_v56 = vunpack.c.l.b16 %v3819_v4 }
 0x4df   : > { %5972 = vmatmul.bf16.gmra.mxu2 %v9549_v39  ;;  %v9570_v40 = vpack.c.b16 %v4557_v11, %v4556_v56 }
 0x4e1   : > { %6155 = vmatmul.bf16.gmra.mxu0 %v9476_v27  ;;  %v4748_v27 = vunpack.c.l.b16 %v3948_v52 }
 0x4e2   : > { %v5879_v5 = vpop.f32.mrf.mxu1 }
 0x4e3   : > { %v9554_v48 = vadd.f32 %v5879_v5, %v9394_v21  ;;  %v9560_v21 = vpack.c.b16 %v4555_v58, %v4554_v36  ;;  %v4765_v45 = vpack.c.b16 %v4749_v50, %v4748_v27  ;;  %v6017_v58 = vpop.f32.mrf.mxu3  ;;  %v6106_v50 = vpop.f32.mrf.mxu0 }
 0x4e5   : > { %6194 = vmatmul.bf16.gmra.mxu1 %v9401_v20 }
 0x4ea   : > { %v5881_v22 = vpop.f32.mrf.mxu1 }
 0x4eb   : > { %v9558_v41 = vadd.f32 %v5881_v22, %v9405_v29  ;;  %v5930_v22 = vpop.f32.mrf.mxu2  ;;  %v6019_v59 = vpop.f32.mrf.mxu3 }
 0x4ec   : > { %v6108_v56 = vpop.f32.mrf.mxu0 }
 0x4ef   : > { %5977 = vmatmul.bf16.gmra.mxu2 %v9560_v21 }
 0x4f1   : > { %6160 = vmatmul.bf16.gmra.mxu0 %v4765_v45 }
 0x4f2   : > { %v5884_v20 = vpop.f32.mrf.mxu1 }
 0x4f3   : > { %v9564_v6 = vadd.f32 %v5884_v20, %v9420_v44 }
 0x4f5   : > { %6199 = vmatmul.bf16.gmra.mxu1 %v9427_v18 }
 0x4fa   : > { %v5886_v29 = vpop.f32.mrf.mxu1 }
 0x4fb   : > { %v9568_v5 = vadd.f32 %v5886_v29, %v9431_v31  ;;  %v5933_v29 = vpop.f32.mrf.mxu2 }
 0x4ff   : > { %5982 = vmatmul.bf16.gmra.mxu2 %v9570_v40 }
 0x502   : > { %v5889_v37 = vpop.f32.mrf.mxu1 }
 0x503   : > { %v9574_v44 = vadd.f32 %v5889_v37, %v9441_v10  ;;  %v9590_v10 = vld [vmem:[%s9776_s5] ss:$0 sm:$0xff] }
 0x505   : > { %6204 = vmatmul.bf16.gmra.mxu1 %v9447_v38 }
 0x50a   : > { %v5891_v18 = vpop.f32.mrf.mxu1 }
 0x50b   : > { %v9578_v54 = vadd.f32 %v5891_v18, %v9450_v55 }
 0x512   : > { %v5894_v63 = vpop.f32.mrf.mxu1 }
 0x513   : > { %v9581_v7 = vadd.f32 %v5894_v63, %v9460_v2  ;;  %v9597_v2 = vld [vmem:[%s9777_s6] ss:$0 sm:$0xff]  ;;  %v6022_v63 = vpop.f32.mrf.mxu3 }
 0x515   : > { %6209 = vmatmul.bf16.gmra.mxu1 %v9466_v24 }
 0x51a   : > { %v5896_v31 = vpop.f32.mrf.mxu1 }
 0x51b   : > { %v9585_v30 = vadd.f32 %v5896_v31, %v9469_v32 }
 0x522   : > { %v6175_v38 = vpop.f32.mrf.mxu1 }
 0x523   : > { %v6176_v55 = vadd.f32 %v6175_v38, %v9479_v19  ;;  %v6111_v38 = vpop.f32.mrf.mxu0 }
 0x525   : > { %v6259_v24 = vmul.f32 %v9590_v10, %v6176_v55  ;;  %6214 = vmatmul.bf16.gmra.mxu1 %v9485_v62 }
 0x527   : > { %v6295_v32 = vadd.f32 %v9597_v2, %v6259_v24  ;;  %v5935_v24 = vpop.f32.mrf.mxu2 }
 0x529   : > { %v6327_v52 = vmax.f32 %v6295_v32, 0.0 }
 0x52a   : > { %v6177_v26 = vpop.f32.mrf.mxu1 }
 0x52b   : > { %6359 = vst [vmem:[%s9604_s19] sm:$0xff] %v6327_v52  ;;  %v6178_v19 = vadd.f32 %v6177_v26, %v9488_v57 }
 0x52d   : > { %v6260_v36 = vmul.f32 %v9590_v10, %v6178_v19  ;;  %v6024_v19 = vpop.f32.mrf.mxu3 }
 0x52f   : > { %v6296_v27 = vadd.f32 %v9597_v2, %v6260_v36 }
 0x531   : > { %v6328_v62 = vmax.f32 %v6296_v27, 0.0  ;;  %v6113_v27 = vpop.f32.mrf.mxu0 }
 0x532   : > { %v6180_v45 = vpop.f32.mrf.mxu1 }
 0x533   : > { %6360 = vst [vmem:[%s9604_s19 + $0x8] sm:$0xff] %v6328_v62  ;;  %v6181_v20 = vadd.f32 %v6180_v45, %v9496_v42  ;;  %v5938_v62 = vpop.f32.mrf.mxu2 }
 0x535   : > { %v6261_v23 = vmul.f32 %v9590_v10, %v6181_v20  ;;  %6219 = vmatmul.bf16.gmra.mxu1 %v9502_v15 }
 0x537   : > { %v6297_v57 = vadd.f32 %v9597_v2, %v6261_v23 }
 0x539   : > { %v6329_v4 = vmax.f32 %v6297_v57, 0.0  ;;  %v6027_v57 = vpop.f32.mrf.mxu3 }
 0x53a   : > { %v6182_v13 = vpop.f32.mrf.mxu1 }
 0x53b   : > { %6361 = vst [vmem:[%s9604_s19 + $0x10] sm:$0xff] %v6329_v4  ;;  %v6183_v11 = vadd.f32 %v6182_v13, %v9505_v1  ;;  %v5929_v4 = vadd.f32 %v5928_v51, %v9410_v3  ;;  %v6116_v13 = vpop.f32.mrf.mxu0 }
 0x53d   : > { %v6262_v37 = vmul.f32 %v9590_v10, %v6183_v11 }
 0x53f   : > { %v6298_v42 = vadd.f32 %v9597_v2, %v6262_v37  ;;  %v5940_v37 = vpop.f32.mrf.mxu2 }
 0x541   : > { %v6330_v18 = vmax.f32 %v6298_v42, 0.0 }
 0x542   : > { %v6185_v31 = vpop.f32.mrf.mxu1 }
 0x543   : > { %6362 = vst [vmem:[%s9604_s19 + $0x18] sm:$0xff] %v6330_v18  ;;  %v6186_v15 = vadd.f32 %v6185_v31, %v9513_v46  ;;  %v6018_v31 = vadd.f32 %v6017_v58, %v5929_v4  ;;  %v6118_v51 = vpop.f32.mrf.mxu0  ;;  %v9837_v58 = vld [vmem:[#allocation7_spill] sm:$0xff] }
 0x545   : > { %v6263_v55 = vmul.f32 %v9590_v10, %v6186_v15  ;;  %6224 = vmatmul.bf16.gmra.mxu1 %v9519_v17 }
 0x547   : > { %v6299_v1 = vadd.f32 %v9597_v2, %v6263_v55  ;;  %v6029_v55 = vpop.f32.mrf.mxu3 }
 0x549   : > { %v6331_v32 = vmax.f32 %v6299_v1, 0.0 }
 0x54a   : > { %v6187_v52 = vpop.f32.mrf.mxu1 }
 0x54b   : > { %6363 = vst [vmem:[%s9604_s19 + $0x20] sm:$0xff] %v6331_v32  ;;  %v6188_v26 = vadd.f32 %v6187_v52, %v9522_v43  ;;  %v6107_v32 = vadd.f32 %v6106_v50, %v6018_v31 }
 0x54d   : > { %v6264_v36 = vmul.f32 %v9590_v10, %v6188_v26  ;;  %v5943_v26 = vpop.f32.mrf.mxu2 }
 0x54f   : > { %v6300_v46 = vadd.f32 %v9597_v2, %v6264_v36 }
 0x551   : > { %v6332_v45 = vmax.f32 %v6300_v46, 0.0 }
 0x552   : > { %v6190_v20 = vpop.f32.mrf.mxu1 }
 0x553   : > { %6364 = vst [vmem:[%s9604_s19 + $0x28] sm:$0xff] %v6332_v45  ;;  %v6191_v17 = vadd.f32 %v6190_v20, %v9530_v0  ;;  %v5934_v45 = vadd.f32 %v5933_v29, %v9837_v58 }
 0x555   : > { %v6265_v23 = vmul.f32 %v9590_v10, %v6191_v17  ;;  %6229 = vmatmul.bf16.gmra.mxu1 %v9536_v33  ;;  %v5931_v33 = vadd.f32 %v5930_v22, %v9424_v47  ;;  %v6032_v22 = vpop.f32.mrf.mxu3 }
 0x557   : > { %v6301_v43 = vadd.f32 %v9597_v2, %v6265_v23  ;;  %v6020_v36 = vadd.f32 %v6019_v59, %v5931_v33  ;;  %v6023_v23 = vadd.f32 %v6022_v63, %v5934_v45  ;;  %v5945_v59 = vpop.f32.mrf.mxu2 }
 0x559   : > { %v6333_v11 = vmax.f32 %v6301_v43, 0.0  ;;  %v6109_v47 = vadd.f32 %v6108_v56, %v6020_v36  ;;  %v6121_v43 = vpop.f32.mrf.mxu0 }
 0x55a   : > { %v6192_v42 = vpop.f32.mrf.mxu1 }
 0x55b   : > { %6365 = vst [vmem:[%s9604_s19 + $0x30] sm:$0xff] %v6333_v11  ;;  %v6193_v18 = vadd.f32 %v6192_v42, %v9539_v61 }
 0x55d   : > { %v6266_v0 = vmul.f32 %v9590_v10, %v6193_v18  ;;  %v6112_v18 = vadd.f32 %v6111_v38, %v6023_v23  ;;  %v6034_v56 = vpop.f32.mrf.mxu3  ;;  %v3981_v23 = vld [vmem:[#allocation3 + $0x1a2] sm:$0xff] }
 0x55f   : > { %v6302_v15 = vadd.f32 %v9597_v2, %v6266_v0 }
 0x561   : > { %v6334_v1 = vmax.f32 %v6302_v15, 0.0  ;;  %v6123_v63 = vpop.f32.mrf.mxu0 }
 0x562   : > { %v6195_v3 = vpop.f32.mrf.mxu1 }
 0x563   : > { %6366 = vst [vmem:[%s9604_s19 + $0x38] sm:$0xff] %v6334_v1  ;;  %v6196_v52 = vadd.f32 %v6195_v3, %v6107_v32  ;;  %v5948_v1 = vpop.f32.mrf.mxu2  ;;  %v9838_v32 = vld [vmem:[#allocation10_spill] sm:$0xff] }
 0x564   : > { %v5939_v3 = vadd.f32 %v5938_v62, %v9838_v32 }
 0x565   : > { %v6267_v46 = vmul.f32 %v9590_v10, %v6196_v52  ;;  %6234 = vmatmul.bf16.gmra.mxu1 %v9549_v39  ;;  %v5936_v39 = vadd.f32 %v5935_v24, %v9445_v9 }
 0x566   : > { %v6028_v36 = vadd.f32 %v6027_v57, %v5939_v3  ;;  %v3980_v57 = vld [vmem:[#allocation3 + $0x19a] sm:$0xff] }
 0x567   : > { %v6303_v61 = vadd.f32 %v9597_v2, %v6267_v46  ;;  %v6025_v0 = vadd.f32 %v6024_v19, %v5936_v39  ;;  %v6037_v19 = vpop.f32.mrf.mxu3 }
 0x569   : > { %v6335_v20 = vmax.f32 %v6303_v61, 0.0  ;;  %v6114_v24 = vadd.f32 %v6113_v27, %v6025_v0  ;;  %v6126_v58 = vpop.f32.mrf.mxu0 }
 0x56a   : > { %v6197_v17 = vpop.f32.mrf.mxu1 }
 0x56b   : > { %6367 = vst [vmem:[%s9604_s19 + $0x40] sm:$0xff] %v6335_v20  ;;  %v6198_v50 = vadd.f32 %v6197_v17, %v6109_v47  ;;  %v6117_v20 = vadd.f32 %v6116_v13, %v6028_v36  ;;  %v5950_v47 = vpop.f32.mrf.mxu2  ;;  %v4012_v13 = vpack.c.bf16 %v3980_v57, %v3980_v57 }
 0x56c   : > { %v5951_v57 = vadd.f32 %v5950_v47, %v9499_v8 }
 0x56d   : > { %v6268_v4 = vmul.f32 %v9590_v10, %v6198_v50 }
 0x56f   : > { %v6304_v11 = vadd.f32 %v9597_v2, %v6268_v4 }
 0x571   : > { %v6336_v42 = vmax.f32 %v6304_v11, 0.0  ;;  %v6039_v11 = vpop.f32.mrf.mxu3 }
 0x572   : > { %v6200_v29 = vpop.f32.mrf.mxu1 }
 0x573   : > { %6368 = vst [vmem:[%s9604_s19 + $0x48] sm:$0xff] %v6336_v42  ;;  %v6201_v31 = vadd.f32 %v6200_v29, %v6112_v18  ;;  %v4013_v42 = vpack.c.bf16 %v3981_v23, %v3981_v23  ;;  %v6128_v29 = vpop.f32.mrf.mxu0 }
 0x575   : > { %v6269_v15 = vmul.f32 %v9590_v10, %v6201_v31  ;;  %6239 = vmatmul.bf16.gmra.mxu1 %v9560_v21  ;;  %v5941_v21 = vadd.f32 %v5940_v37, %v9464_v28  ;;  %v5944_v28 = vadd.f32 %v5943_v26, %v9473_v35  ;;  %v5953_v31 = vpop.f32.mrf.mxu2 }
 0x577   : > { %v6305_v33 = vadd.f32 %v9597_v2, %v6269_v15  ;;  %v6030_v27 = vadd.f32 %v6029_v55, %v5941_v21  ;;  %v6033_v0 = vadd.f32 %v6032_v22, %v5944_v28  ;;  %v4844_v15 = vunpack.c.l.b16 %v4012_v13 }
 0x578   : > { %v5949_v21 = vadd.f32 %v5948_v1, %v9492_v53 }
 0x579   : > { %v6337_v9 = vmax.f32 %v6305_v33, 0.0  ;;  %v6119_v39 = vadd.f32 %v6118_v51, %v6030_v27  ;;  %v4845_v33 = vunpack.c.l.b16 %v4013_v42  ;;  %v5946_v51 = vadd.f32 %v5945_v59, %v9482_v14 }
 0x57a   : > { %v6202_v52 = vpop.f32.mrf.mxu1  ;;  %v6122_v35 = vadd.f32 %v6121_v43, %v6033_v0 }
 0x57b   : > { %6369 = vst [vmem:[%s9604_s19 + $0x50] sm:$0xff] %v6337_v9  ;;  %v6203_v38 = vadd.f32 %v6202_v52, %v6114_v24  ;;  %v4861_v26 = vpack.c.b16 %v4845_v33, %v4844_v15  ;;  %v6042_v9 = vpop.f32.mrf.mxu3  ;;  %v6131_v36 = vpop.f32.mrf.mxu0 }
 0x57d   : > { %v6270_v46 = vmul.f32 %v9590_v10, %v6203_v38  ;;  %v6035_v38 = vadd.f32 %v6034_v56, %v5946_v51 }
 0x57f   : > { %v6306_v61 = vadd.f32 %v9597_v2, %v6270_v46  ;;  %v5955_v46 = vpop.f32.mrf.mxu2  ;;  %v6124_v59 = vadd.f32 %v6123_v63, %v6035_v38  ;;  %v6040_v63 = vadd.f32 %v6039_v11, %v5951_v57 }
 0x580   : > { %v5956_v15 = vadd.f32 %v5955_v46, %v9516_v12 }
 0x581   : > { %v6338_v45 = vmax.f32 %v6306_v61, 0.0 }
 0x582   : > { %v6205_v17 = vpop.f32.mrf.mxu1 }
 0x583   : > { %6370 = vst [vmem:[%s9604_s19 + $0x58] sm:$0xff] %v6338_v45  ;;  %v6206_v62 = vadd.f32 %v6205_v17, %v6117_v20  ;;  %v6044_v20 = vpop.f32.mrf.mxu3  ;;  %v6038_v17 = vadd.f32 %v6037_v19, %v5949_v21  ;;  %v6133_v56 = vpop.f32.mrf.mxu0 }
 0x585   : > { %v6271_v50 = vmul.f32 %v9590_v10, %v6206_v62  ;;  %6244 = vmatmul.bf16.gmra.mxu1 %v9570_v40 }
 0x587   : > { %v6307_v4 = vadd.f32 %v9597_v2, %v6271_v50  ;;  %v5958_v50 = vpop.f32.mrf.mxu2 }
 0x589   : > { %v6339_v37 = vmax.f32 %v6307_v4, 0.0  ;;  %v6127_v4 = vadd.f32 %v6126_v58, %v6038_v17 }
 0x58a   : > { %v6207_v18 = vpop.f32.mrf.mxu1 }
 0x58b   : > { %6371 = vst [vmem:[%s9604_s19 + $0x60] sm:$0xff] %v6339_v37  ;;  %v6208_v55 = vadd.f32 %v6207_v18, %v6119_v39  ;;  %v6047_v28 = vpop.f32.mrf.mxu3  ;;  %v5954_v37 = vadd.f32 %v5953_v31, %v9509_v16  ;;  %v6136_v13 = vpop.f32.mrf.mxu0  ;;  %v6129_v18 = vadd.f32 %v6128_v29, %v6040_v63 }
 0x58d   : > { %v6272_v40 = vmul.f32 %v9590_v10, %v6208_v55  ;;  %v6043_v58 = vadd.f32 %v6042_v9, %v5954_v37  ;;  %v5959_v9 = vadd.f32 %v5958_v50, %v9526_v25 }
 0x58f   : > { %v6308_v32 = vadd.f32 %v9597_v2, %v6272_v40  ;;  %v5960_v55 = vpop.f32.mrf.mxu2 }
 0x591   : > { %v6340_v3 = vmax.f32 %v6308_v32, 0.0  ;;  %v6132_v32 = vadd.f32 %v6131_v36, %v6043_v58  ;;  %v6048_v36 = vadd.f32 %v6047_v28, %v5959_v9 }
 0x592   : > { %v6210_v24 = vpop.f32.mrf.mxu1 }
 0x593   : > { %6372 = vst [vmem:[%s9604_s19 + $0x68] sm:$0xff] %v6340_v3  ;;  %v6211_v52 = vadd.f32 %v6210_v24, %v6122_v35  ;;  %v6049_v40 = vpop.f32.mrf.mxu3  ;;  %v6138_v31 = vpop.f32.mrf.mxu0  ;;  %v6045_v3 = vadd.f32 %v6044_v20, %v5956_v15 }
 0x595   : > { %v6273_v22 = vmul.f32 %v9590_v10, %v6211_v52  ;;  %6249 = vmatmul.bf16.gmra.mxu1 %v4861_v26  ;;  %v6134_v52 = vadd.f32 %v6133_v56, %v6045_v3 }
 0x597   : > { %v6309_v61 = vadd.f32 %v9597_v2, %v6273_v22  ;;  %v5963_v29 = vpop.f32.mrf.mxu2 }
 0x599   : > { %v6341_v14 = vmax.f32 %v6309_v61, 0.0 }
 0x59a   : > { %v6212_v43 = vpop.f32.mrf.mxu1 }
 0x59b   : > { %6373 = vst [vmem:[%s9604_s19 + $0x70] sm:$0xff] %v6341_v14  ;;  %v6213_v45 = vadd.f32 %v6212_v43, %v6124_v59  ;;  %v6052_v38 = vpop.f32.mrf.mxu3  ;;  %v6141_v46 = vpop.f32.mrf.mxu0  ;;  %v5961_v59 = vadd.f32 %v5960_v55, %v9533_v34 }
 0x59d   : > { %v6274_v62 = vmul.f32 %v9590_v10, %v6213_v45  ;;  %v6137_v45 = vadd.f32 %v6136_v13, %v6048_v36 }
 0x59f   : > { %v6310_v27 = vadd.f32 %v9597_v2, %v6274_v62  ;;  %v5965_v21 = vpop.f32.mrf.mxu2  ;;  %v6050_v62 = vadd.f32 %v6049_v40, %v5961_v59 }
 0x5a0   : > { %v5966_v37 = vadd.f32 %v5965_v21, %v9547_v49 }
 0x5a1   : > { %v6342_v23 = vmax.f32 %v6310_v27, 0.0 }
 0x5a2   : > { %v6215_v53 = vpop.f32.mrf.mxu1 }
 0x5a3   : > { %6374 = vst [vmem:[%s9604_s19 + $0x78] sm:$0xff] %v6342_v23  ;;  %v6216_v1 = vadd.f32 %v6215_v53, %v6127_v4  ;;  %v6054_v17 = vpop.f32.mrf.mxu3  ;;  %v6143_v27 = vpop.f32.mrf.mxu0  ;;  %v5964_v23 = vadd.f32 %v5963_v29, %v9543_v60  ;;  %v6139_v53 = vadd.f32 %v6138_v31, %v6050_v62 }
 0x5a5   : > { %v6275_v39 = vmul.f32 %v9590_v10, %v6216_v1  ;;  %v6053_v63 = vadd.f32 %v6052_v38, %v5964_v23 }
 0x5a7   : > { %v6311_v19 = vadd.f32 %v9597_v2, %v6275_v39  ;;  %v5968_v57 = vpop.f32.mrf.mxu2 }
 0x5a8   : > { %v5969_v40 = vadd.f32 %v5968_v57, %v9554_v48 }
 0x5a9   : > { %v6343_v42 = vmax.f32 %v6311_v19, 0.0 }
 0x5aa   : > { %v6217_v8 = vpop.f32.mrf.mxu1 }
 0x5ab   : > { %6375 = vst [vmem:[%s9604_s19 + $0x80] sm:$0xff] %v6343_v42  ;;  %v6218_v47 = vadd.f32 %v6217_v8, %v6129_v18  ;;  %v6057_v28 = vpop.f32.mrf.mxu3  ;;  %v6146_v13 = vpop.f32.mrf.mxu0  ;;  %v6142_v18 = vadd.f32 %v6141_v46, %v6053_v63 }
 0x5ad   : > { %v6276_v0 = vmul.f32 %v9590_v10, %v6218_v47  ;;  %v6055_v47 = vadd.f32 %v6054_v17, %v5966_v37 }
 0x5af   : > { %v6312_v11 = vadd.f32 %v9597_v2, %v6276_v0  ;;  %v5970_v55 = vpop.f32.mrf.mxu2 }
 0x5b1   : > { %v6344_v33 = vmax.f32 %v6312_v11, 0.0 }
 0x5b2   : > { %v6220_v16 = vpop.f32.mrf.mxu1 }
 0x5b3   : > { %6376 = vst [vmem:[%s9604_s19 + $0x88] sm:$0xff] %v6344_v33  ;;  %v6221_v51 = vadd.f32 %v6220_v16, %v6132_v32  ;;  %v6059_v11 = vpop.f32.mrf.mxu3  ;;  %v6144_v33 = vadd.f32 %v6143_v27, %v6055_v47  ;;  %v6148_v32 = vpop.f32.mrf.mxu0 }
 0x5b5   : > { %v6277_v35 = vmul.f32 %v9590_v10, %v6221_v51  ;;  %v6058_v51 = vadd.f32 %v6057_v28, %v5969_v40 }
 0x5b7   : > { %v6313_v26 = vadd.f32 %v9597_v2, %v6277_v35  ;;  %v5973_v31 = vpop.f32.mrf.mxu2  ;;  %v5971_v35 = vadd.f32 %v5970_v55, %v9558_v41  ;;  %v6147_v9 = vadd.f32 %v6146_v13, %v6058_v51 }
 0x5b9   : > { %v6345_v24 = vmax.f32 %v6313_v26, 0.0  ;;  %v6060_v38 = vadd.f32 %v6059_v11, %v5971_v35 }
 0x5ba   : > { %v6222_v12 = vpop.f32.mrf.mxu1 }
 0x5bb   : > { %6377 = vst [vmem:[%s9604_s19 + $0x90] sm:$0xff] %v6345_v24  ;;  %v6223_v22 = vadd.f32 %v6222_v12, %v6134_v52  ;;  %v6062_v24 = vpop.f32.mrf.mxu3  ;;  %v6151_v12 = vpop.f32.mrf.mxu0 }
 0x5bd   : > { %v6278_v61 = vmul.f32 %v9590_v10, %v6223_v22 }
 0x5bf   : > { %v6314_v14 = vadd.f32 %v9597_v2, %v6278_v61  ;;  %v5975_v36 = vpop.f32.mrf.mxu2  ;;  %v5974_v61 = vadd.f32 %v5973_v31, %v9564_v6 }
 0x5c1   : > { %v6346_v43 = vmax.f32 %v6314_v14, 0.0  ;;  %v6149_v14 = vadd.f32 %v6148_v32, %v6060_v38 }
 0x5c2   : > { %v6225_v25 = vpop.f32.mrf.mxu1 }
 0x5c3   : > { %6378 = vst [vmem:[%s9604_s19 + $0x98] sm:$0xff] %v6346_v43  ;;  %v6226_v20 = vadd.f32 %v6225_v25, %v6137_v45  ;;  %v6064_v43 = vpop.f32.mrf.mxu3  ;;  %v6063_v45 = vadd.f32 %v6062_v24, %v5974_v61 }
 0x5c5   : > { %v6279_v56 = vmul.f32 %v9590_v10, %v6226_v20  ;;  %v6153_v20 = vpop.f32.mrf.mxu0 }
 0x5c7   : > { %v6315_v50 = vadd.f32 %v9597_v2, %v6279_v56  ;;  %v5978_v62 = vpop.f32.mrf.mxu2  ;;  %v5976_v56 = vadd.f32 %v5975_v36, %v9568_v5 }
 0x5c8   : > { %v5979_v63 = vadd.f32 %v5978_v62, %v9574_v44 }
 0x5c9   : > { %v6347_v4 = vmax.f32 %v6315_v50, 0.0  ;;  %v6152_v50 = vadd.f32 %v6151_v12, %v6063_v45  ;;  %v6065_v23 = vadd.f32 %v6064_v43, %v5976_v56 }
 0x5ca   : > { %v6227_v34 = vpop.f32.mrf.mxu1 }
 0x5cb   : > { %6379 = vst [vmem:[%s9604_s19 + $0xa0] sm:$0xff] %v6347_v4  ;;  %v6228_v1 = vadd.f32 %v6227_v34, %v6139_v53  ;;  %v6067_v53 = vpop.f32.mrf.mxu3  ;;  %v6154_v28 = vadd.f32 %v6153_v20, %v6065_v23 }
 0x5cc   : > { %v6068_v13 = vadd.f32 %v6067_v53, %v5979_v63 }
 0x5cd   : > { %v6280_v39 = vmul.f32 %v9590_v10, %v6228_v1  ;;  %v6156_v1 = vpop.f32.mrf.mxu0 }
 0x5ce   : > { %v6157_v47 = vadd.f32 %v6156_v1, %v6068_v13 }
 0x5cf   : > { %v6316_v19 = vadd.f32 %v9597_v2, %v6280_v39 }
 0x5d1   : > { %v6348_v42 = vmax.f32 %v6316_v19, 0.0  ;;  %v5980_v19 = vpop.f32.mrf.mxu2 }
 0x5d2   : > { %v6230_v60 = vpop.f32.mrf.mxu1 }
 0x5d3   : > { %6380 = vst [vmem:[%s9604_s19 + $0xa8] sm:$0xff] %v6348_v42  ;;  %v6231_v8 = vadd.f32 %v6230_v60, %v6142_v18  ;;  %v6069_v55 = vpop.f32.mrf.mxu3  ;;  %v5981_v60 = vadd.f32 %v5980_v19, %v9578_v54 }
 0x5d5   : > { %v6281_v58 = vmul.f32 %v9590_v10, %v6231_v8  ;;  %v6070_v40 = vadd.f32 %v6069_v55, %v5981_v60 }
 0x5d7   : > { %v6317_v0 = vadd.f32 %v9597_v2, %v6281_v58 }
 0x5d9   : > { %v6349_v15 = vmax.f32 %v6317_v0, 0.0  ;;  %v6158_v0 = vpop.f32.mrf.mxu0  ;;  %v5983_v11 = vpop.f32.mrf.mxu2 }
 0x5da   : > { %v6232_v49 = vpop.f32.mrf.mxu1  ;;  %v5984_v32 = vadd.f32 %v5983_v11, %v9581_v7  ;;  %v6159_v31 = vadd.f32 %v6158_v0, %v6070_v40 }
 0x5db   : > { %6381 = vst [vmem:[%s9604_s19 + $0xb0] sm:$0xff] %v6349_v15  ;;  %v6233_v16 = vadd.f32 %v6232_v49, %v6144_v33  ;;  %v6072_v49 = vpop.f32.mrf.mxu3 }
 0x5dd   : > { %v6282_v29 = vmul.f32 %v9590_v10, %v6233_v16 }
 0x5df   : > { %v6318_v3 = vadd.f32 %v9597_v2, %v6282_v29 }
 0x5e1   : > { %v6350_v26 = vmax.f32 %v6318_v3, 0.0  ;;  %v6161_v29 = vpop.f32.mrf.mxu0  ;;  %v6073_v3 = vadd.f32 %v6072_v49, %v5984_v32 }
 0x5e2   : > { %v6235_v48 = vpop.f32.mrf.mxu1 }
 0x5e3   : > { %6382 = vst [vmem:[%s9604_s19 + $0xb8] sm:$0xff] %v6350_v26  ;;  %v6236_v52 = vadd.f32 %v6235_v48, %v6147_v9  ;;  %v5985_v26 = vpop.f32.mrf.mxu2  ;;  %v6162_v24 = vadd.f32 %v6161_v29, %v6073_v3  ;;  %v6074_v7 = vpop.f32.mrf.mxu3 }
 0x5e4   : > { %v5986_v48 = vadd.f32 %v5985_v26, %v9585_v30 }
 0x5e5   : > { %v6283_v22 = vmul.f32 %v9590_v10, %v6236_v52 }
 0x5e7   : > { %v6319_v46 = vadd.f32 %v9597_v2, %v6283_v22  ;;  %v6075_v22 = vadd.f32 %v6074_v7, %v5986_v48 }
 0x5e9   : > { %v6351_v21 = vmax.f32 %v6319_v46, 0.0  ;;  %v6163_v46 = vpop.f32.mrf.mxu0 }
 0x5ea   : > { %v6237_v41 = vpop.f32.mrf.mxu1 }
 0x5eb   : > { %6383 = vst [vmem:[%s9604_s19 + $0xc0] sm:$0xff] %v6351_v21  ;;  %v6238_v59 = vadd.f32 %v6237_v41, %v6149_v14  ;;  %v6164_v21 = vadd.f32 %v6163_v46, %v6075_v22 }
 0x5ed   : > { %v6284_v25 = vmul.f32 %v9590_v10, %v6238_v59 }
 0x5ef   : > { %v6320_v17 = vadd.f32 %v9597_v2, %v6284_v25 }
 0x5f1   : > { %v6352_v27 = vmax.f32 %v6320_v17, 0.0 }
 0x5f2   : > { %v6240_v6 = vpop.f32.mrf.mxu1 }
 0x5f3   : > { %6384 = vst [vmem:[%s9604_s19 + $0xc8] sm:$0xff] %v6352_v27  ;;  %v6241_v57 = vadd.f32 %v6240_v6, %v6152_v50 }
 0x5f5   : > { %v6285_v4 = vmul.f32 %v9590_v10, %v6241_v57 }
 0x5f7   : > { %v6321_v34 = vadd.f32 %v9597_v2, %v6285_v4 }
 0x5f9   : > { %v6353_v39 = vmax.f32 %v6321_v34, 0.0 }
 0x5fa   : > { %v6242_v5 = vpop.f32.mrf.mxu1 }
 0x5fb   : > { %6385 = vst [vmem:[%s9604_s19 + $0xd0] sm:$0xff] %v6353_v39  ;;  %v6243_v37 = vadd.f32 %v6242_v5, %v6154_v28 }
 0x5fd   : > { %v6286_v42 = vmul.f32 %v9590_v10, %v6243_v37 }
 0x5ff   : > { %v6322_v18 = vadd.f32 %v9597_v2, %v6286_v42 }
 0x601   : > { %v6354_v8 = vmax.f32 %v6322_v18, 0.0 }
 0x602   : > { %v6245_v58 = vpop.f32.mrf.mxu1 }
 0x603   : > { %6386 = vst [vmem:[%s9604_s19 + $0xd8] sm:$0xff] %v6354_v8  ;;  %v6246_v44 = vadd.f32 %v6245_v58, %v6157_v47 }
 0x605   : > { %v6287_v15 = vmul.f32 %v9590_v10, %v6246_v44 }
 0x607   : > { %v6323_v33 = vadd.f32 %v9597_v2, %v6287_v15 }
 0x609   : > { %v6355_v16 = vmax.f32 %v6323_v33, 0.0 }
 0x60a   : > { %v6247_v54 = vpop.f32.mrf.mxu1 }
 0x60b   : > { %6387 = vst [vmem:[%s9604_s19 + $0xe0] sm:$0xff] %v6355_v16  ;;  %v6248_v51 = vadd.f32 %v6247_v54, %v6159_v31 }
 0x60d   : > { %v6288_v35 = vmul.f32 %v9590_v10, %v6248_v51 }
 0x60f   : > { %v6324_v9 = vadd.f32 %v9597_v2, %v6288_v35 }
 0x611   : > { %v6356_v52 = vmax.f32 %v6324_v9, 0.0 }
 0x612   : > { %v6250_v38 = vpop.f32.mrf.mxu1 }
 0x613   : > { %6388 = vst [vmem:[%s9604_s19 + $0xe8] sm:$0xff] %v6356_v52  ;;  %v6251_v12 = vadd.f32 %v6250_v38, %v6162_v24 }
 0x615   : > { %v6289_v36 = vmul.f32 %v9590_v10, %v6251_v12 }
 0x617   : > { %v6325_v61 = vadd.f32 %v9597_v2, %v6289_v36 }
 0x619   : > { %v6357_v14 = vmax.f32 %v6325_v61, 0.0 }
 0x61a   : > { %v6252_v41 = vpop.f32.mrf.mxu1 }
 0x61b   : > { %6389 = vst [vmem:[%s9604_s19 + $0xf0] sm:$0xff] %v6357_v14  ;;  %v6253_v30 = vadd.f32 %v6252_v41, %v6164_v21 }
 0x61d   : > { %v6290_v59 = vmul.f32 %v9590_v10, %v6253_v30 }
 0x61f   : > { %v6326_v43 = vadd.f32 %v9597_v2, %v6290_v59 }
 0x621   : > { %v6358_v45 = vmax.f32 %v6326_v43, 0.0 }
 0x623   : > { %6390 = vst [vmem:[%s9604_s19 + $0xf8] sm:$0xff] %v6358_v45 }
 0x624   : > { %7375 = shalt.err (!%p7372_p3)
}
 0x625   : > { %s7414_s16 = smov 128   ;;  %s7415_s19 = smov 8  }
 0x626   : > { %7298 = dma.vmem_to_hbm [thread:$0]  (%p7494_p5), %s6405_s8, 4096, %s6407_s9, %s6392_s28, %s7414_s16, %s7414_s16, %s7415_s19  }
 0x627 PF: > { %p7304_p4 = scmp.ge.s32.totalorder %s7410_s27, 2  ;;  %s6421_s22 = sand.u32 1, %s7398_s24  }
 0x628   : > { %s6422_s23 = scalar_lea.sflag [#allocation5], %s6421_s22 }
 0x629   : > { %p7301_p7 = pnand %p7304_p4, %p7498_p6 }
 0x62b   : > { %p7302_p8 = pneg %p7301_p7 }
 0x62d   : > { %7393 = dma.done.wait (%p7302_p8), %s6422_s23, 4096  }
 0x62e   : > { %7395 = vsyncadd (%p7302_p8), %s6422_s23, 4294963200  ;;  %p17_p9 = scmp.ge.s32.totalorder %s7481_s30, 4   ;;  %s9839_s24 = smov %s7402_s25 }
 0x62f   : > { %s9840_s25 = smov %s7406_s26  ;;  %s9841_s26 = smov %s7492_s10 }
 0x630   : > { %s9842_s27 = smov %s7481_s30  ;;  %19 = sbr.rel (!%p17_p9) target bundleno = 3 (0x3), region = 87 }
 0x635   :  { %6428 = vsyncpa [#allocation5], 1 }
 0x636   :  { %6430 = vsyncpa [#allocation5 + $0x1], 1 }

</bundles_post_ra>
